<compile_context>
chip_gen: v5e
topology: v5e:2x2
jax: 0.10.0
libtpu: 0.0.40
codegen_flags: <defaults>
</compile_context>

<pallas_src>
import jax
import jax.numpy as jnp
from jax.experimental import pallas as pl
from jax.experimental.pallas import tpu as pltpu


# -----------------------------------------------------------------------------
# Fused Pallas kernel factory: backbone embedding + 3x3 conv + conf/reg heads
# -----------------------------------------------------------------------------
def _make_rpn_fused_kernel(H, W, C_pad):
    Hp2, Wp2 = H + 2, W + 2
    HW = H * W

    def kernel(xp_ref, wfe_ref, w1_ref, wh_ref, feat_ref, head_ref, patch_ref):
        # xp  : (1, Hp2*Wp2, K1pad) lane-dense padded-image patch slab (halo rows = 0)
        # wfe : (K1pad, C_pad) bf16   patch-embedding weight; row K1-1 is the
        #                             interior-indicator row driving the 'ones' channel
        # w1  : (9*C_pad, Hd)  bf16   3x3 conv, per-tap 128-lane-aligned slabs,
        #                             conv bias folded into the centre-tap ones row
        # wh  : (Hd, Dpad)     bf16   fused conf(A)+reg(4A) heads, zero-padded to 128
        # feat: (1, HW, C_pad) f32    head: (1, HW, Dpad) f32  (lane-dense outputs)
        # patch_ref: VMEM scratch (HW, 9*C_pad) bf16  (im2col slab)

        # ---- 1. embed the whole padded grid ONCE (halo rows stay exactly 0) ----
        xl = xp_ref[0].astype(jnp.bfloat16)                          # (Hp2*Wp2, K1p)
        emb = jnp.maximum(
            jnp.dot(xl, wfe_ref[...], preferred_element_type=jnp.float32), 0.0)
        emb3 = emb.reshape(Hp2, Wp2, C_pad)

        # ---- 2. backbone feature map = lane-dense interior slice ----
        feat_ref[0] = emb3[1:1 + H, 1:1 + W, :].reshape(HW, C_pad)

        # ---- 3. 3x3 conv: im2col into lane-aligned scratch + ONE K=9*C_pad matmul ----
        emb3_bf = emb3.astype(jnp.bfloat16)
        for t in range(9):
            dy, dx = t // 3, t % 3
            patch_ref[:, t * C_pad:(t + 1) * C_pad] = (
                emb3_bf[dy:dy + H, dx:dx + W, :].reshape(HW, C_pad))
        hidden = jnp.maximum(
            jnp.dot(patch_ref[...], w1_ref[...],
                    preferred_element_type=jnp.float32), 0.0)
        # TODO(synk): nn.Dropout(p=0.3) is stochastic in train mode; applied as identity.

        # ---- 4. fused conf + reg heads -> single lane-dense (HW, 128) store ----
        head_ref[0] = jnp.dot(hidden.astype(jnp.bfloat16), wh_ref[...],
                              preferred_element_type=jnp.float32)

    return kernel


# -----------------------------------------------------------------------------
# Region Proposal Network (Pallas)
# -----------------------------------------------------------------------------
class RegionProposalNetworkPallas:
    def __init__(self, img_size, out_size, out_channels, hidden_dim=512, key=None):
        self.img_h, self.img_w = img_size
        self.out_h, self.out_w = out_size
        self.w_sf = self.img_w // self.out_w
        self.h_sf = self.img_h // self.out_h
        self.anc_scales = [1, 2, 3]
        self.anc_ratios = [0.25, 0.5, 1]
        self.n_anc = len(self.anc_scales) * len(self.anc_ratios)
        self.w_conf = 1.0
        self.w_reg = 5.0
        self.out_channels = out_channels
        self.hidden = hidden_dim

        A, C, Hd, Cin = self.n_anc, out_channels, hidden_dim, 3
        Kp = self.h_sf * self.w_sf * Cin
        K1 = Kp + 1                                      # + interior-indicator column
        self.k1 = K1
        # lane-dense paddings: input / embedding / head channels all 128-lane aligned
        self.k1_pad = ((K1 + 127) // 128) * 128
        self.c_pad = ((C + 1 + 127) // 128) * 128        # +1 spare 'ones' channel
        self.head_pad = max(128, ((5 * A + 127) // 128) * 128)

        key = jax.random.PRNGKey(42) if key is None else key
        ks = jax.random.split(key, 6)

        # TODO(synk): pretrained torchvision ResNet50 backbone cannot be reproduced
        # without its checkpoint; replaced by a deterministic strided patch-embedding
        # conv producing the same (B, out_channels, out_h, out_w) feature map.
        w_fe = 0.1 * jax.random.normal(ks[0], (Kp, C), jnp.float32)
        wfe = jnp.zeros((self.k1_pad, self.c_pad), jnp.float32)
        wfe = wfe.at[:Kp, :C].set(w_fe)                  # bias row (K1-1) stays zero
        wfe = wfe.at[K1 - 1, C].set(1.0)                 # indicator -> 'ones' channel
        self.wfe = wfe.astype(jnp.bfloat16)

        # ProposalModule conv1 (3x3) as 9 per-tap (C_pad, Hd) lane-aligned slabs;
        # conv bias b1 folded into the centre tap's ones-channel row.
        w1 = 0.05 * jax.random.normal(ks[1], (Hd, C, 3, 3), jnp.float32)
        b1 = 0.01 * jax.random.normal(ks[2], (Hd,), jnp.float32)
        w1_taps = jnp.transpose(w1, (2, 3, 1, 0)).reshape(9, C, Hd)
        w1p = jnp.zeros((9 * self.c_pad, Hd), jnp.float32)
        for t in range(9):
            w1p = w1p.at[t * self.c_pad:t * self.c_pad + C, :].set(w1_taps[t])
        w1p = w1p.at[4 * self.c_pad + C, :].set(b1)      # centre tap sees ones == 1
        self.w1 = w1p.astype(jnp.bfloat16)

        # fused conf(A) + reg(4A) 1x1 heads, zero-padded to 128 lanes.
        # TODO(synk): reference Conv2d head biases use torch default init; zero here.
        wc = 0.05 * jax.random.normal(ks[3], (Hd, A), jnp.float32)
        wr = 0.01 * jax.random.normal(ks[4], (Hd, 4 * A), jnp.float32)
        wh = jnp.zeros((Hd, self.head_pad), jnp.float32)
        wh = wh.at[:, :A].set(wc).at[:, A:5 * A].set(wr)
        self.wh = wh.astype(jnp.bfloat16)

        # TODO(synk): reference resamples negatives with torch.randint every call;
        # a fixed key is used here so the forward is deterministic.
        self.neg_key = jax.random.fold_in(ks[5], 1)

        self.anc_base = self._gen_anc_base()             # (1, W, H, A, 4)
        self._heads = jax.jit(self._compute_heads)

    # ------------------------------------------------------------------ fused heads
    def _compute_heads(self, images):
        B, Cin, _, _ = images.shape
        H, W = self.out_h, self.out_w
        sh, sw = self.h_sf, self.w_sf
        C, Hd, A = self.out_channels, self.hidden, self.n_anc
        C_pad, Dpad, K1p = self.c_pad, self.head_pad, self.k1_pad
        K1 = sh * sw * Cin + 1
        Hp2, Wp2 = H + 2, W + 2
        RP = Hp2 * Wp2
        HW = H * W

        # strided patch extraction (image im2col) + interior indicator, zero halo,
        # handed to the kernel as a lane-dense 2-D (RP, 128) slab per image.
        x = jnp.transpose(images.astype(jnp.float32), (0, 2, 3, 1))          # NHWC
        x = x.reshape(B, H, sh, W, sw, Cin)
        x = jnp.transpose(x, (0, 1, 3, 2, 4, 5)).reshape(B, H, W, sh * sw * Cin)
        ind = jnp.ones((B, H, W, 1), jnp.float32)
        xp = jnp.concatenate([x, ind], axis=-1)                              # (B,H,W,K1)
        xp = jnp.pad(xp, ((0, 0), (1, 1), (1, 1), (0, K1p - K1)))            # halo+lanes
        xp = xp.reshape(B, RP, K1p)

        kernel = _make_rpn_fused_kernel(H, W, C_pad)
        feat, head = pl.pallas_call(
            kernel,
            grid=(B,),
            in_specs=[
                pl.BlockSpec((1, RP, K1p), lambda b: (b, 0, 0)),
                pl.BlockSpec((K1p, C_pad), lambda b: (0, 0)),       # VMEM-resident
                pl.BlockSpec((9 * C_pad, Hd), lambda b: (0, 0)),    # VMEM-resident
                pl.BlockSpec((Hd, Dpad), lambda b: (0, 0)),         # VMEM-resident
            ],
            out_specs=[
                pl.BlockSpec((1, HW, C_pad), lambda b: (b, 0, 0)),
                pl.BlockSpec((1, HW, Dpad), lambda b: (b, 0, 0)),
            ],
            out_shape=(jax.ShapeDtypeStruct((B, HW, C_pad), jnp.float32),
                       jax.ShapeDtypeStruct((B, HW, Dpad), jnp.float32)),
            scratch_shapes=[pltpu.VMEM((HW, 9 * C_pad), jnp.bfloat16)],
            compiler_params=pltpu.CompilerParams(
                dimension_semantics=("parallel",),
                vmem_limit_bytes=32 * 1024 * 1024),
        )(xp, self.wfe, self.w1, self.wh)

        feat_nhwc = feat[:, :, :C].reshape(B, H, W, C)
        feature_map = jnp.transpose(feat_nhwc, (0, 3, 1, 2))                 # NCHW

        conf_nhwc = head[:, :, :A].reshape(B, H, W, A)
        reg_nhwc = head[:, :, A:5 * A].reshape(B, H, W, 4 * A)
        # Reproduce PyTorch NCHW flatten()/view(-1, 4) gather semantics exactly
        # (including the reference code's ordering quirks).
        conf_flat = jnp.transpose(conf_nhwc, (0, 3, 1, 2)).reshape(-1)
        reg_flat4 = jnp.transpose(reg_nhwc, (0, 3, 1, 2)).reshape(-1, 4)
        return feature_map, conf_flat, reg_flat4

    # ------------------------------------------------------------------ anchors
    def _gen_anc_base(self):
        A = self.n_anc
        xc = (jnp.arange(self.out_w, dtype=jnp.float32) + 0.5)[:, None, None]
        yc = (jnp.arange(self.out_h, dtype=jnp.float32) + 0.5)[None, :, None]
        ws = jnp.array([s * r for s in self.anc_scales for r in self.anc_ratios],
                       jnp.float32)
        hs = jnp.array([float(s) for s in self.anc_scales for _ in self.anc_ratios],
                       jnp.float32)
        shape = (self.out_w, self.out_h, A)
        xmin = jnp.broadcast_to(jnp.clip(xc - ws / 2, 0.0, float(self.out_w)), shape)
        ymin = jnp.broadcast_to(jnp.clip(yc - hs / 2, 0.0, float(self.out_h)), shape)
        xmax = jnp.broadcast_to(jnp.clip(xc + ws / 2, 0.0, float(self.out_w)), shape)
        ymax = jnp.broadcast_to(jnp.clip(yc + hs / 2, 0.0, float(self.out_h)), shape)
        return jnp.stack([xmin, ymin, xmax, ymax], axis=-1)[None]     # (1,W,H,A,4)

    def _project_bboxes(self, bboxes):
        # mode 'p2a': pixel -> activation-map coords, keep -1 padding untouched
        invalid = bboxes == -1
        scale = jnp.array([self.w_sf, self.h_sf, self.w_sf, self.h_sf], jnp.float32)
        proj = bboxes.astype(jnp.float32) / scale
        return jnp.where(invalid, -1.0, proj)

    # ------------------------------------------------------------------ IoU
    @staticmethod
    def _iou_bnm(anc_flat, gt):
        # anc_flat: (B, M, 4)  gt: (B, N, 4)  ->  iou (B, N, M)
        ax1, ay1, ax2, ay2 = (anc_flat[:, None, :, i] for i in range(4))
        gx1, gy1, gx2, gy2 = (gt[:, :, None, i] for i in range(4))
        area_a = (ax2 - ax1) * (ay2 - ay1)
        area_g = (gx2 - gx1) * (gy2 - gy1)
        iw = jnp.maximum(jnp.minimum(ax2, gx2) - jnp.maximum(ax1, gx1), 0.0)
        ih = jnp.maximum(jnp.minimum(ay2, gy2) - jnp.maximum(ay1, gy1), 0.0)
        inter = iw * ih
        return inter / (area_a + area_g - inter)

    # ------------------------------------------------------------------ offsets
    @staticmethod
    def _calc_gt_offsets(pos_anc, gt_box):
        def to_cxcywh(b):
            return ((b[:, 0] + b[:, 2]) / 2, (b[:, 1] + b[:, 3]) / 2,
                    b[:, 2] - b[:, 0], b[:, 3] - b[:, 1])
        acx, acy, aw, ah = to_cxcywh(pos_anc)
        gcx, gcy, gw, gh = to_cxcywh(gt_box)
        return jnp.stack([(gcx - acx) / aw, (gcy - acy) / ah,
                          jnp.log(gw / aw), jnp.log(gh / ah)], axis=-1)

    # ------------------------------------------------------------------ anchor selection
    # TODO(synk): dynamic-shape jnp.where keeps exact reference semantics but forces
    # this section (and only this section) to run eagerly outside jax.jit.
    def _get_req_anchors(self, anc_boxes_all, gt_bboxes_all, gt_classes_all,
                         pos_thresh=0.7, neg_thresh=0.2):
        B, w_amap, h_amap, A, _ = anc_boxes_all.shape
        N = gt_bboxes_all.shape[1]
        M = w_amap * h_amap * A
        anc_flat_b = anc_boxes_all.reshape(B, M, 4)

        iou_bnm = self._iou_bnm(anc_flat_b, gt_bboxes_all)            # (B, N, M)
        max_iou_per_gt = jnp.max(iou_bnm, axis=-1, keepdims=True)     # (B, N, 1)
        pos_mask_bnm = jnp.logical_and(iou_bnm == max_iou_per_gt, max_iou_per_gt > 0)
        pos_mask_bnm = jnp.logical_or(pos_mask_bnm, iou_bnm > pos_thresh)
        pos_mask = jnp.transpose(pos_mask_bnm, (0, 2, 1))             # (B, M, N)

        positive_anc_ind_sep = jnp.where(pos_mask)[0]
        positive_anc_ind = jnp.where(pos_mask.reshape(B * M, N))[0]

        max_iou_per_anc = jnp.max(iou_bnm, axis=1)                    # (B, M)
        max_iou_per_anc_ind = jnp.argmax(iou_bnm, axis=1)             # (B, M)
        max_iou_flat = max_iou_per_anc.reshape(B * M)
        GT_conf_scores = max_iou_flat[positive_anc_ind]

        GT_class = jnp.take_along_axis(gt_classes_all, max_iou_per_anc_ind,
                                       axis=1).reshape(B * M)
        GT_class_pos = GT_class[positive_anc_ind]

        idx4 = jnp.broadcast_to(max_iou_per_anc_ind[:, :, None], (B, M, 4))
        GT_bboxes = jnp.take_along_axis(gt_bboxes_all, idx4, axis=1)  # (B, M, 4)
        GT_bboxes_pos = GT_bboxes.reshape(B * M, 4)[positive_anc_ind]

        anc_flat = anc_flat_b.reshape(B * M, 4)
        positive_anc_coords = anc_flat[positive_anc_ind]
        GT_offsets = self._calc_gt_offsets(positive_anc_coords, GT_bboxes_pos)

        negative_all = jnp.where(max_iou_flat < neg_thresh)[0]
        sample = jax.random.randint(self.neg_key, (positive_anc_ind.shape[0],),
                                    0, int(negative_all.shape[0]))
        negative_anc_ind = negative_all[sample]
        negative_anc_coords = anc_flat[negative_anc_ind]

        return (positive_anc_ind, negative_anc_ind, GT_conf_scores, GT_offsets,
                GT_class_pos, positive_anc_coords, negative_anc_coords,
                positive_anc_ind_sep)

    # ------------------------------------------------------------------ proposals / losses
    @staticmethod
    def _generate_proposals(anc, offsets):
        cx = (anc[:, 0] + anc[:, 2]) * 0.5
        cy = (anc[:, 1] + anc[:, 3]) * 0.5
        w = anc[:, 2] - anc[:, 0]
        h = anc[:, 3] - anc[:, 1]
        pcx = cx + offsets[:, 0] * w
        pcy = cy + offsets[:, 1] * h
        pw = w * jnp.exp(offsets[:, 2])
        ph = h * jnp.exp(offsets[:, 3])
        return jnp.stack([pcx - 0.5 * pw, pcy - 0.5 * ph,
                          pcx + 0.5 * pw, pcy + 0.5 * ph], axis=-1)

    @staticmethod
    def _bce_with_logits_mean(x, t):
        return jnp.mean(jnp.maximum(x, 0.0) - x * t + jnp.log1p(jnp.exp(-jnp.abs(x))))

    # ------------------------------------------------------------------ forward
    def __call__(self, images, gt_bboxes, gt_classes):
        B = images.shape[0]
        feature_map, conf_flat, reg_flat4 = self._heads(images)      # one Pallas call

        anc_boxes_all = jnp.broadcast_to(
            self.anc_base, (B,) + self.anc_base.shape[1:])
        gt_proj = self._project_bboxes(gt_bboxes)

        (pos_ind, neg_ind, GT_conf, GT_offsets, GT_class_pos,
         pos_coords, _neg_coords, pos_ind_sep) = self._get_req_anchors(
            anc_boxes_all, gt_proj, gt_classes)

        conf_pos = conf_flat[pos_ind]
        conf_neg = conf_flat[neg_ind]
        offsets_pos = reg_flat4[pos_ind]
        proposals = self._generate_proposals(pos_coords, offsets_pos)

        # NOTE: the reference's calc_cls_loss uses GT_conf as the target for both
        # positive AND negative scores; reproduced verbatim.
        cls_loss = (self._bce_with_logits_mean(conf_pos, GT_conf)
                    + self._bce_with_logits_mean(conf_neg, GT_conf)) / B
        reg_loss = jnp.mean((offsets_pos - GT_offsets) ** 2) / B
        total_rpn_loss = self.w_conf * cls_loss + self.w_reg * reg_loss
        return total_rpn_loss, feature_map, proposals, pos_ind_sep, GT_class_pos


# -----------------------------------------------------------------------------
if __name__ == "__main__":
    img_size = (32, 32)
    out_size = (8, 8)
    out_channels = 16

    rpn = RegionProposalNetworkPallas(img_size, out_size, out_channels)

    key = jax.random.PRNGKey(0)
    images = jax.random.normal(key, (2, 3, 32, 32), jnp.float32)
    gt_bboxes = jnp.array([[[4.0, 4.0, 20.0, 20.0], [10.0, 8.0, 28.0, 30.0]],
                           [[2.0, 6.0, 18.0, 24.0], [-1.0, -1.0, -1.0, -1.0]]],
                          jnp.float32)
    gt_classes = jnp.array([[1, 2], [3, -1]], jnp.int32)

    total_loss, feature_map, proposals, pos_ind_sep, gt_class_pos = rpn(
        images, gt_bboxes, gt_classes)
    jax.block_until_ready((total_loss, feature_map, proposals,
                           pos_ind_sep, gt_class_pos))
    print("KERNEL_OK")
</pallas_src>

<mosaic_0001>
module attributes {stable_mosaic.version = 11 : i64} {
  func.func @kernel(%arg0: i32, %arg1: memref<1x100x128xf32, #tpu.memory_space<vmem>>, %arg2: memref<128x128xbf16, #tpu.memory_space<vmem>>, %arg3: memref<1152x512xbf16, #tpu.memory_space<vmem>>, %arg4: memref<512x128xbf16, #tpu.memory_space<vmem>>, %arg5: memref<1x64x128xf32, #tpu.memory_space<vmem>>, %arg6: memref<1x64x128xf32, #tpu.memory_space<vmem>>, %arg7: memref<64x1152xbf16, #tpu.memory_space<vmem>>) attributes {dimension_semantics = [#tpu.dimension_semantics<parallel>], iteration_bounds = array<i64: 2>, scalar_prefetch = 0 : i64, scratch_operands = 1 : i64, tpu.core_type = #tpu.core_type<tc>, window_params = [{transform_indices = @transform_0, window_bounds = array<i64: 1, 100, 128>}, {pipeline_mode = #tpu.pipeline_mode<synchronous>, transform_indices = @transform_1, window_bounds = array<i64: 128, 128>}, {pipeline_mode = #tpu.pipeline_mode<synchronous>, transform_indices = @transform_2, window_bounds = array<i64: 1152, 512>}, {pipeline_mode = #tpu.pipeline_mode<synchronous>, transform_indices = @transform_3, window_bounds = array<i64: 512, 128>}, {transform_indices = @transform_4, window_bounds = array<i64: 1, 64, 128>}, {transform_indices = @transform_5, window_bounds = array<i64: 1, 64, 128>}]} {
    %c0 = arith.constant 0 : index
    %c0_0 = arith.constant 0 : index
    %c0_1 = arith.constant 0 : index
    %0 = vector.load %arg1[%c0, %c0_0, %c0_1] : memref<1x100x128xf32, #tpu.memory_space<vmem>>, vector<1x100x128xf32>
    %1 = vector.shape_cast %0 : vector<1x100x128xf32> to vector<100x128xf32>
    %2 = arith.truncf %1 : vector<100x128xf32> to vector<100x128xbf16>
    %c0_2 = arith.constant 0 : index
    %c0_3 = arith.constant 0 : index
    %3 = vector.load %arg2[%c0_2, %c0_3] : memref<128x128xbf16, #tpu.memory_space<vmem>>, vector<128x128xbf16>
    %cst = arith.constant dense<0.000000e+00> : vector<100x128xf32>
    %4 = tpu.matmul %2, %3, %cst {dimension_numbers = #tpu.dot_dimension_numbers<[1], [0], [0], [1], [0, 0, 1, 1], [], []>} : vector<100x128xbf16>, vector<128x128xbf16>, vector<100x128xf32> -> vector<100x128xf32>
    %cst_4 = arith.constant 0.000000e+00 : f32
    %5 = vector.broadcast %cst_4 : f32 to vector<100x128xf32>
    %6 = arith.maximumf %4, %5 : vector<100x128xf32>
    %7 = vector.shape_cast %6 : vector<100x128xf32> to vector<10x10x128xf32>
    %8 = vector.extract_strided_slice %7 {offsets = [1, 1, 0], sizes = [8, 8, 128], strides = [1, 1, 1]} : vector<10x10x128xf32> to vector<8x8x128xf32>
    %9 = vector.shape_cast %8 : vector<8x8x128xf32> to vector<64x128xf32>
    %c0_5 = arith.constant 0 : index
    %c0_6 = arith.constant 0 : index
    %c0_7 = arith.constant 0 : index
    %10 = vector.load %arg5[%c0_5, %c0_6, %c0_7] : memref<1x64x128xf32, #tpu.memory_space<vmem>>, vector<1x64x128xf32>
    %11 = vector.shape_cast %10 : vector<1x64x128xf32> to vector<64x128xf32>
    %12 = vector.shape_cast %9 : vector<64x128xf32> to vector<1x64x128xf32>
    tpu.vector_store %arg5[%c0_5, %c0_6, %c0_7], %12 {strides = array<i32>} : memref<1x64x128xf32, #tpu.memory_space<vmem>>, vector<1x64x128xf32>,
    %13 = arith.truncf %7 : vector<10x10x128xf32> to vector<10x10x128xbf16>
    %14 = vector.extract_strided_slice %13 {offsets = [0, 0, 0], sizes = [8, 8, 128], strides = [1, 1, 1]} : vector<10x10x128xbf16> to vector<8x8x128xbf16>
    %15 = vector.shape_cast %14 : vector<8x8x128xbf16> to vector<64x128xbf16>
    %c0_8 = arith.constant 0 : index
    %c0_9 = arith.constant 0 : index
    %16 = vector.load %arg7[%c0_8, %c0_9] : memref<64x1152xbf16, #tpu.memory_space<vmem>>, vector<64x128xbf16>
    tpu.vector_store %arg7[%c0_8, %c0_9], %15 {strides = array<i32>} : memref<64x1152xbf16, #tpu.memory_space<vmem>>, vector<64x128xbf16>,
    %17 = vector.extract_strided_slice %13 {offsets = [0, 1, 0], sizes = [8, 8, 128], strides = [1, 1, 1]} : vector<10x10x128xbf16> to vector<8x8x128xbf16>
    %18 = vector.shape_cast %17 : vector<8x8x128xbf16> to vector<64x128xbf16>
    %c0_10 = arith.constant 0 : index
    %c128 = arith.constant 128 : index
    %19 = vector.load %arg7[%c0_10, %c128] : memref<64x1152xbf16, #tpu.memory_space<vmem>>, vector<64x128xbf16>
    tpu.vector_store %arg7[%c0_10, %c128], %18 {strides = array<i32>} : memref<64x1152xbf16, #tpu.memory_space<vmem>>, vector<64x128xbf16>,
    %20 = vector.extract_strided_slice %13 {offsets = [0, 2, 0], sizes = [8, 8, 128], strides = [1, 1, 1]} : vector<10x10x128xbf16> to vector<8x8x128xbf16>
    %21 = vector.shape_cast %20 : vector<8x8x128xbf16> to vector<64x128xbf16>
    %c0_11 = arith.constant 0 : index
    %c256 = arith.constant 256 : index
    %22 = vector.load %arg7[%c0_11, %c256] : memref<64x1152xbf16, #tpu.memory_space<vmem>>, vector<64x128xbf16>
    tpu.vector_store %arg7[%c0_11, %c256], %21 {strides = array<i32>} : memref<64x1152xbf16, #tpu.memory_space<vmem>>, vector<64x128xbf16>,
    %23 = vector.extract_strided_slice %13 {offsets = [1, 0, 0], sizes = [8, 8, 128], strides = [1, 1, 1]} : vector<10x10x128xbf16> to vector<8x8x128xbf16>
    %24 = vector.shape_cast %23 : vector<8x8x128xbf16> to vector<64x128xbf16>
    %c0_12 = arith.constant 0 : index
    %c384 = arith.constant 384 : index
    %25 = vector.load %arg7[%c0_12, %c384] : memref<64x1152xbf16, #tpu.memory_space<vmem>>, vector<64x128xbf16>
    tpu.vector_store %arg7[%c0_12, %c384], %24 {strides = array<i32>} : memref<64x1152xbf16, #tpu.memory_space<vmem>>, vector<64x128xbf16>,
    %26 = vector.extract_strided_slice %13 {offsets = [1, 1, 0], sizes = [8, 8, 128], strides = [1, 1, 1]} : vector<10x10x128xbf16> to vector<8x8x128xbf16>
    %27 = vector.shape_cast %26 : vector<8x8x128xbf16> to vector<64x128xbf16>
    %c0_13 = arith.constant 0 : index
    %c512 = arith.constant 512 : index
    %28 = vector.load %arg7[%c0_13, %c512] : memref<64x1152xbf16, #tpu.memory_space<vmem>>, vector<64x128xbf16>
    tpu.vector_store %arg7[%c0_13, %c512], %27 {strides = array<i32>} : memref<64x1152xbf16, #tpu.memory_space<vmem>>, vector<64x128xbf16>,
    %29 = vector.extract_strided_slice %13 {offsets = [1, 2, 0], sizes = [8, 8, 128], strides = [1, 1, 1]} : vector<10x10x128xbf16> to vector<8x8x128xbf16>
    %30 = vector.shape_cast %29 : vector<8x8x128xbf16> to vector<64x128xbf16>
    %c0_14 = arith.constant 0 : index
    %c640 = arith.constant 640 : index
    %31 = vector.load %arg7[%c0_14, %c640] : memref<64x1152xbf16, #tpu.memory_space<vmem>>, vector<64x128xbf16>
    tpu.vector_store %arg7[%c0_14, %c640], %30 {strides = array<i32>} : memref<64x1152xbf16, #tpu.memory_space<vmem>>, vector<64x128xbf16>,
    %32 = vector.extract_strided_slice %13 {offsets = [2, 0, 0], sizes = [8, 8, 128], strides = [1, 1, 1]} : vector<10x10x128xbf16> to vector<8x8x128xbf16>
    %33 = vector.shape_cast %32 : vector<8x8x128xbf16> to vector<64x128xbf16>
    %c0_15 = arith.constant 0 : index
    %c768 = arith.constant 768 : index
    %34 = vector.load %arg7[%c0_15, %c768] : memref<64x1152xbf16, #tpu.memory_space<vmem>>, vector<64x128xbf16>
    tpu.vector_store %arg7[%c0_15, %c768], %33 {strides = array<i32>} : memref<64x1152xbf16, #tpu.memory_space<vmem>>, vector<64x128xbf16>,
    %35 = vector.extract_strided_slice %13 {offsets = [2, 1, 0], sizes = [8, 8, 128], strides = [1, 1, 1]} : vector<10x10x128xbf16> to vector<8x8x128xbf16>
    %36 = vector.shape_cast %35 : vector<8x8x128xbf16> to vector<64x128xbf16>
    %c0_16 = arith.constant 0 : index
    %c896 = arith.constant 896 : index
    %37 = vector.load %arg7[%c0_16, %c896] : memref<64x1152xbf16, #tpu.memory_space<vmem>>, vector<64x128xbf16>
    tpu.vector_store %arg7[%c0_16, %c896], %36 {strides = array<i32>} : memref<64x1152xbf16, #tpu.memory_space<vmem>>, vector<64x128xbf16>,
    %38 = vector.extract_strided_slice %13 {offsets = [2, 2, 0], sizes = [8, 8, 128], strides = [1, 1, 1]} : vector<10x10x128xbf16> to vector<8x8x128xbf16>
    %39 = vector.shape_cast %38 : vector<8x8x128xbf16> to vector<64x128xbf16>
    %c0_17 = arith.constant 0 : index
    %c1024 = arith.constant 1024 : index
    %40 = vector.load %arg7[%c0_17, %c1024] : memref<64x1152xbf16, #tpu.memory_space<vmem>>, vector<64x128xbf16>
    tpu.vector_store %arg7[%c0_17, %c1024], %39 {strides = array<i32>} : memref<64x1152xbf16, #tpu.memory_space<vmem>>, vector<64x128xbf16>,
    %c0_18 = arith.constant 0 : index
    %c0_19 = arith.constant 0 : index
    %41 = vector.load %arg7[%c0_18, %c0_19] : memref<64x1152xbf16, #tpu.memory_space<vmem>>, vector<64x1152xbf16>
    %c0_20 = arith.constant 0 : index
    %c0_21 = arith.constant 0 : index
    %42 = vector.load %arg3[%c0_20, %c0_21] : memref<1152x512xbf16, #tpu.memory_space<vmem>>, vector<1152x512xbf16>
    %cst_22 = arith.constant dense<0.000000e+00> : vector<64x512xf32>
    %43 = tpu.matmul %41, %42, %cst_22 {dimension_numbers = #tpu.dot_dimension_numbers<[1], [0], [0], [1], [0, 0, 1, 1], [], []>} : vector<64x1152xbf16>, vector<1152x512xbf16>, vector<64x512xf32> -> vector<64x512xf32>
    %cst_23 = arith.constant 0.000000e+00 : f32
    %44 = vector.broadcast %cst_23 : f32 to vector<64x512xf32>
    %45 = arith.maximumf %43, %44 : vector<64x512xf32>
    %46 = arith.truncf %45 : vector<64x512xf32> to vector<64x512xbf16>
    %c0_24 = arith.constant 0 : index
    %c0_25 = arith.constant 0 : index
    %47 = vector.load %arg4[%c0_24, %c0_25] : memref<512x128xbf16, #tpu.memory_space<vmem>>, vector<512x128xbf16>
    %cst_26 = arith.constant dense<0.000000e+00> : vector<64x128xf32>
    %48 = tpu.matmul %46, %47, %cst_26 {dimension_numbers = #tpu.dot_dimension_numbers<[1], [0], [0], [1], [0, 0, 1, 1], [], []>} : vector<64x512xbf16>, vector<512x128xbf16>, vector<64x128xf32> -> vector<64x128xf32>
    %c0_27 = arith.constant 0 : index
    %c0_28 = arith.constant 0 : index
    %c0_29 = arith.constant 0 : index
    %49 = vector.load %arg6[%c0_27, %c0_28, %c0_29] : memref<1x64x128xf32, #tpu.memory_space<vmem>>, vector<1x64x128xf32>
    %50 = vector.shape_cast %49 : vector<1x64x128xf32> to vector<64x128xf32>
    %51 = vector.shape_cast %48 : vector<64x128xf32> to vector<1x64x128xf32>
    tpu.vector_store %arg6[%c0_27, %c0_28, %c0_29], %51 {strides = array<i32>} : memref<1x64x128xf32, #tpu.memory_space<vmem>>, vector<1x64x128xf32>,
    return
  }
  func.func @transform_0(%arg0: i32) -> (i32, i32, i32) {
    %c0_i32 = arith.constant 0 : i32
    %c0_i32_0 = arith.constant 0 : i32
    %c0_i32_1 = arith.constant 0 : i32
    return %arg0, %c0_i32, %c0_i32_0 : i32, i32, i32
  }
  func.func @transform_1(%arg0: i32) -> (i32, i32) {
    %c0_i32 = arith.constant 0 : i32
    %c0_i32_0 = arith.constant 0 : i32
    %c0_i32_1 = arith.constant 0 : i32
    return %c0_i32, %c0_i32_0 : i32, i32
  }
  func.func @transform_2(%arg0: i32) -> (i32, i32) {
    %c0_i32 = arith.constant 0 : i32
    %c0_i32_0 = arith.constant 0 : i32
    %c0_i32_1 = arith.constant 0 : i32
    return %c0_i32, %c0_i32_0 : i32, i32
  }
  func.func @transform_3(%arg0: i32) -> (i32, i32) {
    %c0_i32 = arith.constant 0 : i32
    %c0_i32_0 = arith.constant 0 : i32
    %c0_i32_1 = arith.constant 0 : i32
    return %c0_i32, %c0_i32_0 : i32, i32
  }
  func.func @transform_4(%arg0: i32) -> (i32, i32, i32) {
    %c0_i32 = arith.constant 0 : i32
    %c0_i32_0 = arith.constant 0 : i32
    %c0_i32_1 = arith.constant 0 : i32
    return %arg0, %c0_i32, %c0_i32_0 : i32, i32, i32
  }
  func.func @transform_5(%arg0: i32) -> (i32, i32, i32) {
    %c0_i32 = arith.constant 0 : i32
    %c0_i32_0 = arith.constant 0 : i32
    %c0_i32_1 = arith.constant 0 : i32
    return %arg0, %c0_i32, %c0_i32_0 : i32, i32, i32
  }
}

</mosaic_0001>

<bundles_post_ra>
// kernel: _compute_heads.1
= control target key start
LH: loop header
LB: loop body
LE: loop exit
PB: predicated region body
PF: predicated region fallthrough
CT: control target
= control target key end

     0   :  { %s6441_s18 = smov 0   ;;  %s9708_s0 = inlined_call_operand.vmem [shape: f32[2,100,128], index: 0, kind: input, shape index: {}]   ;;  %s9709_s1 = inlined_call_operand.vmem [shape: bf16[128,128], index: 1, kind: input, shape index: {}]   ;;  %s9710_s2 = inlined_call_operand.vmem [shape: bf16[1152,512], index: 2, kind: input, shape index: {}]   ;;  %s9711_s3 = inlined_call_operand.vmem [shape: bf16[512,128], index: 3, kind: input, shape index: {}]   ;;  %s9712_s4 = inlined_call_operand.vmem [shape: f32[2,64,128], index: 4, kind: output, shape index: {0}]   ;;  %s9713_s5 = inlined_call_operand.vmem [shape: f32[2,64,128], index: 5, kind: output, shape index: {1}]  }
   0x1 LB: > { %s4526_s19 = sadd.s32 4294967295, %s6409_s18   ;;  %p4530_p0 = scmp.ge.s32.totalorder %s6409_s18, 1  ;;  %s6409_s18 = sphi %s6441_s18, %s16_s18  }
   0x2   : > { %p190_p1 = scmp.lt.s32.totalorder %s6409_s18, 3 }
   0x4   : > { %p191_p2 = pnand %p4530_p0, %p190_p1 }
   0x6   : > { %194 = sbr.rel (%p191_p2) target bundleno = 1230 (0x4ce), region = 36 }
   0xb   : > { %v6021_v0 = vld [vmem:[%s9709_s1 + $0x38] sm:$0xff]  ;;  %v6020_v1 = vld [vmem:[%s9709_s1 + $0x30] sm:$0xff]  ;;  %v6019_v2 = vld [vmem:[%s9709_s1 + $0x28] sm:$0xff]  ;;  %p223_p3 = scmp.lt.s32.totalorder %s4526_s19, 1  ;;  %vm428_vm0 = vcmask 1040384   ;;  %vm429_vm1 = vcmask 1042434  }
   0xc   : > { %322 = vmatpush.bf16.msra.mxu0 %v6021_v0  ;;  %v6018_v3 = vld [vmem:[%s9709_s1 + $0x20] sm:$0xff]  ;;  %v6017_v4 = vld [vmem:[%s9709_s1 + $0x18] sm:$0xff]  ;;  %v6016_v5 = vld [vmem:[%s9709_s1 + $0x10] sm:$0xff]  ;;  %vm431_vm3 = vcmask 1044484   ;;  %vm433_vm5 = vcmask 1046534   ;;  %vm871_vm7 = vcmask 1042432  }
   0xd   : > { %s9848_s19 = smov (!%p223_p3, %s4526_s19), 1  ;;  %v6015_v6 = vld [vmem:[%s9709_s1 + $0x8] sm:$0xff]  ;;  %v6014_v7 = vld [vmem:[%s9709_s1] sm:$0xff]  ;;  %vm430_vm2 = vmor %vm428_vm0, %vm429_vm1  ;;  %vm872_vm8 = vcmask 1046532   ;;  %vm724_vm10 = vsmask.f32 3328 }
   0xe   : > { %s6394_s7 = smul.u32 104, %s9848_s19  ;;  %vm432_vm4 = vmor %vm430_vm2, %vm431_vm3  ;;  %s6012_s15 = sshll.u32 %s9848_s19, 6  ;;  %v6280_v34 = vld [vmem:[%s9710_s2 + $0x6ec] sm:$0xf0]  ;;  %vm725_vm11 = vsmask.f32 7440 }
   0xf   : > { %vm6486_vm6 = vmor %vm432_vm4, %vm433_vm5  ;;  %s6534_s20 = scalar_lea.vmem %s9712_s4, %s6012_s15 }
  0x10   : > { %323 = vmatpush.bf16.msra.mxu0 %v6020_v1  ;;  %s227_s12 = scalar_lea.vmem %s9708_s0, %s6394_s7  ;;  %vm6884_vm9 = vmor %vm871_vm7, %vm872_vm8  ;;  %s9695_s7 = scalar_lea.vmem %s9713_s5, %s6012_s15 }
  0x11   : > { %v238_v8 = vld [vmem:[%s227_s12] sm:$0xff]  ;;  %v239_v9 = vld [vmem:[%s227_s12 + $0x8] sm:$0xff]  ;;  %v240_v11 = vld [vmem:[%s227_s12 + $0x10] sm:$0xff] }
  0x12   : > { %v251_v10 = vpack.c.bf16 %v239_v9, %v238_v8  ;;  %v241_v12 = vld [vmem:[%s227_s12 + $0x18] sm:$0xff]  ;;  %v242_v14 = vld [vmem:[%s227_s12 + $0x20] sm:$0xff]  ;;  %v243_v15 = vld [vmem:[%s227_s12 + $0x28] sm:$0xff] }
  0x13   : > { %v252_v13 = vpack.c.bf16 %v241_v12, %v240_v11  ;;  %v253_v16 = vpack.c.bf16 %v243_v15, %v242_v14  ;;  %v244_v17 = vld [vmem:[%s227_s12 + $0x30] sm:$0xff]  ;;  %v245_v18 = vld [vmem:[%s227_s12 + $0x38] sm:$0xff]  ;;  %v246_v20 = vld [vmem:[%s227_s12 + $0x40] sm:$0xff] }
  0x14   : > { %324 = vmatpush.bf16.msra.mxu0 %v6019_v2  ;;  %v254_v19 = vpack.c.bf16 %v245_v18, %v244_v17  ;;  %v247_v21 = vld [vmem:[%s227_s12 + $0x48] sm:$0xff]  ;;  %v248_v23 = vld [vmem:[%s227_s12 + $0x50] sm:$0xff]  ;;  %v249_v24 = vld [vmem:[%s227_s12 + $0x58] sm:$0xff] }
  0x15   : > { %v255_v22 = vpack.c.bf16 %v247_v21, %v246_v20  ;;  %v256_v25 = vpack.c.bf16 %v249_v24, %v248_v23  ;;  %v250_v27 = vld [vmem:[%s227_s12 + $0x60] sm:$0xf]  ;;  %vm7236_vm12 = vmor %vm724_vm10, %vm725_vm11 }
  0x16   : > { %v257_v28 = vpack.c.bf16 %v250_v27, %v250_v27 }
  0x18   : > { %325 = vmatpush.bf16.msra.mxu0 %v6018_v3 }
  0x1c   : > { %326 = vmatpush.bf16.msra.mxu0 %v6017_v4 }
  0x20   : > { %327 = vmatpush.bf16.msra.mxu0 %v6016_v5 }
  0x24   : > { %328 = vmatpush.bf16.msra.mxu0 %v6015_v6 }
  0x28   : > { %329 = vmatpush.bf16.msra.mxu0 %v6014_v7 }
  0x2b   : > { %330 = vmatmul.bf16.vlgmr.msra.gmra.mxu0 %v251_v10 }
  0x3b   : > { %335 = vmatmul.bf16.gmra.mxu0 %v252_v13 }
  0x4b   : > { %340 = vmatmul.bf16.gmra.mxu0 %v253_v16 }
  0x5b   : > { %345 = vmatmul.bf16.gmra.mxu0 %v254_v19 }
  0x6b   : > { %350 = vmatmul.bf16.gmra.mxu0 %v255_v22 }
  0x7b   : > { %355 = vmatmul.bf16.gmra.mxu0 %v256_v25 }
  0x8b   : > { %360 = vmatmul.bf16.gmra.mxu0 %v257_v28 }
  0xa8   : > { %v6479_v26 = vpop.f32.mrf.mxu0 }
  0xb0   : > { %v333_v29 = vpop.f32.mrf.mxu0 }
  0xb1   : > { %v6481_v30 = vmax.f32 %v333_v29, 0.0 }
  0xb3   : > { %v394_v31 = vrot.slane %v6481_v30, 2  ;;  %v395_v32 = vrot.slane %v6481_v30, 4  ;;  %v396_v33 = vrot.slane %v6481_v30, 6 }
  0xb5   : > { %v4568_v35 = vrot.slane %v394_v31, 9  ;;  %v437_v36 = vrot.slane %v395_v32, 7  ;;  %v440_v37 = vrot.slane %v396_v33, 7 }
  0xb7   : > { %v438_v38 = vsel %vm6486_vm6, %v4568_v35, %v437_v36  ;;  %v439_v39 = vrot.slane %v437_v36, 2  ;;  %v442_v43 = vrot.slane %v440_v37, 2 }
  0xb8   : > { %539 = vst [vmem:[#allocation1] ss:$4 sm:$0xff] %v438_v38  ;;  %v336_v40 = vpop.f32.mrf.mxu0 }
  0xb9   : > { %v441_v41 = vsel %vm6486_vm6, %v439_v39, %v440_v37  ;;  %v6500_v42 = vmax.f32 %v336_v40, 0.0 }
  0xba   : > { %541 = vst [vmem:[#allocation1 + $0x1] ss:$4 sm:$0xff] %v441_v41 }
  0xbb   : > { %v397_v44 = vrot.slane %v6500_v42, 2  ;;  %v398_v45 = vrot.slane %v6500_v42, 4  ;;  %v399_v46 = vrot.slane %v6500_v42, 6  ;;  %v443_v47 = vrot.slane %v6500_v42, 7 }
  0xbd   : > { %v444_v48 = vsel %vm6486_vm6, %v442_v43, %v443_v47  ;;  %v445_v49 = vrot.slane %v443_v47, 2  ;;  %v446_v50 = vrot.slane %v397_v44, 7  ;;  %v4569_v51 = vrot.slane %v398_v45, 9 }
  0xbe   : > { %v450_v52 = vrot.slane %v399_v46, 7  ;;  %543 = vst [vmem:[#allocation1 + $0x2] ss:$4 sm:$0xff] %v444_v48 }
  0xbf   : > { %v447_v53 = vsel %vm6486_vm6, %v445_v49, %v446_v50 }
  0xc0   : > { %v451_v54 = vsel %vm6486_vm6, %v4569_v51, %v450_v52  ;;  %545 = vst [vmem:[#allocation1 + $0x3] ss:$4 sm:$0xff] %v447_v53  ;;  %v338_v55 = vpop.f32.mrf.mxu0  ;;  %v452_v57 = vrot.slane %v450_v52, 2 }
  0xc1   : > { %547 = vst [vmem:[#allocation1 + $0x20] ss:$4 sm:$0xff] %v451_v54  ;;  %v6518_v56 = vmax.f32 %v338_v55, 0.0 }
  0xc3   : > { %v400_v58 = vrot.slane %v6518_v56, 2  ;;  %v401_v59 = vrot.slane %v6518_v56, 4  ;;  %v453_v60 = vrot.slane %v6518_v56, 7  ;;  %v402_v0 = vrot.slane %v6518_v56, 6 }
  0xc5   : > { %v454_v61 = vsel %vm6486_vm6, %v452_v57, %v453_v60  ;;  %v455_v62 = vrot.slane %v453_v60, 2  ;;  %v456_v63 = vrot.slane %v400_v58, 7  ;;  %v459_v4 = vrot.slane %v401_v59, 7 }
  0xc6   : > { %549 = vst [vmem:[#allocation1 + $0x21] ss:$4 sm:$0xff] %v454_v61  ;;  %v4570_v8 = vrot.slane %v402_v0, 9 }
  0xc7   : > { %v554_v1 = vld.sshfl [vmem:[#allocation1] sm:$0xff pattern:$0x73625140]  ;;  %v457_v2 = vsel %vm6486_vm6, %v455_v62, %v456_v63  ;;  %v458_v3 = vrot.slane %v456_v63, 2 }
  0xc8   : > { %551 = vst [vmem:[#allocation1 + $0x22] ss:$4 sm:$0xff] %v457_v2  ;;  %v341_v5 = vpop.f32.mrf.mxu0 }
  0xc9   : > { %v460_v6 = vsel %vm6486_vm6, %v458_v3, %v459_v4  ;;  %v6542_v7 = vmax.f32 %v341_v5, 0.0  ;;  %594 = vst [vmem:[%s6534_s20] sm:$0xff] %v554_v1 }
  0xca   : > { %553 = vst [vmem:[#allocation1 + $0x23] ss:$4 sm:$0xff] %v460_v6 }
  0xcb   : > { %v403_v9 = vrot.slane %v6542_v7, 2  ;;  %v404_v10 = vrot.slane %v6542_v7, 4  ;;  %v405_v11 = vrot.slane %v6542_v7, 6  ;;  %v463_v12 = vrot.slane %v6542_v7, 7 }
  0xcd   : > { %v464_v13 = vsel %vm6486_vm6, %v4570_v8, %v463_v12  ;;  %v465_v14 = vrot.slane %v463_v12, 2  ;;  %v466_v15 = vrot.slane %v403_v9, 7  ;;  %v469_v16 = vrot.slane %v404_v10, 7 }
  0xce   : > { %556 = vst [vmem:[#allocation1] ss:$4 sm:$0xff] %v464_v13  ;;  %v472_v20 = vrot.slane %v405_v11, 7 }
  0xcf   : > { %v467_v17 = vsel %vm6486_vm6, %v465_v14, %v466_v15  ;;  %v468_v18 = vrot.slane %v466_v15, 2  ;;  %v471_v19 = vrot.slane %v469_v16, 2 }
  0xd0   : > { %557 = vst [vmem:[#allocation1 + $0x1] ss:$4 sm:$0xff] %v467_v17  ;;  %v343_v21 = vpop.f32.mrf.mxu0 }
  0xd1   : > { %v555_v22 = vld.sshfl [vmem:[#allocation1 + $0x20] sm:$0xff pattern:$0x73625140]  ;;  %v470_v23 = vsel %vm6486_vm6, %v468_v18, %v469_v16  ;;  %v473_v24 = vsel %vm6486_vm6, %v471_v19, %v472_v20  ;;  %v6565_v25 = vmax.f32 %v343_v21, 0.0 }
  0xd2   : > { %558 = vst [vmem:[#allocation1 + $0x2] ss:$4 sm:$0xff] %v470_v23 }
  0xd3   : > { %559 = vst [vmem:[#allocation1 + $0x3] ss:$4 sm:$0xff] %v473_v24  ;;  %v406_v27 = vrot.slane %v6565_v25, 2  ;;  %v407_v28 = vrot.slane %v6565_v25, 4  ;;  %v408_v29 = vrot.slane %v6565_v25, 6  ;;  %v4571_v35 = vrot.slane %v6565_v25, 9 }
  0xd4   : > { %595 = vst [vmem:[%s6534_s20 + $0x8] sm:$0xff] %v555_v22 }
  0xd5   : > { %v476_v36 = vrot.slane %v406_v27, 7  ;;  %v479_v37 = vrot.slane %v407_v28, 7  ;;  %v482_v38 = vrot.slane %v408_v29, 7 }
  0xd7   : > { %v477_v39 = vsel %vm6486_vm6, %v4571_v35, %v476_v36  ;;  %v478_v40 = vrot.slane %v476_v36, 2  ;;  %v481_v41 = vrot.slane %v479_v37, 2  ;;  %v484_v51 = vrot.slane %v482_v38, 2 }
  0xd8   : > { %560 = vst [vmem:[#allocation1 + $0x20] ss:$4 sm:$0xff] %v477_v39  ;;  %v346_v43 = vpop.f32.mrf.mxu0 }
  0xd9   : > { %v480_v47 = vsel %vm6486_vm6, %v478_v40, %v479_v37  ;;  %v483_v48 = vsel %vm6486_vm6, %v481_v41, %v482_v38  ;;  %v6584_v49 = vmax.f32 %v346_v43, 0.0 }
  0xda   : > { %v564_v50 = vld.sshfl [vmem:[#allocation1] sm:$0xff pattern:$0x73625140]  ;;  %561 = vst [vmem:[#allocation1 + $0x21] ss:$4 sm:$0xff] %v480_v47 }
  0xdb   : > { %562 = vst [vmem:[#allocation1 + $0x22] ss:$4 sm:$0xff] %v483_v48  ;;  %v409_v52 = vrot.slane %v6584_v49, 2  ;;  %v410_v53 = vrot.slane %v6584_v49, 4  ;;  %v411_v54 = vrot.slane %v6584_v49, 6  ;;  %v485_v55 = vrot.slane %v6584_v49, 7 }
  0xdc   : > { %596 = vst [vmem:[%s6534_s20 + $0x10] sm:$0xff] %v564_v50 }
  0xdd   : > { %v486_v57 = vsel %vm6486_vm6, %v484_v51, %v485_v55  ;;  %v4572_v60 = vrot.slane %v409_v52, 9  ;;  %v489_v61 = vrot.slane %v410_v53, 7  ;;  %v492_v62 = vrot.slane %v411_v54, 7 }
  0xde   : > { %563 = vst [vmem:[#allocation1 + $0x23] ss:$4 sm:$0xff] %v486_v57 }
  0xdf   : > { %v490_v63 = vsel %vm6486_vm6, %v4572_v60, %v489_v61  ;;  %v491_v1 = vrot.slane %v489_v61, 2  ;;  %v494_v5 = vrot.slane %v492_v62, 2 }
  0xe0   : > { %566 = vst [vmem:[#allocation1] ss:$4 sm:$0xff] %v490_v63  ;;  %v348_v2 = vpop.f32.mrf.mxu0 }
  0xe1   : > { %v493_v3 = vsel %vm6486_vm6, %v491_v1, %v492_v62  ;;  %v6603_v4 = vmax.f32 %v348_v2, 0.0 }
  0xe2   : > { %567 = vst [vmem:[#allocation1 + $0x1] ss:$4 sm:$0xff] %v493_v3 }
  0xe3   : > { %v412_v6 = vrot.slane %v6603_v4, 2  ;;  %v413_v8 = vrot.slane %v6603_v4, 4  ;;  %v414_v12 = vrot.slane %v6603_v4, 6  ;;  %v495_v13 = vrot.slane %v6603_v4, 7 }
  0xe5   : > { %v565_v14 = vld.sshfl [vmem:[#allocation1 + $0x20] sm:$0xff pattern:$0x73625140]  ;;  %v496_v15 = vsel %vm6486_vm6, %v494_v5, %v495_v13  ;;  %v497_v16 = vrot.slane %v495_v13, 2  ;;  %v498_v17 = vrot.slane %v412_v6, 7  ;;  %v4573_v18 = vrot.slane %v413_v8, 9 }
  0xe6   : > { %v502_v19 = vrot.slane %v414_v12, 7  ;;  %568 = vst [vmem:[#allocation1 + $0x2] ss:$4 sm:$0xff] %v496_v15 }
  0xe7   : > { %v499_v20 = vsel %vm6486_vm6, %v497_v16, %v498_v17  ;;  %597 = vst [vmem:[%s6534_s20 + $0x18] sm:$0xff] %v565_v14  ;;  %v4844_v14 = vld [vmem:[%s9710_s2 + $0xe0] sm:$0xf]  ;;  %v6088_v16 = vld [vmem:[%s9710_s2 + $0xec] sm:$0xf0] }
  0xe8   : > { %v503_v21 = vsel %vm6486_vm6, %v4573_v18, %v502_v19  ;;  %569 = vst [vmem:[#allocation1 + $0x3] ss:$4 sm:$0xff] %v499_v20  ;;  %v351_v22 = vpop.f32.mrf.mxu0  ;;  %v504_v24 = vrot.slane %v502_v19, 2  ;;  %v4845_v20 = vor.u32 %v6088_v16, %v4844_v14 }
  0xe9   : > { %570 = vst [vmem:[#allocation1 + $0x20] ss:$4 sm:$0xff] %v503_v21  ;;  %v6622_v23 = vmax.f32 %v351_v22, 0.0 }
  0xea   : > { %2966 = vmatpush.bf16.msra.mxu1 %v4845_v20  ;;  %6378 = vmatpush.bf16.msra.mxu2 %v4845_v20 }
  0xeb   : > { %v415_v35 = vrot.slane %v6622_v23, 2  ;;  %v416_v36 = vrot.slane %v6622_v23, 4  ;;  %v505_v37 = vrot.slane %v6622_v23, 7  ;;  %v417_v41 = vrot.slane %v6622_v23, 6 }
  0xed   : > { %v506_v38 = vsel %vm6486_vm6, %v504_v24, %v505_v37  ;;  %v507_v39 = vrot.slane %v505_v37, 2  ;;  %v508_v40 = vrot.slane %v415_v35, 7  ;;  %v511_v50 = vrot.slane %v416_v36, 7 }
  0xee   : > { %571 = vst [vmem:[#allocation1 + $0x21] ss:$4 sm:$0xff] %v506_v38  ;;  %v4574_v60 = vrot.slane %v417_v41, 9 }
  0xef   : > { %v574_v43 = vld.sshfl [vmem:[#allocation1] sm:$0xff pattern:$0x73625140]  ;;  %v509_v47 = vsel %vm6486_vm6, %v507_v39, %v508_v40  ;;  %v510_v48 = vrot.slane %v508_v40, 2  ;;  %v6084_v40 = vld [vmem:[%s9710_s2 + $0xcc] sm:$0xf0] }
  0xf0   : > { %572 = vst [vmem:[#allocation1 + $0x22] ss:$4 sm:$0xff] %v509_v47  ;;  %v353_v51 = vpop.f32.mrf.mxu0  ;;  %v4828_v39 = vld [vmem:[%s9710_s2 + $0xc0] sm:$0xf] }
  0xf1   : > { %v512_v55 = vsel %vm6486_vm6, %v510_v48, %v511_v50  ;;  %v6638_v57 = vmax.f32 %v353_v51, 0.0  ;;  %598 = vst [vmem:[%s6534_s20 + $0x20] sm:$0xff] %v574_v43  ;;  %v4829_v50 = vor.u32 %v6084_v40, %v4828_v39 }
  0xf2   : > { %573 = vst [vmem:[#allocation1 + $0x23] ss:$4 sm:$0xff] %v512_v55 }
  0xf3   : > { %v418_v61 = vrot.slane %v6638_v57, 2  ;;  %v419_v62 = vrot.slane %v6638_v57, 4  ;;  %v420_v63 = vrot.slane %v6638_v57, 6  ;;  %v515_v1 = vrot.slane %v6638_v57, 7  ;;  %2967 = vmatpush.bf16.msra.mxu1 %v4829_v50  ;;  %6379 = vmatpush.bf16.msra.mxu2 %v4829_v50 }
  0xf5   : > { %v516_v2 = vsel %vm6486_vm6, %v4574_v60, %v515_v1  ;;  %v517_v3 = vrot.slane %v515_v1, 2  ;;  %v518_v5 = vrot.slane %v418_v61, 7  ;;  %v521_v13 = vrot.slane %v419_v62, 7 }
  0xf6   : > { %v524_v15 = vrot.slane %v420_v63, 7  ;;  %576 = vst [vmem:[#allocation1] ss:$4 sm:$0xff] %v516_v2  ;;  %v4812_v2 = vld [vmem:[%s9710_s2 + $0xa0] sm:$0xf] }
  0xf7   : > { %v519_v17 = vsel %vm6486_vm6, %v517_v3, %v518_v5  ;;  %v520_v18 = vrot.slane %v518_v5, 2  ;;  %v523_v19 = vrot.slane %v521_v13, 2  ;;  %v365_v3 = vmax.f32 %v6479_v26, 0.0  ;;  %v6080_v5 = vld [vmem:[%s9710_s2 + $0xac] sm:$0xf0] }
  0xf8   : > { %577 = vst [vmem:[#allocation1 + $0x1] ss:$4 sm:$0xff] %v519_v17  ;;  %v356_v21 = vpop.f32.mrf.mxu0  ;;  %v4813_v17 = vor.u32 %v6080_v5, %v4812_v2  ;;  %v4796_v26 = vld [vmem:[%s9710_s2 + $0x80] sm:$0xf] }
  0xf9   : > { %v575_v22 = vld.sshfl [vmem:[#allocation1 + $0x20] sm:$0xff pattern:$0x73625140]  ;;  %v522_v24 = vsel %vm6486_vm6, %v520_v18, %v521_v13  ;;  %v525_v37 = vsel %vm6486_vm6, %v523_v19, %v524_v15  ;;  %v6667_v38 = vmax.f32 %v356_v21, 0.0  ;;  %v6076_v21 = vld [vmem:[%s9710_s2 + $0x8c] sm:$0xf0] }
  0xfa   : > { %578 = vst [vmem:[#allocation1 + $0x2] ss:$4 sm:$0xff] %v522_v24  ;;  %2968 = vmatpush.bf16.msra.mxu1 %v4813_v17  ;;  %6380 = vmatpush.bf16.msra.mxu2 %v4813_v17  ;;  %v392_v39 = vrot.slane %v365_v3, 4  ;;  %v393_v40 = vrot.slane %v365_v3, 6  ;;  %v6148_v17 = vld [vmem:[%s9710_s2 + $0x2cc] sm:$0xf0] }
  0xfb   : > { %579 = vst [vmem:[#allocation1 + $0x3] ss:$4 sm:$0xff] %v525_v37  ;;  %v421_v43 = vrot.slane %v6667_v38, 2  ;;  %v422_v47 = vrot.slane %v6667_v38, 4  ;;  %v423_v48 = vrot.slane %v6667_v38, 6  ;;  %v4575_v51 = vrot.slane %v6667_v38, 9 }
  0xfc   : > { %599 = vst [vmem:[%s6534_s20 + $0x28] sm:$0xff] %v575_v22  ;;  %v391_v22 = vrot.slane %v365_v3, 2  ;;  %v4797_v37 = vor.u32 %v6076_v21, %v4796_v26  ;;  %v6068_v26 = vld [vmem:[%s9710_s2 + $0x4c] sm:$0xf0]  ;;  %v5596_v21 = vld [vmem:[%s9710_s2 + $0x6c0] sm:$0xf] }
  0xfd   : > { %v528_v55 = vrot.slane %v421_v43, 7  ;;  %v531_v60 = vrot.slane %v422_v47, 7  ;;  %v534_v1 = vrot.slane %v423_v48, 7 }
  0xfe   : > { %2969 = vmatpush.bf16.msra.mxu1 %v4797_v37  ;;  %6381 = vmatpush.bf16.msra.mxu2 %v4797_v37  ;;  %v6276_v37 = vld [vmem:[%s9710_s2 + $0x6cc] sm:$0xf0] }
  0xff   : > { %v529_v13 = vsel %vm6486_vm6, %v4575_v51, %v528_v55  ;;  %v530_v14 = vrot.slane %v528_v55, 2  ;;  %v533_v15 = vrot.slane %v531_v60, 2  ;;  %v536_v19 = vrot.slane %v534_v1, 2  ;;  %v5100_v55 = vld [vmem:[%s9710_s2 + $0x2e0] sm:$0xf] }
 0x100   : > { %580 = vst [vmem:[#allocation1 + $0x20] ss:$4 sm:$0xff] %v529_v13  ;;  %v358_v16 = vpop.f32.mrf.mxu0 }
 0x101   : > { %v532_v18 = vsel %vm6486_vm6, %v530_v14, %v531_v60  ;;  %v6697_v20 = vmax.f32 %v358_v16, 0.0  ;;  %v535_v51 = vsel %vm6486_vm6, %v533_v15, %v534_v1  ;;  %v6152_v60 = vld [vmem:[%s9710_s2 + $0x2ec] sm:$0xf0]  ;;  %v5612_v14 = vld [vmem:[%s9710_s2 + $0x6e0] sm:$0xf] }
 0x102   : > { %v584_v24 = vld.sshfl [vmem:[#allocation1] sm:$0xff pattern:$0x73625140]  ;;  %581 = vst [vmem:[#allocation1 + $0x21] ss:$4 sm:$0xff] %v532_v18  ;;  %v5101_v5 = vor.u32 %v6152_v60, %v5100_v55  ;;  %v6728_v15 = vor.u32 %v6280_v34, %v5612_v14 }
 0x103   : > { %602 = vst [vmem:[#allocation1] ss:$4 sm:$0xff] %v365_v3  ;;  %v537_v50 = vrot.slane %v6697_v20, 7  ;;  %v4780_v3 = vld [vmem:[%s9710_s2 + $0x60] sm:$0xf] }
 0x104   : > { %604 = vst [vmem:[#allocation1 + $0x1] ss:$4 sm:$0xff] %v391_v22  ;;  %v6072_v1 = vld [vmem:[%s9710_s2 + $0x6c] sm:$0xf0]  ;;  %3024 = vmatpush.bf16.msra.mxu3 %v5101_v5  ;;  %v5084_v16 = vld [vmem:[%s9710_s2 + $0x2c0] sm:$0xf]  ;;  %3140 = vmatpush.bf16.msrb.mxu0 %v6728_v15 }
 0x105   : > { %606 = vst [vmem:[#allocation1 + $0x2] ss:$4 sm:$0xff] %v392_v39  ;;  %v538_v2 = vsel %vm6486_vm6, %v536_v19, %v537_v50  ;;  %v4781_v13 = vor.u32 %v6072_v1, %v4780_v3  ;;  %v5085_v18 = vor.u32 %v6148_v17, %v5084_v16  ;;  %v4764_v19 = vld [vmem:[%s9710_s2 + $0x40] sm:$0xf]  ;;  %v6750_v39 = vor.u32 %v6276_v37, %v5596_v21  ;;  %v6144_v50 = vld [vmem:[%s9710_s2 + $0x2ac] sm:$0xf0] }
 0x106   : > { %608 = vst [vmem:[#allocation1 + $0x3] ss:$4 sm:$0xff] %v393_v40  ;;  %v4765_v22 = vor.u32 %v6068_v26, %v4764_v19  ;;  %v5068_v40 = vld [vmem:[%s9710_s2 + $0x2a0] sm:$0xf]  ;;  %v6060_v16 = vld [vmem:[%s9710_s2 + $0xc] sm:$0xf0] }
 0x107   : > { %582 = vst [vmem:[#allocation1 + $0x22] ss:$4 sm:$0xff] %v535_v51  ;;  %2970 = vmatpush.bf16.msra.mxu1 %v4781_v13  ;;  %6382 = vmatpush.bf16.msra.mxu2 %v4781_v13  ;;  %v5069_v55 = vor.u32 %v6144_v50, %v5068_v40  ;;  %v4748_v60 = vld [vmem:[%s9710_s2 + $0x20] sm:$0xf]  ;;  %v6268_v19 = vld [vmem:[%s9710_s2 + $0x68c] sm:$0xf0] }
 0x108   : > { %583 = vst [vmem:[#allocation1 + $0x23] ss:$4 sm:$0xff] %v538_v2  ;;  %3025 = vmatpush.bf16.msra.mxu3 %v5085_v18  ;;  %3141 = vmatpush.bf16.msrb.mxu0 %v6750_v39  ;;  %v5580_v2 = vld [vmem:[%s9710_s2 + $0x6a0] sm:$0xf]  ;;  %v6136_v21 = vld [vmem:[%s9710_s2 + $0x26c] sm:$0xf0] }
 0x109   : > { %600 = vst [vmem:[%s6534_s20 + $0x30] sm:$0xff] %v584_v24  ;;  %v6064_v24 = vld [vmem:[%s9710_s2 + $0x2c] sm:$0xf0]  ;;  %v5052_v13 = vld [vmem:[%s9710_s2 + $0x280] sm:$0xf] }
 0x10a   : > { %v4749_v3 = vor.u32 %v6064_v24, %v4748_v60  ;;  %v5564_v17 = vld [vmem:[%s9710_s2 + $0x680] sm:$0xf]  ;;  %v6184_v40 = vld [vmem:[%s9710_s2 + $0x3ec] sm:$0xf0] }
 0x10b   : > { %2971 = vmatpush.bf16.msra.mxu1 %v4765_v22  ;;  %6383 = vmatpush.bf16.msra.mxu2 %v4765_v22  ;;  %v5036_v26 = vld [vmem:[%s9710_s2 + $0x260] sm:$0xf] }
 0x10c   : > { %3026 = vmatpush.bf16.msra.mxu3 %v5069_v55  ;;  %v5037_v22 = vor.u32 %v6136_v21, %v5036_v26  ;;  %v5228_v37 = vld [vmem:[%s9710_s2 + $0x3e0] sm:$0xf]  ;;  %v6264_v55 = vld [vmem:[%s9710_s2 + $0x66c] sm:$0xf0] }
 0x10d   : > { %v611_v51 = vld.sshfl [vmem:[#allocation1] sm:$0xff pattern:$0x73625140] }
 0x10e   : > { %613 = vst [vmem:[#allocation1] ss:$4 sm:$0xff] %v394_v31  ;;  %v6772_v1 = vpack.c.bf16 %v611_v51, %v611_v51  ;;  %v6272_v31 = vld [vmem:[%s9710_s2 + $0x6ac] sm:$0xf0]  ;;  %v5548_v50 = vld [vmem:[%s9710_s2 + $0x660] sm:$0xf]  ;;  %v5229_v51 = vor.u32 %v6184_v40, %v5228_v37 }
 0x10f   : > { %614 = vst [vmem:[#allocation1 + $0x1] ss:$4 sm:$0xff] %v395_v32  ;;  %v585_v5 = vld.sshfl [vmem:[#allocation1 + $0x20] sm:$0xff pattern:$0x73625140]  ;;  %v6783_v14 = vor.u32 %v6272_v31, %v5580_v2  ;;  %2972 = vmatpush.bf16.msra.mxu1 %v4749_v3  ;;  %6384 = vmatpush.bf16.msra.mxu2 %v4749_v3  ;;  %v6825_v60 = vor.u32 %v6264_v55, %v5548_v50 }
 0x110   : > { %615 = vst [vmem:[#allocation1 + $0x2] ss:$4 sm:$0xff] %v396_v33  ;;  %v6140_v32 = vld [vmem:[%s9710_s2 + $0x28c] sm:$0xf0]  ;;  %v4732_v33 = vld [vmem:[%s9710_s2] sm:$0xf] }
 0x111   : > { %616 = vst [vmem:[#allocation1 + $0x3] ss:$4 sm:$0xff] %v6500_v42  ;;  %v5053_v34 = vor.u32 %v6140_v32, %v5052_v13  ;;  %3142 = vmatpush.bf16.msrb.mxu0 %v6783_v14  ;;  %v4733_v18 = vor.u32 %v6060_v16, %v4732_v33  ;;  %v5020_v2 = vld [vmem:[%s9710_s2 + $0x240] sm:$0xf]  ;;  %v4576_v55 = vrot.slane %v6772_v1, 9 }
 0x112   : > { %610 = vst [vmem:[#allocation1 + $0x20] ss:$4 sm:$0xff] %v6481_v30  ;;  %v6803_v30 = vor.u32 %v6268_v19, %v5564_v17  ;;  %v5532_v33 = vld [vmem:[%s9710_s2 + $0x640] sm:$0xf] }
 0x113   : > { %716 = vst [vmem:[#allocation2] sm:$0xf] %v6772_v1  ;;  %3027 = vmatpush.bf16.msra.mxu3 %v5053_v34  ;;  %2973 = vmatpush.bf16.msra.mxu1 %v4733_v18  ;;  %v6260_v34 = vld [vmem:[%s9710_s2 + $0x64c] sm:$0xf0]  ;;  %v5196_v42 = vld [vmem:[%s9710_s2 + $0x3a0] sm:$0xf] }
 0x114   : > { %6385 = vmatpush.bf16.msra.mxu2 %v4733_v18  ;;  %601 = vst [vmem:[%s6534_s20 + $0x38] sm:$0xff] %v585_v5  ;;  %v6132_v5 = vld [vmem:[%s9710_s2 + $0x24c] sm:$0xf0]  ;;  %v6859_v17 = vor.u32 %v6260_v34, %v5532_v33  ;;  %v5516_v21 = vld [vmem:[%s9710_s2 + $0x620] sm:$0xf] }
 0x115   : > { %3143 = vmatpush.bf16.msrb.mxu0 %v6803_v30  ;;  %v5021_v13 = vor.u32 %v6132_v5, %v5020_v2  ;;  %v6128_v18 = vld [vmem:[%s9710_s2 + $0x22c] sm:$0xf0]  ;;  %v4988_v50 = vld [vmem:[%s9710_s2 + $0x200] sm:$0xf] }
 0x116   : > { %v6172_v5 = vld [vmem:[%s9710_s2 + $0x38c] sm:$0xf0] }
 0x117   : > { %3028 = vmatpush.bf16.msra.mxu3 %v5037_v22  ;;  %3053 = vmatpush.bf16.msrb.mxu1 %v5229_v51  ;;  %v6256_v22 = vld [vmem:[%s9710_s2 + $0x62c] sm:$0xf0] }
 0x118   : > { %v618_v24 = vld.sshfl [vmem:[#allocation1] sm:$0xff pattern:$0x73625140]  ;;  %v6888_v40 = vor.u32 %v6256_v22, %v5516_v21  ;;  %v6124_v51 = vld [vmem:[%s9710_s2 + $0x20c] sm:$0xf0] }
 0x119   : > { %620 = vst [vmem:[#allocation1] ss:$4 sm:$0xff] %v398_v45  ;;  %v612_v3 = vld.sshfl [vmem:[#allocation1 + $0x20] sm:$0xff pattern:$0x73625140]  ;;  %v6834_v31 = vpack.c.bf16 %v618_v24, %v618_v24  ;;  %3144 = vmatpush.bf16.msrb.mxu0 %v6825_v60  ;;  %v4989_v2 = vor.u32 %v6124_v51, %v4988_v50 }
 0x11a   : > { %621 = vst [vmem:[#allocation1 + $0x1] ss:$4 sm:$0xff] %v399_v46  ;;  %v5212_v45 = vld [vmem:[%s9710_s2 + $0x3c0] sm:$0xf]  ;;  %v6180_v46 = vld [vmem:[%s9710_s2 + $0x3cc] sm:$0xf0]  ;;  %v6855_v16 = vpack.c.bf16 %v612_v3, %v612_v3 }
 0x11b   : > { %622 = vst [vmem:[#allocation1 + $0x2] ss:$4 sm:$0xff] %v6518_v56  ;;  %v5213_v32 = vor.u32 %v6180_v46, %v5212_v45  ;;  %3029 = vmatpush.bf16.msra.mxu3 %v5021_v13  ;;  %v5180_v3 = vld [vmem:[%s9710_s2 + $0x380] sm:$0xf]  ;;  %v6252_v46 = vld [vmem:[%s9710_s2 + $0x60c] sm:$0xf0] }
 0x11c   : > { %623 = vst [vmem:[#allocation1 + $0x3] ss:$4 sm:$0xff] %v400_v58  ;;  %v5004_v58 = vld [vmem:[%s9710_s2 + $0x220] sm:$0xf]  ;;  %v876_v24 = vrot.slane %v6855_v16, 5  ;;  %v5181_v45 = vor.u32 %v6172_v5, %v5180_v3  ;;  %v4577_v50 = vrot.slane %v6834_v31, 9 }
 0x11d   : > { %617 = vst [vmem:[#allocation1 + $0x20] ss:$4 sm:$0xff] %v397_v44  ;;  %3054 = vmatpush.bf16.msrb.mxu1 %v5213_v32  ;;  %v5005_v19 = vor.u32 %v6128_v18, %v5004_v58  ;;  %v6176_v44 = vld [vmem:[%s9710_s2 + $0x3ac] sm:$0xf0]  ;;  %3145 = vmatpush.bf16.msrb.mxu0 %v6859_v17  ;;  %v5500_v13 = vld [vmem:[%s9710_s2 + $0x600] sm:$0xf] }
 0x11e   : > { %717 = vst [vmem:[#allocation2 + $0x24] sm:$0xf] %v6834_v31  ;;  %v5197_v26 = vor.u32 %v6176_v44, %v5196_v42  ;;  %v877_v32 = vsel %vm6884_vm9, %v4576_v55, %v876_v24  ;;  %v4588_v34 = vld [vmem:[#allocation2] sm:$0xf]  ;;  %v6913_v58 = vor.u32 %v6252_v46, %v5500_v13  ;;  %v6118_v22 = vld [vmem:[%s9710_s2 + $0x1e4] sm:$0xf] }
 0x11f   : > { %922 = vst [vmem:[#allocation2 + $0xc] sm:$0xf] %v6834_v31  ;;  %3030 = vmatpush.bf16.msra.mxu3 %v5005_v19  ;;  %v4974_v55 = vld [vmem:[%s9710_s2 + $0x1f0] sm:$0xf0]  ;;  %v6164_v3 = vld [vmem:[%s9710_s2 + $0x34c] sm:$0xf0] }
 0x120   : > { %914 = vst [vmem:[#allocation2 + $0x8] sm:$0xf] %v877_v32  ;;  %v4977_v24 = vor.u32 %v6118_v22, %v4974_v55  ;;  %v4958_v5 = vld [vmem:[%s9710_s2 + $0x1d0] sm:$0xf0]  ;;  %v6160_v46 = vld [vmem:[%s9710_s2 + $0x32c] sm:$0xf0] }
 0x121   : > { %3055 = vmatpush.bf16.msrb.mxu1 %v5197_v26  ;;  %3146 = vmatpush.bf16.msrb.mxu0 %v6888_v40  ;;  %v5164_v26 = vld [vmem:[%s9710_s2 + $0x360] sm:$0xf]  ;;  %v6156_v55 = vld [vmem:[%s9710_s2 + $0x30c] sm:$0xf0] }
 0x123   : > { %v625_v33 = vld.sshfl [vmem:[#allocation1] sm:$0xff pattern:$0x73625140]  ;;  %3031 = vmatpush.bf16.msra.mxu3 %v4989_v2 }
 0x124   : > { %627 = vst [vmem:[#allocation1] ss:$4 sm:$0xff] %v402_v0  ;;  %v619_v18 = vld.sshfl [vmem:[#allocation1 + $0x20] sm:$0xff pattern:$0x73625140]  ;;  %v6920_v44 = vpack.c.bf16 %v625_v33, %v625_v33 }
 0x125   : > { %628 = vst [vmem:[#allocation1 + $0x1] ss:$4 sm:$0xff] %v6542_v7  ;;  %v6026_v19 = vld [vmem:[#allocation2 + $0x20] sm:$0xf0]  ;;  %v6918_v42 = vpack.c.bf16 %v619_v18, %v619_v18  ;;  %3056 = vmatpush.bf16.msrb.mxu1 %v5181_v45  ;;  %v6168_v0 = vld [vmem:[%s9710_s2 + $0x36c] sm:$0xf0]  ;;  %3147 = vmatpush.bf16.msrb.mxu0 %v6913_v58 }
 0x126   : > { %629 = vst [vmem:[#allocation1 + $0x2] ss:$4 sm:$0xff] %v403_v9  ;;  %v6927_v21 = vor.u32 %v6026_v19, %v4588_v34  ;;  %v5165_v51 = vor.u32 %v6168_v0, %v5164_v26  ;;  %v5148_v2 = vld [vmem:[%s9710_s2 + $0x340] sm:$0xf]  ;;  %v6110_v34 = vld [vmem:[%s9710_s2 + $0x1a4] sm:$0xf] }
 0x127   : > { %630 = vst [vmem:[#allocation1 + $0x3] ss:$4 sm:$0xff] %v404_v10  ;;  %v880_v9 = vrot.slane %v6918_v42, 5  ;;  %v5149_v56 = vor.u32 %v6164_v3, %v5148_v2  ;;  %v5132_v45 = vld [vmem:[%s9710_s2 + $0x320] sm:$0xf] }
 0x128   : > { %9756 = vst [vmem:[#allocation3_spill] sm:$0xff] %v6927_v21  ;;  %2974 = vmatmul.bf16.vlgmr.msra.gmra.mxu1 %v6927_v21  ;;  %v5133_v33 = vor.u32 %v6160_v46, %v5132_v45  ;;  %v4596_v19 = vld [vmem:[#allocation2 + $0x8] sm:$0xf]  ;;  %v4942_v0 = vld [vmem:[%s9710_s2 + $0x1b0] sm:$0xf0] }
 0x129   : > { %624 = vst [vmem:[#allocation1 + $0x20] ss:$4 sm:$0xff] %v401_v59  ;;  %v881_v10 = vsel %vm6884_vm9, %v4577_v50, %v880_v9  ;;  %3057 = vmatpush.bf16.msrb.mxu1 %v5165_v51  ;;  %3256 = vmatpush.bf16.msra.mxu0 %v4977_v24  ;;  %v6114_v59 = vld [vmem:[%s9710_s2 + $0x1c4] sm:$0xf]  ;;  %v4945_v9 = vor.u32 %v6110_v34, %v4942_v0  ;;  %v5116_v51 = vld [vmem:[%s9710_s2 + $0x300] sm:$0xf] }
 0x12a   : > { %718 = vst [vmem:[#allocation2 + $0x48] sm:$0xf] %v6920_v44  ;;  %v4961_v13 = vor.u32 %v6114_v59, %v4958_v5  ;;  %v5117_v24 = vor.u32 %v6156_v55, %v5116_v51  ;;  %v4972_v7 = vld [vmem:[%s9710_s2 + $0x1e0] sm:$0xf]  ;;  %v6120_v3 = vld [vmem:[%s9710_s2 + $0x1ec] sm:$0xf0] }
 0x12b   : > { %915 = vst [vmem:[#allocation2 + $0x2c] sm:$0xf] %v881_v10  ;;  %v6102_v59 = vld [vmem:[%s9710_s2 + $0x164] sm:$0xf]  ;;  %v4910_v5 = vld [vmem:[%s9710_s2 + $0x170] sm:$0xf0] }
 0x12c   : > { %960 = vst [vmem:[#allocation2 + $0x14] sm:$0xf] %v881_v10  ;;  %v4913_v45 = vor.u32 %v6102_v59, %v4910_v5  ;;  %v5484_v46 = vld [vmem:[%s9710_s2 + $0x5e0] sm:$0xf] }
 0x12d   : > { %923 = vst [vmem:[#allocation2 + $0x30] sm:$0xf] %v6920_v44  ;;  %3058 = vmatpush.bf16.msrb.mxu1 %v5149_v56  ;;  %3257 = vmatpush.bf16.msra.mxu0 %v4961_v13  ;;  %v4973_v56 = vor.u32 %v6120_v3, %v4972_v7  ;;  %v7022_v13 = vpop.f32.mrf.mxu0  ;;  %v4956_v34 = vld [vmem:[%s9710_s2 + $0x1c0] sm:$0xf]  ;;  %v6112_v3 = vld [vmem:[%s9710_s2 + $0x1ac] sm:$0xf0] }
 0x12e   : > { %968 = vst [vmem:[#allocation2 + $0x18] sm:$0xf] %v6920_v44  ;;  %v632_v32 = vld.sshfl [vmem:[#allocation1] sm:$0xff pattern:$0x73625140] }
 0x12f   : > { %634 = vst [vmem:[#allocation1] ss:$4 sm:$0xff] %v6565_v25  ;;  %v6975_v26 = vpack.c.bf16 %v632_v32, %v632_v32  ;;  %v4926_v25 = vld [vmem:[%s9710_s2 + $0x190] sm:$0xf0]  ;;  %v6248_v32 = vld [vmem:[%s9710_s2 + $0x5ec] sm:$0xf0]  ;;  %2995 = vmatpush.bf16.msrb.mxu2 %v4973_v56 }
 0x130   : > { %v626_v18 = vld.sshfl [vmem:[#allocation1 + $0x20] sm:$0xff pattern:$0x73625140]  ;;  %635 = vst [vmem:[#allocation1 + $0x1] ss:$4 sm:$0xff] %v406_v27  ;;  %v728_v56 = vshrl.u32 %v6772_v1, 16 }
 0x131   : > { %v6980_v22 = vpack.c.bf16 %v626_v18, %v626_v18  ;;  %636 = vst [vmem:[#allocation1 + $0x2] ss:$4 sm:$0xff] %v407_v28  ;;  %3059 = vmatpush.bf16.msrb.mxu1 %v5133_v33  ;;  %v6106_v28 = vld [vmem:[%s9710_s2 + $0x184] sm:$0xf]  ;;  %3258 = vmatpush.bf16.msra.mxu0 %v4945_v9  ;;  %v5485_v33 = vor.u32 %v6248_v32, %v5484_v46  ;;  %v6116_v18 = vld [vmem:[%s9710_s2 + $0x1cc] sm:$0xf0] }
 0x132   : > { %v6027_v50 = vld [vmem:[#allocation2 + $0x28] sm:$0xf0]  ;;  %637 = vst [vmem:[#allocation1 + $0x3] ss:$4 sm:$0xff] %v408_v29  ;;  %v4578_v29 = vrot.slane %v6920_v44, 9  ;;  %v4929_v2 = vor.u32 %v6106_v28, %v4926_v25 }
 0x133   : > { %v6989_v27 = vor.u32 %v6027_v50, %v4596_v19  ;;  %631 = vst [vmem:[#allocation1 + $0x20] ss:$4 sm:$0xff] %v405_v11  ;;  %v884_v10 = vrot.slane %v6980_v22, 5  ;;  %v4624_v0 = vld [vmem:[#allocation2 + $0x48] sm:$0xf]  ;;  %v4957_v50 = vor.u32 %v6116_v18, %v4956_v34  ;;  %3111 = vmatpush.bf16.msrb.mxu3 %v5485_v33 }
 0x134   : > { %719 = vst [vmem:[#allocation2 + $0x6c] sm:$0xf] %v6975_v26  ;;  %v6098_v25 = vld [vmem:[%s9710_s2 + $0x144] sm:$0xf]  ;;  %v4878_v46 = vld [vmem:[%s9710_s2 + $0x130] sm:$0xf0] }
 0x135   : > { %9757 = vst [vmem:[#allocation4_spill] sm:$0xff] %v6989_v27  ;;  %3032 = vmatmul.bf16.vlgmr.msra.gmra.mxu3 %v6989_v27  ;;  %v885_v11 = vsel %vm6884_vm9, %v4578_v29, %v884_v10  ;;  %3060 = vmatpush.bf16.msrb.mxu1 %v5117_v24  ;;  %v4612_v55 = vld [vmem:[#allocation2 + $0x18] sm:$0xf]  ;;  %v363_v59 = vpop.f32.mrf.mxu0  ;;  %v6244_v34 = vld [vmem:[%s9710_s2 + $0x5cc] sm:$0xf0] }
 0x136   : > { %924 = vst [vmem:[#allocation2 + $0x54] sm:$0xf] %v6975_v26  ;;  %3259 = vmatpush.bf16.msra.mxu0 %v4929_v2  ;;  %2996 = vmatpush.bf16.msrb.mxu2 %v4957_v50  ;;  %v4940_v29 = vld [vmem:[%s9710_s2 + $0x1a0] sm:$0xf]  ;;  %v4579_v2 = vrot.slane %v6975_v26, 9 }
 0x137   : > { %969 = vst [vmem:[#allocation2 + $0x3c] sm:$0xf] %v6975_v26  ;;  %v5468_v33 = vld [vmem:[%s9710_s2 + $0x5c0] sm:$0xf] }
 0x138   : > { %916 = vst [vmem:[#allocation2 + $0x50] sm:$0xf] %v885_v11  ;;  %v5469_v18 = vor.u32 %v6244_v34, %v5468_v33 }
 0x139   : > { %961 = vst [vmem:[#allocation2 + $0x38] sm:$0xf] %v885_v11  ;;  %v639_v19 = vld.sshfl [vmem:[#allocation1] sm:$0xff pattern:$0x73625140] }
 0x13a   : > { %1006 = vst [vmem:[#allocation2 + $0x20] sm:$0xf] %v885_v11  ;;  %v633_v9 = vld.sshfl [vmem:[#allocation1 + $0x20] sm:$0xff pattern:$0x73625140]  ;;  %v7042_v24 = vpack.c.bf16 %v639_v19, %v639_v19  ;;  %3260 = vmatpush.bf16.msra.mxu0 %v4913_v45  ;;  %v4941_v45 = vor.u32 %v6112_v3, %v4940_v29  ;;  %3112 = vmatpush.bf16.msrb.mxu3 %v5469_v18  ;;  %v742_v3 = vshrl.u32 %v6834_v31, 16 }
 0x13b   : > { %641 = vst [vmem:[#allocation1] ss:$4 sm:$0xff] %v409_v52  ;;  %v6035_v51 = vld [vmem:[#allocation2 + $0x68] sm:$0xf0]  ;;  %v7040_v28 = vpack.c.bf16 %v633_v9, %v633_v9  ;;  %v4924_v19 = vld [vmem:[%s9710_s2 + $0x180] sm:$0xf] }
 0x13c   : > { %642 = vst [vmem:[#allocation1 + $0x1] ss:$4 sm:$0xff] %v410_v53  ;;  %v7049_v52 = vor.u32 %v6035_v51, %v4624_v0  ;;  %v4894_v53 = vld [vmem:[%s9710_s2 + $0x150] sm:$0xf0]  ;;  %2997 = vmatpush.bf16.msrb.mxu2 %v4941_v45  ;;  %v6108_v0 = vld [vmem:[%s9710_s2 + $0x18c] sm:$0xf0] }
 0x13d   : > { %643 = vst [vmem:[#allocation1 + $0x2] ss:$4 sm:$0xff] %v411_v54  ;;  %v888_v7 = vrot.slane %v7040_v28, 5  ;;  %v4897_v11 = vor.u32 %v6098_v25, %v4894_v53  ;;  %v4925_v50 = vor.u32 %v6108_v0, %v4924_v19  ;;  %v6090_v9 = vld [vmem:[%s9710_s2 + $0x104] sm:$0xf]  ;;  %v7098_v53 = vrot.slane %v728_v56, 4 }
 0x13e   : > { %9758 = vst [vmem:[#allocation5_spill] sm:$0xff] %v7049_v52  ;;  %v6029_v10 = vld [vmem:[#allocation2 + $0x38] sm:$0xf0]  ;;  %2979 = vmatmul.bf16.gmra.mxu1 %v7049_v52  ;;  %v4862_v51 = vld [vmem:[%s9710_s2 + $0x110] sm:$0xf0]  ;;  %v745_v56 = vshll.u32 %v6834_v31, 16 }
 0x13f   : > { %644 = vst [vmem:[#allocation1 + $0x3] ss:$4 sm:$0xff] %v6603_v4  ;;  %v7062_v54 = vor.u32 %v6029_v10, %v4612_v55  ;;  %v889_v5 = vsel %vm6884_vm9, %v4579_v2, %v888_v7  ;;  %3261 = vmatpush.bf16.msra.mxu0 %v4897_v11  ;;  %v4865_v55 = vor.u32 %v6090_v9, %v4862_v51  ;;  %v731_v10 = vshll.u32 %v6772_v1, 16  ;;  %v4632_v2 = vld [vmem:[#allocation2 + $0x50] sm:$0xf] }
 0x140   : > { %638 = vst [vmem:[#allocation1 + $0x20] ss:$4 sm:$0xff] %v6584_v49  ;;  %v6094_v49 = vld [vmem:[%s9710_s2 + $0x124] sm:$0xf]  ;;  %2998 = vmatpush.bf16.msrb.mxu2 %v4925_v50  ;;  %v756_v1 = vshrl.u32 %v6920_v44, 16  ;;  %v759_v31 = vshll.u32 %v6920_v44, 16 }
 0x141   : > { %9759 = vst [vmem:[#allocation6_spill] sm:$0xff] %v7062_v54  ;;  %3148 = vmatmul.bf16.vlgmr.msrb.gmra.mxu0 %v7062_v54  ;;  %v4881_v32 = vor.u32 %v6094_v49, %v4878_v46  ;;  %v4908_v45 = vld [vmem:[%s9710_s2 + $0x160] sm:$0xf]  ;;  %v4598_v49 = vld [vmem:[#allocation2 + $0x2c] sm:$0xf0]  ;;  %v7132_v34 = vrot.slane %v731_v10, 5 }
 0x142   : > { %720 = vst [vmem:[#allocation2 + $0x90] sm:$0xf] %v7042_v24  ;;  %v6104_v46 = vld [vmem:[%s9710_s2 + $0x16c] sm:$0xf0]  ;;  %v737_v44 = vshll.u32 %v6855_v16, 16  ;;  %v7136_v4 = vrot.slane %v742_v3, 4 }
 0x143   : > { %917 = vst [vmem:[#allocation2 + $0x74] sm:$0xf] %v889_v5  ;;  %3262 = vmatpush.bf16.msra.mxu0 %v4881_v32  ;;  %v4909_v33 = vor.u32 %v6104_v46, %v4908_v45  ;;  %v751_v18 = vshll.u32 %v6918_v42, 16  ;;  %v770_v19 = vshrl.u32 %v6975_v26, 16  ;;  %v7145_v50 = vrot.slane %v756_v1, 4 }
 0x144   : > { %962 = vst [vmem:[#allocation2 + $0x5c] sm:$0xf] %v889_v5  ;;  %v7147_v9 = vrot.slane %v759_v31, 5  ;;  %v773_v51 = vshll.u32 %v6975_v26, 16  ;;  %v4892_v10 = vld [vmem:[%s9710_s2 + $0x140] sm:$0xf] }
 0x145   : > { %1007 = vst [vmem:[#allocation2 + $0x44] sm:$0xf] %v889_v5  ;;  %2999 = vmatpush.bf16.msrb.mxu2 %v4909_v33  ;;  %v6100_v26 = vld [vmem:[%s9710_s2 + $0x14c] sm:$0xf0]  ;;  %v4876_v46 = vld [vmem:[%s9710_s2 + $0x120] sm:$0xf] }
 0x146   : > { %925 = vst [vmem:[#allocation2 + $0x78] sm:$0xf] %v7042_v24  ;;  %v646_v25 = vld.sshfl [vmem:[#allocation1] sm:$0xff pattern:$0x73625140]  ;;  %v775_v1 = vrot.slane %v773_v51, 5 }
 0x147   : > { %970 = vst [vmem:[#allocation2 + $0x60] sm:$0xf] %v7042_v24  ;;  %v640_v29 = vld.sshfl [vmem:[#allocation1 + $0x20] sm:$0xff pattern:$0x73625140]  ;;  %v7105_v7 = vpack.c.bf16 %v646_v25, %v646_v25  ;;  %3263 = vmatpush.bf16.msra.mxu0 %v4865_v55  ;;  %v779_v16 = vshll.u32 %v7040_v28, 16 }
 0x148   : > { %648 = vst [vmem:[#allocation1] ss:$4 sm:$0xff] %v413_v8  ;;  %v7107_v11 = vpack.c.bf16 %v640_v29, %v640_v29  ;;  %v4580_v8 = vrot.slane %v7042_v24, 9  ;;  %v5452_v55 = vld [vmem:[%s9710_s2 + $0x5a0] sm:$0xf] }
 0x149   : > { %649 = vst [vmem:[#allocation1 + $0x1] ss:$4 sm:$0xff] %v414_v12  ;;  %v6240_v25 = vld [vmem:[%s9710_s2 + $0x5ac] sm:$0xf0]  ;;  %v4660_v3 = vld [vmem:[#allocation2 + $0x90] sm:$0xf] }
 0x14a   : > { %650 = vst [vmem:[#allocation1 + $0x2] ss:$4 sm:$0xff] %v6622_v23  ;;  %v6036_v59 = vld [vmem:[#allocation2 + $0x70] sm:$0xf0]  ;;  %v892_v5 = vrot.slane %v7107_v11, 5  ;;  %v5453_v29 = vor.u32 %v6240_v25, %v5452_v55 }
 0x14b   : > { %651 = vst [vmem:[#allocation1 + $0x3] ss:$4 sm:$0xff] %v415_v35  ;;  %v7116_v12 = vor.u32 %v6036_v59, %v4632_v2  ;;  %v6023_v35 = vld [vmem:[#allocation2 + $0xc] sm:$0xf]  ;;  %v772_v59 = vrot.slane %v770_v19, 4  ;;  %v4581_v19 = vrot.slane %v7105_v7, 9 }
 0x14c   : > { %645 = vst [vmem:[#allocation1 + $0x20] ss:$4 sm:$0xff] %v412_v6  ;;  %v893_v32 = vsel %vm6884_vm9, %v4580_v8, %v892_v5  ;;  %v7138_v6 = vrot.slane %v745_v56, 5  ;;  %v7143_v0 = vor.u32 %v6023_v35, %v4598_v49  ;;  %v4893_v56 = vor.u32 %v6100_v26, %v4892_v10  ;;  %3113 = vmatpush.bf16.msrb.mxu3 %v5453_v29  ;;  %v4860_v23 = vld [vmem:[%s9710_s2 + $0x100] sm:$0xf] }
 0x14d   : > { %9760 = vst [vmem:[#allocation7_spill] sm:$0xff] %v7116_v12  ;;  %3037 = vmatmul.bf16.gmra.mxu3 %v7116_v12  ;;  %v762_v10 = vor.u32 %v7147_v9, %v7145_v50  ;;  %v424_v50 = vrot.slane %v6697_v20, 2  ;;  %v739_v26 = vrot.slane %v737_v44, 5  ;;  %v784_v44 = vshrl.u32 %v7042_v24, 16 }
 0x14e   : > { %721 = vst [vmem:[#allocation2 + $0xb4] sm:$0xf] %v7105_v7  ;;  %3061 = vmatmul.bf16.vlgmr.msrb.gmra.mxu1 %v7143_v0  ;;  %v4648_v45 = vld [vmem:[#allocation2 + $0x60] sm:$0xf]  ;;  %3000 = vmatpush.bf16.msrb.mxu2 %v4893_v56  ;;  %v748_v29 = vor.u32 %v7138_v6, %v7136_v4  ;;  %v776_v4 = vor.u32 %v775_v1, %v772_v59  ;;  %v765_v59 = vshll.u32 %v6980_v22, 16 }
 0x14f   : > { %926 = vst [vmem:[#allocation2 + $0x9c] sm:$0xf] %v7105_v7  ;;  %v7218_v1 = vrot.slane %v762_v10, 4 }
 0x150   : > { %971 = vst [vmem:[#allocation2 + $0x84] sm:$0xf] %v7105_v7  ;;  %v749_v56 = vrot.slane %v748_v29, 4 }
 0x151   : > { %918 = vst [vmem:[#allocation2 + $0x98] sm:$0xf] %v893_v32 }
 0x152   : > { %963 = vst [vmem:[#allocation2 + $0x80] sm:$0xf] %v893_v32  ;;  %v653_v2 = vld.sshfl [vmem:[#allocation1] sm:$0xff pattern:$0x73625140] }
 0x153   : > { %1008 = vst [vmem:[#allocation2 + $0x68] sm:$0xf] %v893_v32  ;;  %v647_v8 = vld.sshfl [vmem:[#allocation1 + $0x20] sm:$0xff pattern:$0x73625140]  ;;  %v7168_v49 = vpack.c.bf16 %v653_v2, %v653_v2  ;;  %v753_v2 = vrot.slane %v751_v18, 5 }
 0x154   : > { %656 = vst [vmem:[#allocation1 + $0x1] ss:$4 sm:$0xff] %v6638_v57  ;;  %v7166_v31 = vpack.c.bf16 %v647_v8, %v647_v8  ;;  %v5436_v32 = vld [vmem:[%s9710_s2 + $0x580] sm:$0xf]  ;;  %v6032_v8 = vld [vmem:[#allocation2 + $0x54] sm:$0xf] }
 0x155   : > { %657 = vst [vmem:[#allocation1 + $0x2] ss:$4 sm:$0xff] %v418_v61  ;;  %v6044_v5 = vld [vmem:[#allocation2 + $0xb0] sm:$0xf0]  ;;  %v6096_v61 = vld [vmem:[%s9710_s2 + $0x12c] sm:$0xf0] }
 0x156   : > { %658 = vst [vmem:[#allocation1 + $0x3] ss:$4 sm:$0xff] %v419_v62  ;;  %v7175_v35 = vor.u32 %v6044_v5, %v4660_v3  ;;  %v896_v51 = vrot.slane %v7166_v31, 5  ;;  %v734_v62 = vor.u32 %v7132_v34, %v7098_v53  ;;  %v4877_v55 = vor.u32 %v6096_v61, %v4876_v46  ;;  %v4634_v3 = vld [vmem:[#allocation2 + $0x74] sm:$0xf0] }
 0x157   : > { %655 = vst [vmem:[#allocation1] ss:$4 sm:$0xff] %v417_v41  ;;  %v6038_v33 = vld [vmem:[#allocation2 + $0x80] sm:$0xf0]  ;;  %v6236_v41 = vld [vmem:[%s9710_s2 + $0x58c] sm:$0xf0] }
 0x158   : > { %9761 = vst [vmem:[#allocation8_spill] sm:$0xff] %v7175_v35  ;;  %2984 = vmatmul.bf16.vlgmr.msra.gmra.mxu2 %v7175_v35  ;;  %v7190_v25 = vor.u32 %v6038_v33, %v4648_v45  ;;  %v897_v53 = vsel %vm6884_vm9, %v4581_v19, %v896_v51  ;;  %v5437_v34 = vor.u32 %v6236_v41, %v5436_v32  ;;  %v735_v9 = vrot.slane %v734_v62, 4  ;;  %v4668_v61 = vld [vmem:[#allocation2 + $0x98] sm:$0xf] }
 0x159   : > { %652 = vst [vmem:[#allocation1 + $0x20] ss:$4 sm:$0xff] %v416_v36  ;;  %3001 = vmatpush.bf16.msrb.mxu2 %v4877_v55  ;;  %v6092_v36 = vld [vmem:[%s9710_s2 + $0x10c] sm:$0xf0]  ;;  %v7220_v5 = vrot.slane %v776_v4, 4  ;;  %v787_v18 = vshll.u32 %v7042_v24, 16  ;;  %v7232_v32 = vor.u32 %v6032_v8, %v4634_v3 }
 0x15a   : > { %9762 = vst [vmem:[#allocation9_spill] sm:$0xff] %v7190_v25  ;;  %3153 = vmatmul.bf16.gmra.mxu0 %v7190_v25  ;;  %v4861_v6 = vor.u32 %v6092_v36, %v4860_v23  ;;  %3114 = vmatpush.bf16.msrb.mxu3 %v5437_v34  ;;  %v4582_v46 = vrot.slane %v7168_v49, 9  ;;  %v767_v33 = vrot.slane %v765_v59, 5  ;;  %v798_v19 = vshrl.u32 %v7105_v7, 16  ;;  %v5356_v41 = vld [vmem:[%s9710_s2 + $0x4e0] sm:$0xf] }
 0x15b   : > { %722 = vst [vmem:[#allocation2 + $0xd8] sm:$0xf] %v7168_v49  ;;  %v781_v62 = vrot.slane %v779_v16, 5  ;;  %v7244_v55 = vrot.slane %v784_v44, 4  ;;  %v7255_v10 = vrot.slane %v787_v18, 5  ;;  %v754_v23 = vsel %vm7236_vm12, %v749_v56, %v753_v2 }
 0x15c   : > { %919 = vst [vmem:[#allocation2 + $0xbc] sm:$0xf] %v897_v53  ;;  %v5420_v34 = vld [vmem:[%s9710_s2 + $0x560] sm:$0xf]  ;;  %v7274_v36 = vrot.slane %v798_v19, 4  ;;  %v801_v4 = vshll.u32 %v7105_v7, 16 }
 0x15d   : > { %964 = vst [vmem:[#allocation2 + $0xa4] sm:$0xf] %v897_v53  ;;  %3002 = vmatpush.bf16.msrb.mxu2 %v4861_v6  ;;  %v5404_v56 = vld [vmem:[%s9710_s2 + $0x540] sm:$0xf]  ;;  %v6228_v7 = vld [vmem:[%s9710_s2 + $0x54c] sm:$0xf0] }
 0x15e   : > { %1009 = vst [vmem:[#allocation2 + $0x8c] sm:$0xf] %v897_v53  ;;  %v660_v42 = vld.sshfl [vmem:[#allocation1] sm:$0xff pattern:$0x73625140]  ;;  %3066 = vmatmul.bf16.gmra.mxu1 %v7232_v32  ;;  %v740_v53 = vsel %vm7236_vm12, %v735_v9, %v739_v26  ;;  %v5405_v8 = vor.u32 %v6228_v7, %v5404_v56 }
 0x15f   : > { %927 = vst [vmem:[#allocation2 + $0xc0] sm:$0xf] %v7168_v49  ;;  %v7226_v45 = vpack.c.bf16 %v660_v42, %v660_v42  ;;  %v5740_v9 = vld [vmem:[%s9710_s2 + $0x7e0] sm:$0xf]  ;;  %v6312_v26 = vld [vmem:[%s9710_s2 + $0x7ec] sm:$0xf0] }
 0x160   : > { %972 = vst [vmem:[#allocation2 + $0xa8] sm:$0xf] %v7168_v49  ;;  %v654_v22 = vld.sshfl [vmem:[#allocation1 + $0x20] sm:$0xff pattern:$0x73625140]  ;;  %v5741_v3 = vor.u32 %v6312_v26, %v5740_v9  ;;  %v790_v9 = vor.u32 %v7255_v10, %v7244_v55  ;;  %v803_v26 = vrot.slane %v801_v4, 5 }
 0x161   : > { %662 = vst [vmem:[#allocation1] ss:$4 sm:$0xff] %v6667_v38  ;;  %v7240_v24 = vpack.c.bf16 %v654_v22, %v654_v22  ;;  %v5724_v16 = vld [vmem:[%s9710_s2 + $0x7c0] sm:$0xf]  ;;  %v6308_v44 = vld [vmem:[%s9710_s2 + $0x7cc] sm:$0xf0] }
 0x162   : > { %663 = vst [vmem:[#allocation1 + $0x1] ss:$4 sm:$0xff] %v421_v43  ;;  %v4696_v2 = vld [vmem:[#allocation2 + $0xd8] sm:$0xf]  ;;  %3169 = vmatpush.bf16.msra.mxu1 %v5741_v3  ;;  %v5725_v18 = vor.u32 %v6308_v44, %v5724_v16  ;;  %v6041_v56 = vld [vmem:[#allocation2 + $0x9c] sm:$0xf]  ;;  %v804_v4 = vor.u32 %v803_v26, %v7274_v36 }
 0x163   : > { %v6045_v51 = vld [vmem:[#allocation2 + $0xb8] sm:$0xf0]  ;;  %723 = vst [vmem:[#allocation2 + $0xfc] sm:$0xf] %v7226_v45  ;;  %v900_v29 = vrot.slane %v7240_v24, 5  ;;  %v4583_v10 = vrot.slane %v7226_v45, 9 }
 0x164   : > { %v7246_v43 = vor.u32 %v6045_v51, %v4668_v61  ;;  %664 = vst [vmem:[#allocation1 + $0x2] ss:$4 sm:$0xff] %v422_v47  ;;  %v6216_v47 = vld [vmem:[%s9710_s2 + $0x4ec] sm:$0xf0]  ;;  %v5340_v22 = vld [vmem:[%s9710_s2 + $0x4c0] sm:$0xf]  ;;  %v768_v51 = vsel %vm7236_vm12, %v7218_v1, %v767_v33 }
 0x165   : > { %665 = vst [vmem:[#allocation1 + $0x3] ss:$4 sm:$0xff] %v423_v48  ;;  %v5357_v38 = vor.u32 %v6216_v47, %v5356_v41  ;;  %v6232_v48 = vld [vmem:[%s9710_s2 + $0x56c] sm:$0xf0]  ;;  %v901_v59 = vsel %vm6884_vm9, %v4582_v46, %v900_v29  ;;  %v5388_v19 = vld [vmem:[%s9710_s2 + $0x520] sm:$0xf] }
 0x166   : > { %9765 = vst [vmem:[#allocation10_spill] sm:$0xff] %v7246_v43  ;;  %3042 = vmatmul.bf16.gmra.mxu3 %v7246_v43  ;;  %v5421_v6 = vor.u32 %v6232_v48, %v5420_v34  ;;  %v6212_v46 = vld [vmem:[%s9710_s2 + $0x4cc] sm:$0xf0]  ;;  %v5708_v57 = vld [vmem:[%s9710_s2 + $0x7a0] sm:$0xf]  ;;  %3170 = vmatpush.bf16.msra.mxu1 %v5725_v18  ;;  %v425_v48 = vrot.slane %v6697_v20, 4 }
 0x167   : > { %928 = vst [vmem:[#allocation2 + $0xe4] sm:$0xf] %v7226_v45  ;;  %3082 = vmatpush.bf16.msra.mxu2 %v5357_v38  ;;  %v5341_v29 = vor.u32 %v6212_v46, %v5340_v22  ;;  %v6224_v41 = vld [vmem:[%s9710_s2 + $0x52c] sm:$0xf0]  ;;  %v5372_v33 = vld [vmem:[%s9710_s2 + $0x500] sm:$0xf] }
 0x168   : > { %973 = vst [vmem:[#allocation2 + $0xcc] sm:$0xf] %v7226_v45  ;;  %3115 = vmatpush.bf16.msrb.mxu3 %v5421_v6  ;;  %v5389_v47 = vor.u32 %v6224_v41, %v5388_v19  ;;  %v6304_v1 = vld [vmem:[%s9710_s2 + $0x7ac] sm:$0xf0]  ;;  %v791_v22 = vrot.slane %v790_v9, 4  ;;  %v812_v36 = vshrl.u32 %v7168_v49, 16 }
 0x169   : > { %847 = vst [vmem:[#allocation2 + $0x4] sm:$0xf] %v740_v53  ;;  %v782_v53 = vsel %vm7236_vm12, %v7220_v5, %v781_v62  ;;  %v5709_v34 = vor.u32 %v6304_v1, %v5708_v57  ;;  %v5692_v5 = vld [vmem:[%s9710_s2 + $0x780] sm:$0xf]  ;;  %v6300_v38 = vld [vmem:[%s9710_s2 + $0x78c] sm:$0xf0] }
 0x16a   : > { %848 = vst [vmem:[#allocation2 + $0x28] sm:$0xf] %v754_v23  ;;  %v6053_v42 = vld [vmem:[#allocation2 + $0xf8] sm:$0xf0]  ;;  %v5308_v9 = vld [vmem:[%s9710_s2 + $0x480] sm:$0xf] }
 0x16b   : > { %945 = vst [vmem:[#allocation2 + $0x10] sm:$0xf] %v754_v23  ;;  %v7301_v61 = vor.u32 %v6053_v42, %v4696_v2  ;;  %3083 = vmatpush.bf16.msra.mxu2 %v5341_v29  ;;  %v6220_v23 = vld [vmem:[%s9710_s2 + $0x50c] sm:$0xf0]  ;;  %v426_v2 = vrot.slane %v6697_v20, 6  ;;  %3171 = vmatpush.bf16.msra.mxu1 %v5709_v34  ;;  %v5693_v42 = vor.u32 %v6300_v38, %v5692_v5 }
 0x16c   : > { %659 = vst [vmem:[#allocation1 + $0x20] ss:$4 sm:$0xff] %v420_v63  ;;  %v4670_v63 = vld [vmem:[#allocation2 + $0xbc] sm:$0xf0]  ;;  %3116 = vmatpush.bf16.msrb.mxu3 %v5405_v8  ;;  %v5373_v7 = vor.u32 %v6220_v23, %v5372_v33  ;;  %v377_v8 = vmax.f32 %v7022_v13, 0.0 }
 0x16d   : > { %9766 = vst [vmem:[#allocation11_spill] sm:$0xff] %v7301_v61  ;;  %2989 = vmatmul.bf16.gmra.mxu2 %v7301_v61  ;;  %v7347_v44 = vor.u32 %v6041_v56, %v4670_v63  ;;  %v667_v18 = vld.sshfl [vmem:[#allocation1] sm:$0xff pattern:$0x73625140]  ;;  %v5486_v33 = vld [vmem:[%s9710_s2 + $0x5f0] sm:$0xf0] }
 0x16e   : > { %920 = vst [vmem:[#allocation2 + $0xe0] sm:$0xf] %v901_v59  ;;  %v7358_v19 = vpack.c.bf16 %v667_v18, %v667_v18  ;;  %v5324_v29 = vld [vmem:[%s9710_s2 + $0x4a0] sm:$0xf]  ;;  %v6292_v5 = vld [vmem:[%s9710_s2 + $0x74c] sm:$0xf0] }
 0x16f   : > { %965 = vst [vmem:[#allocation2 + $0xc8] sm:$0xf] %v901_v59  ;;  %3071 = vmatmul.bf16.gmra.mxu1 %v7347_v44  ;;  %v5660_v34 = vld [vmem:[%s9710_s2 + $0x740] sm:$0xf]  ;;  %v6222_v13 = vld [vmem:[%s9710_s2 + $0x524] sm:$0xf] }
 0x170   : > { %1010 = vst [vmem:[#allocation2 + $0xb0] sm:$0xf] %v901_v59  ;;  %v6022_v62 = vld [vmem:[#allocation2 + $0x4] sm:$0xf]  ;;  %3117 = vmatpush.bf16.msrb.mxu3 %v5389_v47  ;;  %v793_v59 = vshll.u32 %v7107_v11, 16  ;;  %v807_v11 = vshll.u32 %v7166_v31, 16  ;;  %3172 = vmatpush.bf16.msra.mxu1 %v5693_v42  ;;  %v5661_v38 = vor.u32 %v6292_v5, %v5660_v34 }
 0x171   : > { %849 = vst [vmem:[#allocation2 + $0x4c] sm:$0xf] %v768_v51  ;;  %v4590_v6 = vld [vmem:[#allocation2 + $0x24] sm:$0xf0]  ;;  %v6238_v42 = vld [vmem:[%s9710_s2 + $0x5a4] sm:$0xf] }
 0x172   : > { %850 = vst [vmem:[#allocation2 + $0x70] sm:$0xf] %v782_v53  ;;  %v7343_v3 = vor.u32 %v6022_v62, %v4590_v6  ;;  %v795_v41 = vrot.slane %v793_v59, 5  ;;  %v6208_v31 = vld [vmem:[%s9710_s2 + $0x4ac] sm:$0xf0]  ;;  %v809_v47 = vrot.slane %v807_v11, 5 }
 0x173   : > { %946 = vst [vmem:[#allocation2 + $0x34] sm:$0xf] %v768_v51  ;;  %v661_v16 = vld.sshfl [vmem:[#allocation1 + $0x20] sm:$0xff pattern:$0x73625140]  ;;  %v5325_v63 = vor.u32 %v6208_v31, %v5324_v29 }
 0x174   : > { %947 = vst [vmem:[#allocation2 + $0x58] sm:$0xf] %v782_v53  ;;  %3264 = vmatmul.bf16.vlgmr.msra.gmra.mxu0 %v7343_v3  ;;  %v7350_v55 = vpack.c.bf16 %v661_v16, %v661_v16  ;;  %3118 = vmatpush.bf16.msrb.mxu3 %v5373_v7  ;;  %v6242_v62 = vld [vmem:[%s9710_s2 + $0x5c4] sm:$0xf]  ;;  %v5470_v6 = vld [vmem:[%s9710_s2 + $0x5d0] sm:$0xf0]  ;;  %v796_v26 = vsel %vm7236_vm12, %v791_v22, %v795_v41 }
 0x175   : > { %666 = vst [vmem:[#allocation1 + $0x20] ss:$4 sm:$0xff] %v6697_v20  ;;  %v5676_v20 = vld [vmem:[%s9710_s2 + $0x760] sm:$0xf]  ;;  %3084 = vmatpush.bf16.msra.mxu2 %v5325_v63  ;;  %v5473_v56 = vor.u32 %v6242_v62, %v5470_v6  ;;  %v4704_v7 = vld [vmem:[#allocation2 + $0xe0] sm:$0xf] }
 0x176   : > { %991 = vst [vmem:[#allocation2 + $0x1c] sm:$0xf] %v768_v51  ;;  %v904_v46 = vrot.slane %v7350_v55, 5  ;;  %v815_v51 = vshll.u32 %v7168_v49, 16  ;;  %v6288_v16 = vld [vmem:[%s9710_s2 + $0x72c] sm:$0xf0] }
 0x177   : > { %992 = vst [vmem:[#allocation2 + $0x40] sm:$0xf] %v782_v53  ;;  %v805_v53 = vrot.slane %v804_v4, 4  ;;  %v5454_v11 = vld [vmem:[%s9710_s2 + $0x5b0] sm:$0xf0]  ;;  %v821_v62 = vshll.u32 %v7240_v24, 16 }
 0x178   : > { %669 = vst [vmem:[#allocation1] ss:$4 sm:$0xff] %v424_v50  ;;  %6386 = vmatpush.bf16.msra.mxu3 %v6728_v15  ;;  %v905_v57 = vsel %vm6884_vm9, %v4583_v10, %v904_v46  ;;  %v6296_v50 = vld [vmem:[%s9710_s2 + $0x76c] sm:$0xf0]  ;;  %v6246_v15 = vld [vmem:[%s9710_s2 + $0x5e4] sm:$0xf]  ;;  %v5457_v31 = vor.u32 %v6238_v42, %v5454_v11 }
 0x179   : > { %929 = vst [vmem:[#allocation2 + $0x108] sm:$0xf] %v7358_v19  ;;  %v5677_v1 = vor.u32 %v6296_v50, %v5676_v20  ;;  %v5489_v23 = vor.u32 %v6246_v15, %v5486_v33  ;;  %v6031_v10 = vld [vmem:[#allocation2 + $0x4c] sm:$0xf]  ;;  %v4626_v4 = vld [vmem:[#allocation2 + $0x6c] sm:$0xf0] }
 0x17a   : > { %921 = vst [vmem:[#allocation2 + $0x104] sm:$0xf] %v905_v57  ;;  %v6050_v22 = vld [vmem:[#allocation2 + $0xe4] sm:$0xf]  ;;  %v7434_v63 = vor.u32 %v6031_v10, %v4626_v4  ;;  %v5292_v50 = vld [vmem:[%s9710_s2 + $0x460] sm:$0xf] }
 0x17b   : > { %966 = vst [vmem:[#allocation2 + $0xec] sm:$0xf] %v905_v57  ;;  %3173 = vmatpush.bf16.msra.mxu1 %v5677_v1  ;;  %3372 = vmatpush.bf16.msrb.mxu0 %v5489_v23  ;;  %v6200_v15 = vld [vmem:[%s9710_s2 + $0x46c] sm:$0xf0]  ;;  %v814_v23 = vrot.slane %v812_v36, 4  ;;  %v817_v5 = vrot.slane %v815_v51, 5 }
 0x17c   : > { %1011 = vst [vmem:[#allocation2 + $0xd4] sm:$0xf] %v905_v57  ;;  %6387 = vmatpush.bf16.msra.mxu3 %v6750_v39  ;;  %v6204_v39 = vld [vmem:[%s9710_s2 + $0x48c] sm:$0xf0]  ;;  %v5628_v57 = vld [vmem:[%s9710_s2 + $0x700] sm:$0xf]  ;;  %v5293_v33 = vor.u32 %v6200_v15, %v5292_v50 }
 0x17d   : > { %670 = vst [vmem:[#allocation1 + $0x1] ss:$4 sm:$0xff] %v425_v48  ;;  %v5644_v48 = vld [vmem:[%s9710_s2 + $0x720] sm:$0xf]  ;;  %3003 = vmatmul.bf16.vlgmr.msrb.gmra.mxu2 %v7343_v3  ;;  %v5309_v59 = vor.u32 %v6204_v39, %v5308_v9  ;;  %v829_v6 = vshll.u32 %v7226_v45, 16  ;;  %v835_v9 = vshll.u32 %v7350_v55, 16 }
 0x17e   : > { %671 = vst [vmem:[#allocation1 + $0x2] ss:$4 sm:$0xff] %v426_v2  ;;  %v810_v2 = vsel %vm7236_vm12, %v805_v53, %v809_v47  ;;  %v5645_v29 = vor.u32 %v6288_v16, %v5644_v48  ;;  %v6234_v53 = vld [vmem:[%s9710_s2 + $0x584] sm:$0xf]  ;;  %v5438_v47 = vld [vmem:[%s9710_s2 + $0x590] sm:$0xf0] }
 0x17f   : > { %672 = vst [vmem:[#allocation1 + $0x3] ss:$4 sm:$0xff] %v377_v8  ;;  %3174 = vmatpush.bf16.msra.mxu1 %v5661_v38  ;;  %3085 = vmatpush.bf16.msra.mxu2 %v5309_v59  ;;  %v5441_v34 = vor.u32 %v6234_v53, %v5438_v47  ;;  %v826_v38 = vshrl.u32 %v7226_v45, 16  ;;  %v823_v36 = vrot.slane %v821_v62, 5  ;;  %v5422_v49 = vld [vmem:[%s9710_s2 + $0x570] sm:$0xf0] }
 0x180   : > { %974 = vst [vmem:[#allocation2 + $0xf0] sm:$0xf] %v7358_v19  ;;  %6388 = vmatpush.bf16.msra.mxu3 %v6783_v14  ;;  %v4706_v46 = vld [vmem:[#allocation2 + $0x104] sm:$0xf0]  ;;  %3373 = vmatpush.bf16.msrb.mxu0 %v5473_v56  ;;  %v818_v56 = vor.u32 %v817_v5, %v814_v23  ;;  %v831_v51 = vrot.slane %v829_v6, 5  ;;  %v837_v45 = vrot.slane %v835_v9, 5 }
 0x181   : > { %v6054_v18 = vld [vmem:[#allocation2 + $0x100] sm:$0xf0]  ;;  %851 = vst [vmem:[#allocation2 + $0x94] sm:$0xf] %v796_v26  ;;  %v6284_v14 = vld [vmem:[%s9710_s2 + $0x70c] sm:$0xf0]  ;;  %v7443_v20 = vor.u32 %v6050_v22, %v4706_v46 }
 0x182   : > { %v7426_v41 = vor.u32 %v6054_v18, %v4704_v7  ;;  %852 = vst [vmem:[#allocation2 + $0xb8] sm:$0xf] %v810_v2  ;;  %v5629_v1 = vor.u32 %v6284_v14, %v5628_v57  ;;  %v828_v24 = vrot.slane %v826_v38, 4  ;;  %v819_v39 = vrot.slane %v818_v56, 4  ;;  %v6226_v55 = vld [vmem:[%s9710_s2 + $0x544] sm:$0xf] }
 0x183   : > { %9768 = vst [vmem:[#allocation13_spill] sm:$0xff] %v7434_v63  ;;  %3175 = vmatpush.bf16.msra.mxu1 %v5645_v29  ;;  %3086 = vmatpush.bf16.msra.mxu2 %v5293_v33  ;;  %v6196_v59 = vld [vmem:[%s9710_s2 + $0x44c] sm:$0xf0]  ;;  %v427_v10 = vrot.slane %v377_v8, 2  ;;  %v4606_v11 = vld [vmem:[#allocation2 + $0x34] sm:$0xf0] }
 0x184   : > { %9767 = vst [vmem:[#allocation12_spill] sm:$0xff] %v7426_v41  ;;  %3047 = vmatmul.bf16.gmra.mxu3 %v7426_v41  ;;  %3269 = vmatmul.bf16.gmra.mxu0 %v7434_v63  ;;  %v832_v7 = vor.u32 %v831_v51, %v828_v24  ;;  %v824_v16 = vsel %vm7236_vm12, %v819_v39, %v823_v36  ;;  %v6024_v46 = vld [vmem:[#allocation2 + $0x14] sm:$0xf]  ;;  %v5390_v8 = vld [vmem:[%s9710_s2 + $0x530] sm:$0xf0]  ;;  %v4584_v53 = vrot.slane %v7358_v19, 9 }
 0x185   : > { %948 = vst [vmem:[#allocation2 + $0x7c] sm:$0xf] %v796_v26  ;;  %3076 = vmatmul.bf16.gmra.mxu1 %v7443_v20  ;;  %3374 = vmatpush.bf16.msrb.mxu0 %v5457_v31  ;;  %v668_v29 = vld.sshfl [vmem:[#allocation1 + $0x20] sm:$0xff pattern:$0x73625140]  ;;  %v7496_v47 = vor.u32 %v6024_v46, %v4606_v11  ;;  %v5393_v15 = vor.u32 %v6222_v13, %v5390_v8  ;;  %v931_v23 = vshrl.u32 %v7358_v19, 16 }
 0x186   : > { %949 = vst [vmem:[#allocation2 + $0xa0] sm:$0xf] %v810_v2  ;;  %6389 = vmatpush.bf16.msra.mxu3 %v6803_v30  ;;  %v5406_v30 = vld [vmem:[%s9710_s2 + $0x550] sm:$0xf0]  ;;  %v833_v4 = vrot.slane %v832_v7, 4  ;;  %v713_v14 = vpack.c.bf16 %v668_v29, %v668_v29  ;;  %v934_v39 = vshll.u32 %v7358_v19, 16 }
 0x187   : > { %993 = vst [vmem:[#allocation2 + $0x64] sm:$0xf] %v796_v26  ;;  %v6230_v26 = vld [vmem:[%s9710_s2 + $0x564] sm:$0xf]  ;;  %3176 = vmatpush.bf16.msra.mxu1 %v5629_v1  ;;  %v5409_v22 = vor.u32 %v6226_v55, %v5406_v30  ;;  %v4614_v57 = vld [vmem:[#allocation2 + $0x3c] sm:$0xf0] }
 0x188   : > { %994 = vst [vmem:[#allocation2 + $0x88] sm:$0xf] %v810_v2  ;;  %v5425_v48 = vor.u32 %v6230_v26, %v5422_v49  ;;  %v5276_v2 = vld [vmem:[%s9710_s2 + $0x440] sm:$0xf]  ;;  %v6025_v31 = vld [vmem:[#allocation2 + $0x1c] sm:$0xf] }
 0x189   : > { %3375 = vmatpush.bf16.msrb.mxu0 %v5441_v34  ;;  %v5277_v42 = vor.u32 %v6196_v59, %v5276_v2  ;;  %853 = vst [vmem:[#allocation2 + $0xdc] sm:$0xf] %v824_v16  ;;  %v4662_v18 = vld [vmem:[#allocation2 + $0xb4] sm:$0xf0]  ;;  %v6040_v50 = vld [vmem:[#allocation2 + $0x94] sm:$0xf]  ;;  %v7509_v5 = vor.u32 %v6025_v31, %v4614_v57 }
 0x18a   : > { %6390 = vmatpush.bf16.msra.mxu3 %v6825_v60  ;;  %950 = vst [vmem:[#allocation2 + $0xc4] sm:$0xf] %v824_v16  ;;  %v838_v60 = vsel %vm7236_vm12, %v833_v4, %v837_v45  ;;  %v6218_v1 = vld [vmem:[%s9710_s2 + $0x504] sm:$0xf]  ;;  %v7501_v33 = vor.u32 %v6040_v50, %v4662_v18  ;;  %v957_v34 = vrot.slane %v713_v14, 5  ;;  %v933_v51 = vrot.slane %v931_v23, 4 }
 0x18b   : > { %3087 = vmatpush.bf16.msra.mxu2 %v5277_v42  ;;  %995 = vst [vmem:[#allocation2 + $0xac] sm:$0xf] %v824_v16  ;;  %v5260_v62 = vld [vmem:[%s9710_s2 + $0x420] sm:$0xf]  ;;  %v6192_v38 = vld [vmem:[%s9710_s2 + $0x42c] sm:$0xf0] }
 0x18c   : > { %854 = vst [vmem:[#allocation2 + $0x100] sm:$0xf] %v838_v60  ;;  %v5261_v6 = vor.u32 %v6192_v38, %v5260_v62  ;;  %v6188_v9 = vld [vmem:[%s9710_s2 + $0x40c] sm:$0xf0]  ;;  %v958_v26 = vsel %vm6884_vm9, %v4584_v53, %v957_v34  ;;  %v936_v45 = vrot.slane %v934_v39, 5  ;;  %v940_v55 = vshll.u32 %v713_v14, 16 }
 0x18d   : > { %3376 = vmatpush.bf16.msrb.mxu0 %v5425_v48  ;;  %3008 = vmatmul.bf16.gmra.mxu2 %v7434_v63  ;;  %951 = vst [vmem:[#allocation2 + $0xe8] sm:$0xf] %v838_v60  ;;  %v674_v36 = vld.sshfl [vmem:[#allocation1] sm:$0xff pattern:$0x73625140] }
 0x18e   : > { %6391 = vmatpush.bf16.msra.mxu3 %v6859_v17  ;;  %996 = vst [vmem:[#allocation2 + $0xd0] sm:$0xf] %v838_v60  ;;  %v5374_v17 = vld [vmem:[%s9710_s2 + $0x510] sm:$0xf0]  ;;  %v714_v24 = vpack.c.bf16 %v674_v36, %v674_v36  ;;  %v937_v48 = vor.u32 %v936_v45, %v933_v51  ;;  %v4642_v2 = vld [vmem:[#allocation2 + $0x7c] sm:$0xf0] }
 0x18f   : > { %9769 = vst [vmem:[#allocation14_spill] sm:$0xff] %v7501_v33  ;;  %v5377_v56 = vor.u32 %v6218_v1, %v5374_v17  ;;  %3088 = vmatpush.bf16.msra.mxu2 %v5261_v6  ;;  %v942_v16 = vrot.slane %v940_v55, 5  ;;  %v6033_v42 = vld [vmem:[#allocation2 + $0x5c] sm:$0xf]  ;;  %v4650_v4 = vld [vmem:[#allocation2 + $0x84] sm:$0xf0] }
 0x190   : > { %673 = vst [vmem:[#allocation1 + $0x20] ss:$4 sm:$0xff] %v427_v10  ;;  %v977_v7 = vshrl.u32 %v714_v24, 16  ;;  %v980_v30 = vshll.u32 %v714_v24, 16  ;;  %v938_v59 = vrot.slane %v937_v48, 4  ;;  %v7532_v18 = vor.u32 %v6033_v42, %v4642_v2 }
 0x191   : > { %3377 = vmatpush.bf16.msrb.mxu0 %v5409_v22  ;;  %967 = vst [vmem:[#allocation2 + $0x110] sm:$0xf] %v958_v26  ;;  %v6034_v13 = vld [vmem:[#allocation2 + $0x64] sm:$0xf]  ;;  %v5868_v29 = vld [vmem:[%s9710_s2 + $0x8e0] sm:$0xf] }
 0x192   : > { %6392 = vmatpush.bf16.msra.mxu3 %v6888_v40  ;;  %v5244_v40 = vld [vmem:[%s9710_s2 + $0x400] sm:$0xf]  ;;  %1012 = vst [vmem:[#allocation2 + $0xf8] sm:$0xf] %v958_v26  ;;  %v943_v19 = vsel %vm7236_vm12, %v938_v59, %v942_v16  ;;  %v979_v11 = vrot.slane %v977_v7, 4  ;;  %v982_v46 = vrot.slane %v980_v30, 5  ;;  %v7537_v8 = vor.u32 %v6034_v13, %v4650_v4 }
 0x193   : > { %v5245_v49 = vor.u32 %v6188_v9, %v5244_v40  ;;  %975 = vst [vmem:[#allocation2 + $0x114] sm:$0xf] %v714_v24  ;;  %v4698_v10 = vld [vmem:[#allocation2 + $0xfc] sm:$0xf0]  ;;  %v6344_v31 = vld [vmem:[%s9710_s2 + $0x8ec] sm:$0xf0] }
 0x194   : > { %3119 = vmatmul.bf16.vlgmr.msrb.gmra.mxu3 %v7496_v47  ;;  %3274 = vmatmul.bf16.gmra.mxu0 %v7501_v33  ;;  %9770 = vst [vmem:[#allocation15_spill] sm:$0xff] %v7532_v18  ;;  %v5869_v14 = vor.u32 %v6344_v31, %v5868_v29  ;;  %v6150_v53 = vld [vmem:[%s9710_s2 + $0x2e4] sm:$0xf]  ;;  %v5102_v50 = vld [vmem:[%s9710_s2 + $0x2f0] sm:$0xf0]  ;;  %v983_v62 = vor.u32 %v982_v46, %v979_v11  ;;  %v4585_v9 = vrot.slane %v714_v24, 9 }
 0x195   : > { %3177 = vmatmul.bf16.vlgmr.msra.gmra.mxu1 %v7509_v5  ;;  %3378 = vmatpush.bf16.msrb.mxu0 %v5393_v15  ;;  %997 = vst [vmem:[#allocation2 + $0xf4] sm:$0xf] %v943_v19  ;;  %v6146_v15 = vld [vmem:[%s9710_s2 + $0x2c4] sm:$0xf]  ;;  %v5105_v1 = vor.u32 %v6150_v53, %v5102_v50  ;;  %v5086_v17 = vld [vmem:[%s9710_s2 + $0x2d0] sm:$0xf0] }
 0x196   : > { %6393 = vmatpush.bf16.msra.mxu3 %v6913_v58  ;;  %3089 = vmatpush.bf16.msra.mxu2 %v5245_v49  ;;  %v6049_v58 = vld [vmem:[#allocation2 + $0xdc] sm:$0xf]  ;;  %952 = vst [vmem:[#allocation2 + $0x10c] sm:$0xf] %v943_v19  ;;  %v5852_v34 = vld [vmem:[%s9710_s2 + $0x8c0] sm:$0xf]  ;;  %v5089_v6 = vor.u32 %v6146_v15, %v5086_v17 }
 0x197   : > { %v675_v22 = vld.sshfl [vmem:[#allocation1 + $0x20] sm:$0xff pattern:$0x73625140]  ;;  %v7534_v60 = vor.u32 %v6049_v58, %v4698_v10  ;;  %v6340_v23 = vld [vmem:[%s9710_s2 + $0x8cc] sm:$0xf0]  ;;  %3285 = vmatpush.bf16.msrb.mxu1 %v5105_v1  ;;  %v984_v49 = vrot.slane %v983_v62, 4 }
 0x198   : > { %v715_v57 = vpack.c.bf16 %v675_v22, %v675_v22  ;;  %v5853_v38 = vor.u32 %v6340_v23, %v5852_v34  ;;  %v5070_v36 = vld [vmem:[%s9710_s2 + $0x2b0] sm:$0xf0]  ;;  %v6138_v48 = vld [vmem:[%s9710_s2 + $0x284] sm:$0xf]  ;;  %v4678_v7 = vld [vmem:[#allocation2 + $0xc4] sm:$0xf0] }
 0x199   : > { %3379 = vmatpush.bf16.msrb.mxu0 %v5377_v56  ;;  %9771 = vst [vmem:[#allocation16_spill] sm:$0xff] %v7534_v60  ;;  %v6142_v56 = vld [vmem:[%s9710_s2 + $0x2a4] sm:$0xf]  ;;  %v5054_v55 = vld [vmem:[%s9710_s2 + $0x290] sm:$0xf0] }
 0x19a   : > { %3198 = vmatpush.bf16.msrb.mxu2 %v5869_v14  ;;  %v986_v40 = vshll.u32 %v715_v57, 16  ;;  %v1003_v26 = vrot.slane %v715_v57, 5  ;;  %v5073_v45 = vor.u32 %v6142_v56, %v5070_v36  ;;  %v5057_v30 = vor.u32 %v6138_v48, %v5054_v55  ;;  %v6042_v2 = vld [vmem:[#allocation2 + $0xa4] sm:$0xf]  ;;  %v4686_v59 = vld [vmem:[#allocation2 + $0xcc] sm:$0xf0] }
 0x19b   : > { %3286 = vmatpush.bf16.msrb.mxu1 %v5089_v6  ;;  %v7584_v28 = vor.u32 %v6042_v2, %v4678_v7  ;;  %v6043_v16 = vld [vmem:[#allocation2 + $0xac] sm:$0xf]  ;;  %v5836_v10 = vld [vmem:[%s9710_s2 + $0x8a0] sm:$0xf]  ;;  %v6336_v58 = vld [vmem:[%s9710_s2 + $0x8ac] sm:$0xf0] }
 0x19c   : > { %v988_v51 = vrot.slane %v986_v40, 5  ;;  %v1004_v39 = vsel %vm6884_vm9, %v4585_v9, %v1003_v26  ;;  %v7587_v42 = vor.u32 %v6043_v16, %v4686_v59  ;;  %v5837_v4 = vor.u32 %v6336_v58, %v5836_v10  ;;  %v6086_v19 = vld [vmem:[%s9710_s2 + $0xe4] sm:$0xf]  ;;  %v4846_v11 = vld [vmem:[%s9710_s2 + $0xf0] sm:$0xf0] }
 0x19d   : > { %3013 = vmatmul.bf16.gmra.mxu2 %v7501_v33  ;;  %1013 = vst [vmem:[#allocation2 + $0x11c] sm:$0xf] %v1004_v39  ;;  %v6134_v22 = vld [vmem:[%s9710_s2 + $0x264] sm:$0xf]  ;;  %v4849_v46 = vor.u32 %v6086_v19, %v4846_v11  ;;  %v5038_v13 = vld [vmem:[%s9710_s2 + $0x270] sm:$0xf0] }
 0x19e   : > { %3199 = vmatpush.bf16.msrb.mxu2 %v5853_v38  ;;  %v989_v24 = vsel %vm7236_vm12, %v984_v49, %v988_v51  ;;  %9772 = vst [vmem:[#allocation17_spill] sm:$0xff] %v7584_v28  ;;  %v4852_v29 = vld [vmem:[%s9710_s2 + $0xe8] sm:$0xf]  ;;  %v6089_v31 = vld [vmem:[%s9710_s2 + $0xf4] sm:$0xf0]  ;;  %v5041_v57 = vor.u32 %v6134_v22, %v5038_v13 }
 0x19f   : > { %998 = vst [vmem:[#allocation2 + $0x118] sm:$0xf] %v989_v24  ;;  %3287 = vmatpush.bf16.msrb.mxu1 %v5073_v45  ;;  %v4853_v14 = vor.u32 %v6089_v31, %v4852_v29  ;;  %v6082_v53 = vld [vmem:[%s9710_s2 + $0xc4] sm:$0xf]  ;;  %v4830_v50 = vld [vmem:[%s9710_s2 + $0xd0] sm:$0xf0]  ;;  %3227 = vmatpush.bf16.msrb.mxu3 %v4849_v46 }
 0x1a0   : > { %9773 = vst [vmem:[#allocation18_spill] sm:$0xff] %v7587_v42  ;;  %v6130_v15 = vld [vmem:[%s9710_s2 + $0x244] sm:$0xf]  ;;  %v6028_v1 = vld [vmem:[#allocation2 + $0x30] sm:$0xf0]  ;;  %v4833_v17 = vor.u32 %v6082_v53, %v4830_v50 }
 0x1a1   : > { %v5022_v34 = vld [vmem:[%s9710_s2 + $0x250] sm:$0xf0]  ;;  %v4836_v23 = vld [vmem:[%s9710_s2 + $0xc8] sm:$0xf]  ;;  %v6085_v62 = vld [vmem:[%s9710_s2 + $0xd4] sm:$0xf0]  ;;  %3488 = vmatpush.bf16.msra.mxu0 %v4853_v14 }
 0x1a2   : > { %3200 = vmatpush.bf16.msrb.mxu2 %v5837_v4  ;;  %v5025_v6 = vor.u32 %v6130_v15, %v5022_v34  ;;  %v4837_v40 = vor.u32 %v6085_v62, %v4836_v23  ;;  %v5820_v9 = vld [vmem:[%s9710_s2 + $0x880] sm:$0xf]  ;;  %v6332_v26 = vld [vmem:[%s9710_s2 + $0x88c] sm:$0xf0]  ;;  %v6078_v56 = vld [vmem:[%s9710_s2 + $0xa4] sm:$0xf] }
 0x1a3   : > { %3288 = vmatpush.bf16.msrb.mxu1 %v5057_v30  ;;  %v5821_v36 = vor.u32 %v6332_v26, %v5820_v9  ;;  %v4814_v49 = vld [vmem:[%s9710_s2 + $0xb0] sm:$0xf0]  ;;  %v6126_v51 = vld [vmem:[%s9710_s2 + $0x224] sm:$0xf]  ;;  %v4820_v45 = vld [vmem:[%s9710_s2 + $0xa8] sm:$0xf]  ;;  %3228 = vmatpush.bf16.msrb.mxu3 %v4833_v17 }
 0x1a4   : > { %3124 = vmatmul.bf16.gmra.mxu3 %v7532_v18  ;;  %3279 = vmatmul.bf16.gmra.mxu0 %v7534_v60  ;;  %v5006_v39 = vld [vmem:[%s9710_s2 + $0x230] sm:$0xf0]  ;;  %v6081_v24 = vld [vmem:[%s9710_s2 + $0xb4] sm:$0xf0]  ;;  %v4817_v55 = vor.u32 %v6078_v56, %v4814_v49  ;;  %v6074_v59 = vld [vmem:[%s9710_s2 + $0x84] sm:$0xf] }
 0x1a5   : > { %3182 = vmatmul.bf16.gmra.mxu1 %v7537_v8  ;;  %v7582_v37 = vpop.f32.mrf.mxu1  ;;  %v4604_v48 = vld [vmem:[#allocation2 + $0x10] sm:$0xf]  ;;  %3489 = vmatpush.bf16.msra.mxu0 %v4837_v40  ;;  %v5009_v30 = vor.u32 %v6126_v51, %v5006_v39  ;;  %v4821_v2 = vor.u32 %v6081_v24, %v4820_v45  ;;  %v4798_v16 = vld [vmem:[%s9710_s2 + $0x90] sm:$0xf0]  ;;  %v4804_v58 = vld [vmem:[%s9710_s2 + $0x88] sm:$0xf] }
 0x1a6   : > { %3201 = vmatpush.bf16.msrb.mxu2 %v5821_v36  ;;  %v7659_v7 = vor.u32 %v6028_v1, %v4604_v48  ;;  %v4714_v10 = vld [vmem:[#allocation2 + $0x10c] sm:$0xf0]  ;;  %v6122_v19 = vld [vmem:[%s9710_s2 + $0x204] sm:$0xf]  ;;  %v4990_v11 = vld [vmem:[%s9710_s2 + $0x210] sm:$0xf0]  ;;  %v4801_v13 = vor.u32 %v6074_v59, %v4798_v16 }
 0x1a7   : > { %3289 = vmatpush.bf16.msrb.mxu1 %v5041_v57  ;;  %v6077_v4 = vld [vmem:[%s9710_s2 + $0x94] sm:$0xf0]  ;;  %3229 = vmatpush.bf16.msrb.mxu3 %v4817_v55  ;;  %v6051_v22 = vld [vmem:[#allocation2 + $0xec] sm:$0xf]  ;;  %v4722_v46 = vld [vmem:[#allocation2 + $0x114] sm:$0xf0]  ;;  %v4993_v53 = vor.u32 %v6122_v19, %v4990_v11 }
 0x1a8   : > { %9774 = vst [vmem:[#allocation19_spill] sm:$0xff] %v7659_v7  ;;  %v7680_v29 = vor.u32 %v6051_v22, %v4714_v10  ;;  %v4805_v31 = vor.u32 %v6077_v4, %v4804_v58  ;;  %v6052_v14 = vld [vmem:[#allocation2 + $0xf4] sm:$0xf]  ;;  %v5804_v15 = vld [vmem:[%s9710_s2 + $0x860] sm:$0xf] }
 0x1a9   : > { %3490 = vmatpush.bf16.msra.mxu0 %v4821_v2  ;;  %v7685_v50 = vor.u32 %v6052_v14, %v4722_v46  ;;  %v6328_v1 = vld [vmem:[%s9710_s2 + $0x86c] sm:$0xf0]  ;;  %v6070_v17 = vld [vmem:[%s9710_s2 + $0x64] sm:$0xf]  ;;  %v4782_v23 = vld [vmem:[%s9710_s2 + $0x70] sm:$0xf0] }
 0x1aa   : > { %9775 = vst [vmem:[#allocation20_spill] sm:$0xff] %v7680_v29  ;;  %v5805_v34 = vor.u32 %v6328_v1, %v5804_v15  ;;  %v4788_v62 = vld [vmem:[%s9710_s2 + $0x68] sm:$0xf]  ;;  %v4785_v40 = vor.u32 %v6070_v17, %v4782_v23  ;;  %v6066_v26 = vld [vmem:[%s9710_s2 + $0x44] sm:$0xf] }
 0x1ab   : > { %3290 = vmatpush.bf16.msrb.mxu1 %v5025_v6  ;;  %9776 = vst [vmem:[#allocation21_spill] sm:$0xff] %v7685_v50  ;;  %3230 = vmatpush.bf16.msrb.mxu3 %v4801_v13  ;;  %v6073_v6 = vld [vmem:[%s9710_s2 + $0x74] sm:$0xf0]  ;;  %v4766_v56 = vld [vmem:[%s9710_s2 + $0x50] sm:$0xf0] }
 0x1ac   : > { %v4789_v9 = vor.u32 %v6073_v6, %v4788_v62  ;;  %v4772_v36 = vld [vmem:[%s9710_s2 + $0x48] sm:$0xf]  ;;  %3202 = vmatpush.bf16.msrb.mxu2 %v5805_v34  ;;  %v6069_v49 = vld [vmem:[%s9710_s2 + $0x54] sm:$0xf0]  ;;  %v5788_v51 = vld [vmem:[%s9710_s2 + $0x840] sm:$0xf]  ;;  %v4769_v24 = vor.u32 %v6066_v26, %v4766_v56 }
 0x1ad   : > { %3018 = vmatmul.bf16.gmra.mxu2 %v7534_v60  ;;  %v7633_v38 = vpop.f32.mrf.mxu1  ;;  %3491 = vmatpush.bf16.msra.mxu0 %v4805_v31  ;;  %v6324_v39 = vld [vmem:[%s9710_s2 + $0x84c] sm:$0xf0]  ;;  %v6037_v55 = vld [vmem:[#allocation2 + $0x78] sm:$0xf0]  ;;  %v4750_v59 = vld [vmem:[%s9710_s2 + $0x30] sm:$0xf0] }
 0x1ae   : > { %v5789_v45 = vor.u32 %v6324_v39, %v5788_v51  ;;  %v6062_v2 = vld [vmem:[%s9710_s2 + $0x24] sm:$0xf]  ;;  %v4756_v58 = vld [vmem:[%s9710_s2 + $0x28] sm:$0xf]  ;;  %v6065_v4 = vld [vmem:[%s9710_s2 + $0x34] sm:$0xf0] }
 0x1af   : > { %3291 = vmatpush.bf16.msrb.mxu1 %v5009_v30  ;;  %3231 = vmatpush.bf16.msrb.mxu3 %v4785_v40  ;;  %v4773_v30 = vor.u32 %v6069_v49, %v4772_v36  ;;  %v4640_v19 = vld [vmem:[#allocation2 + $0x58] sm:$0xf]  ;;  %v4753_v22 = vor.u32 %v6062_v2, %v4750_v59  ;;  %v4757_v46 = vor.u32 %v6065_v4, %v4756_v58  ;;  %v6058_v13 = vld [vmem:[%s9710_s2 + $0x4] sm:$0xf]  ;;  %v4734_v31 = vld [vmem:[%s9710_s2 + $0x10] sm:$0xf0] }
 0x1b0   : > { %3203 = vmatpush.bf16.msrb.mxu2 %v5789_v45  ;;  %v7743_v11 = vor.u32 %v6037_v55, %v4640_v19  ;;  %v6047_v14 = vld [vmem:[#allocation2 + $0xc8] sm:$0xf0]  ;;  %v4737_v15 = vor.u32 %v6058_v13, %v4734_v31  ;;  %v4740_v17 = vld [vmem:[%s9710_s2 + $0x8] sm:$0xf]  ;;  %v6061_v34 = vld [vmem:[%s9710_s2 + $0x14] sm:$0xf0] }
 0x1b1   : > { %3492 = vmatpush.bf16.msra.mxu0 %v4789_v9  ;;  %v4741_v62 = vor.u32 %v6061_v34, %v4740_v17  ;;  %v5772_v40 = vld [vmem:[%s9710_s2 + $0x820] sm:$0xf]  ;;  %v6320_v9 = vld [vmem:[%s9710_s2 + $0x82c] sm:$0xf0]  ;;  %v6046_v36 = vld [vmem:[#allocation2 + $0xc0] sm:$0xf0] }
 0x1b2   : > { %9777 = vst [vmem:[#allocation22_spill] sm:$0xff] %v7743_v11  ;;  %v5773_v56 = vor.u32 %v6320_v9, %v5772_v40  ;;  %v5756_v49 = vld [vmem:[%s9710_s2 + $0x800] sm:$0xf]  ;;  %v6316_v51 = vld [vmem:[%s9710_s2 + $0x80c] sm:$0xf0] }
 0x1b3   : > { %3292 = vmatpush.bf16.msrb.mxu1 %v4993_v53  ;;  %3232 = vmatpush.bf16.msrb.mxu3 %v4769_v24  ;;  %v4684_v53 = vld [vmem:[#allocation2 + $0xa8] sm:$0xf]  ;;  %v5757_v45 = vor.u32 %v6316_v51, %v5756_v49  ;;  %v4676_v24 = vld [vmem:[#allocation2 + $0xa0] sm:$0xf]  ;;  %v6056_v2 = vld [vmem:[#allocation2 + $0x110] sm:$0xf0] }
 0x1b4   : > { %3129 = vmatmul.bf16.gmra.mxu3 %v7584_v28  ;;  %3380 = vmatmul.bf16.vlgmr.msrb.gmra.mxu0 %v7496_v47  ;;  %v7752_v1 = vor.u32 %v6047_v14, %v4684_v53  ;;  %v7783_v55 = vor.u32 %v6046_v36, %v4676_v24  ;;  %v4720_v4 = vld [vmem:[#allocation2 + $0xf0] sm:$0xf]  ;;  %v5230_v13 = vld [vmem:[%s9710_s2 + $0x3f0] sm:$0xf0]  ;;  %v6278_v14 = vld [vmem:[%s9710_s2 + $0x6e4] sm:$0xf] }
 0x1b5   : > { %3187 = vmatmul.bf16.gmra.mxu1 %v7587_v42  ;;  %3493 = vmatpush.bf16.msra.mxu0 %v4773_v30  ;;  %v7792_v19 = vor.u32 %v6056_v2, %v4720_v4  ;;  %v5614_v53 = vld [vmem:[%s9710_s2 + $0x6f0] sm:$0xf0]  ;;  %v6214_v17 = vld [vmem:[%s9710_s2 + $0x4e4] sm:$0xf] }
 0x1b6   : > { %9778 = vst [vmem:[#allocation23_spill] sm:$0xff] %v7752_v1  ;;  %3204 = vmatpush.bf16.msrb.mxu2 %v5773_v56  ;;  %v5358_v34 = vld [vmem:[%s9710_s2 + $0x4f0] sm:$0xf0]  ;;  %v6274_v49 = vld [vmem:[%s9710_s2 + $0x6c4] sm:$0xf] }
 0x1b7   : > { %3233 = vmatpush.bf16.msrb.mxu3 %v4753_v22  ;;  %9779 = vst [vmem:[#allocation24_spill] sm:$0xff] %v7792_v19  ;;  %v5361_v9 = vor.u32 %v6214_v17, %v5358_v34  ;;  %v6055_v36 = vld [vmem:[#allocation2 + $0x108] sm:$0xf0]  ;;  %v6210_v17 = vld [vmem:[%s9710_s2 + $0x4c4] sm:$0xf] }
 0x1b8   : > { %v7733_v16 = vpop.f32.mrf.mxu3  ;;  %v5598_v51 = vld [vmem:[%s9710_s2 + $0x6d0] sm:$0xf0] }
 0x1b9   : > { %3494 = vmatpush.bf16.msra.mxu0 %v4757_v46  ;;  %v6182_v46 = vld [vmem:[%s9710_s2 + $0x3e4] sm:$0xf]  ;;  %v5601_v2 = vor.u32 %v6274_v49, %v5598_v51  ;;  %v5214_v4 = vld [vmem:[%s9710_s2 + $0x3d0] sm:$0xf0] }
 0x1ba   : > { %3205 = vmatpush.bf16.msrb.mxu2 %v5757_v45  ;;  %v5233_v31 = vor.u32 %v6182_v46, %v5230_v13  ;;  %v6178_v45 = vld [vmem:[%s9710_s2 + $0x3c4] sm:$0xf]  ;;  %v5582_v13 = vld [vmem:[%s9710_s2 + $0x6b0] sm:$0xf0] }
 0x1bb   : > { %v7682_v57 = vpop.f32.mrf.mxu1  ;;  %3234 = vmatpush.bf16.msrb.mxu3 %v4737_v15  ;;  %v5617_v15 = vor.u32 %v6278_v14, %v5614_v53  ;;  %v6270_v46 = vld [vmem:[%s9710_s2 + $0x6a4] sm:$0xf]  ;;  %v5217_v14 = vor.u32 %v6178_v45, %v5214_v4  ;;  %v5342_v34 = vld [vmem:[%s9710_s2 + $0x4d0] sm:$0xf0] }
 0x1bc   : > { %v5566_v45 = vld [vmem:[%s9710_s2 + $0x690] sm:$0xf0] }
 0x1bd   : > { %3090 = vmatmul.bf16.vlgmr.msra.gmra.mxu2 %v7659_v7  ;;  %3495 = vmatpush.bf16.msra.mxu0 %v4741_v62 }
 0x1be   : > { %v7725_v48 = vpop.f32.mrf.mxu0  ;;  %3314 = vmatpush.bf16.msra.mxu2 %v5233_v31  ;;  %3401 = vmatpush.bf16.msra.mxu1 %v5617_v15  ;;  %v4712_v31 = vld [vmem:[#allocation2 + $0xe8] sm:$0xf]  ;;  %v5585_v15 = vor.u32 %v6270_v46, %v5582_v13  ;;  %v6174_v13 = vld [vmem:[%s9710_s2 + $0x3a4] sm:$0xf] }
 0x1bf   : > { %v7843_v53 = vor.u32 %v6055_v36, %v4712_v31  ;;  %v6266_v36 = vld [vmem:[%s9710_s2 + $0x684] sm:$0xf]  ;;  %v5198_v31 = vld [vmem:[%s9710_s2 + $0x3b0] sm:$0xf0] }
 0x1c0   : > { %v7772_v26 = vpop.f32.mrf.mxu3  ;;  %v5569_v46 = vor.u32 %v6266_v36, %v5566_v45  ;;  %v6217_v36 = vld [vmem:[%s9710_s2 + $0x4f4] sm:$0xf0] }
 0x1c1   : > { %9780 = vst [vmem:[#allocation25_spill] sm:$0xff] %v7843_v53 }
 0x1c2   : > { %3402 = vmatpush.bf16.msra.mxu1 %v5601_v2  ;;  %3315 = vmatpush.bf16.msra.mxu2 %v5217_v14  ;;  %v5201_v14 = vor.u32 %v6174_v13, %v5198_v31  ;;  %v5326_v13 = vld [vmem:[%s9710_s2 + $0x4b0] sm:$0xf0] }
 0x1c3   : > { %v7735_v10 = vpop.f32.mrf.mxu1 }
 0x1c4   : > { %3134 = vmatmul.bf16.gmra.mxu3 %v7680_v29  ;;  %3385 = vmatmul.bf16.gmra.mxu0 %v7532_v18 }
 0x1c5   : > { %3192 = vmatmul.bf16.gmra.mxu1 %v7685_v50 }
 0x1c6   : > { %v7763_v6 = vpop.f32.mrf.mxu0  ;;  %3403 = vmatpush.bf16.msra.mxu1 %v5585_v15  ;;  %v6262_v15 = vld [vmem:[%s9710_s2 + $0x664] sm:$0xf]  ;;  %3316 = vmatpush.bf16.msra.mxu2 %v5201_v14 }
 0x1c7   : > { %v6258_v14 = vld [vmem:[%s9710_s2 + $0x644] sm:$0xf] }
 0x1ca   : > { %3404 = vmatpush.bf16.msra.mxu1 %v5569_v46  ;;  %v6206_v46 = vld [vmem:[%s9710_s2 + $0x4a4] sm:$0xf] }
 0x1cb   : > { %v7760_v23 = vpop.f32.mrf.mxu1  ;;  %v5329_v31 = vor.u32 %v6206_v46, %v5326_v13  ;;  %v6213_v46 = vld [vmem:[%s9710_s2 + $0x4d4] sm:$0xf0]  ;;  %v6170_v13 = vld [vmem:[%s9710_s2 + $0x384] sm:$0xf] }
 0x1cd   : > { %3095 = vmatmul.bf16.gmra.mxu2 %v7743_v11 }
 0x1d0   : > { %v7788_v59 = vpop.f32.mrf.mxu3 }
 0x1d3   : > { %v7781_v39 = vpop.f32.mrf.mxu1 }
 0x1d4   : > { %3158 = vmatmul.bf16.vlgmr.msra.gmra.mxu3 %v7752_v1  ;;  %3390 = vmatmul.bf16.gmra.mxu0 %v7584_v28 }
 0x1d5   : > { %3293 = vmatmul.bf16.vlgmr.msrb.gmra.mxu1 %v6989_v27  ;;  %3343 = vmatpush.bf16.msra.mxu3 %v5361_v9  ;;  %v5345_v9 = vor.u32 %v6210_v17, %v5342_v34  ;;  %v5550_v17 = vld [vmem:[%s9710_s2 + $0x670] sm:$0xf0]  ;;  %v5364_v34 = vld [vmem:[%s9710_s2 + $0x4e8] sm:$0xf]  ;;  %v6254_v27 = vld [vmem:[%s9710_s2 + $0x624] sm:$0xf] }
 0x1d6   : > { %v5365_v45 = vor.u32 %v6217_v36, %v5364_v34  ;;  %v5534_v34 = vld [vmem:[%s9710_s2 + $0x650] sm:$0xf0]  ;;  %v5348_v36 = vld [vmem:[%s9710_s2 + $0x4c8] sm:$0xf] }
 0x1d7   : > { %v7785_v30 = vpop.f32.mrf.mxu0 }
 0x1d8   : > { %v7821_v56 = vpop.f32.mrf.mxu3  ;;  %3604 = vmatpush.bf16.msrb.mxu0 %v5365_v45  ;;  %v5537_v45 = vor.u32 %v6258_v14, %v5534_v34  ;;  %v5518_v14 = vld [vmem:[%s9710_s2 + $0x630] sm:$0xf0]  ;;  %v5332_v34 = vld [vmem:[%s9710_s2 + $0x4a8] sm:$0xf] }
 0x1d9   : > { %3344 = vmatpush.bf16.msra.mxu3 %v5345_v9  ;;  %v5553_v9 = vor.u32 %v6262_v15, %v5550_v17  ;;  %v4620_v17 = vld [vmem:[#allocation2 + $0x20] sm:$0xf]  ;;  %v5521_v18 = vor.u32 %v6254_v27, %v5518_v14 }
 0x1db   : > { %v7790_v58 = vpop.f32.mrf.mxu2  ;;  %v7794_v22 = vpop.f32.mrf.mxu1  ;;  %3405 = vmatpush.bf16.msra.mxu1 %v5553_v9 }
 0x1dd   : > { %3100 = vmatmul.bf16.gmra.mxu2 %v7783_v55  ;;  %3345 = vmatpush.bf16.msra.mxu3 %v5329_v31  ;;  %v5182_v31 = vld [vmem:[%s9710_s2 + $0x390] sm:$0xf0] }
 0x1df   : > { %v7817_v62 = vpop.f32.mrf.mxu0  ;;  %3406 = vmatpush.bf16.msra.mxu1 %v5537_v45  ;;  %v5316_v45 = vld [vmem:[%s9710_s2 + $0x488] sm:$0xf] }
 0x1e3   : > { %v7819_v40 = vpop.f32.mrf.mxu2  ;;  %v7832_v24 = vpop.f32.mrf.mxu1  ;;  %3407 = vmatpush.bf16.msra.mxu1 %v5521_v18 }
 0x1e4   : > { %3163 = vmatmul.bf16.gmra.mxu3 %v7792_v19  ;;  %3395 = vmatmul.bf16.gmra.mxu0 %v7680_v29  ;;  %v5185_v29 = vor.u32 %v6170_v13, %v5182_v31  ;;  %v6202_v13 = vld [vmem:[%s9710_s2 + $0x484] sm:$0xf] }
 0x1e5   : > { %3298 = vmatmul.bf16.gmra.mxu1 %v7116_v12  ;;  %v5349_v12 = vor.u32 %v6213_v46, %v5348_v36  ;;  %v6209_v36 = vld [vmem:[%s9710_s2 + $0x4b4] sm:$0xf0] }
 0x1e6   : > { %3317 = vmatpush.bf16.msra.mxu2 %v5185_v29  ;;  %v5333_v46 = vor.u32 %v6209_v36, %v5332_v34  ;;  %v5502_v29 = vld [vmem:[%s9710_s2 + $0x610] sm:$0xf0]  ;;  %v6205_v36 = vld [vmem:[%s9710_s2 + $0x494] sm:$0xf0] }
 0x1e7   : > { %3605 = vmatpush.bf16.msrb.mxu0 %v5349_v12  ;;  %v6250_v12 = vld [vmem:[%s9710_s2 + $0x604] sm:$0xf] }
 0x1e8   : > { %v5505_v34 = vor.u32 %v6250_v12, %v5502_v29  ;;  %v5294_v12 = vld [vmem:[%s9710_s2 + $0x470] sm:$0xf0]  ;;  %v5300_v29 = vld [vmem:[%s9710_s2 + $0x468] sm:$0xf] }
 0x1e9   : > { %v7862_v2 = vpop.f32.mrf.mxu3 }
 0x1ea   : > { %3408 = vmatpush.bf16.msra.mxu1 %v5505_v34  ;;  %v6194_v34 = vld [vmem:[%s9710_s2 + $0x444] sm:$0xf] }
 0x1eb   : > { %3606 = vmatpush.bf16.msrb.mxu0 %v5333_v46  ;;  %v5317_v46 = vor.u32 %v6205_v36, %v5316_v45  ;;  %v6201_v45 = vld [vmem:[%s9710_s2 + $0x474] sm:$0xf0] }
 0x1ec   : > { %v7864_v4 = vpop.f32.mrf.mxu1 }
 0x1ed   : > { %3105 = vmatmul.bf16.gmra.mxu2 %v7843_v53 }
 0x1ef   : > { %3607 = vmatpush.bf16.msrb.mxu0 %v5317_v46  ;;  %v5284_v46 = vld [vmem:[%s9710_s2 + $0x448] sm:$0xf] }
 0x1f0   : > { %v7854_v51 = vpop.f32.mrf.mxu2 }
 0x1f1   : > { %v7852_v49 = vpop.f32.mrf.mxu0  ;;  %v7926_v28 = vpop.f32.mrf.mxu3 }
 0x1f4   : > { %3235 = vmatmul.bf16.vlgmr.msrb.gmra.mxu3 %v6927_v21  ;;  %3496 = vmatmul.bf16.vlgmr.msra.gmra.mxu0 %v6927_v21  ;;  %v6030_v21 = vld [vmem:[#allocation2 + $0x40] sm:$0xf0]  ;;  %v7906_v9 = vpop.f32.mrf.mxu1 }
 0x1f5   : > { %3303 = vmatmul.bf16.gmra.mxu1 %v7246_v43  ;;  %v7928_v50 = vor.u32 %v6030_v21, %v4620_v17  ;;  %v5310_v21 = vld [vmem:[%s9710_s2 + $0x490] sm:$0xf0] }
 0x1f6   : > { %v5313_v17 = vor.u32 %v6202_v13, %v5310_v21  ;;  %v6166_v13 = vld [vmem:[%s9710_s2 + $0x364] sm:$0xf]  ;;  %v5166_v21 = vld [vmem:[%s9710_s2 + $0x370] sm:$0xf0] }
 0x1f7   : > { %9782 = vst [vmem:[#allocation27_spill] sm:$0xff] %v7928_v50 }
 0x1f8   : > { %v7895_v15 = vpop.f32.mrf.mxu2  ;;  %3346 = vmatpush.bf16.msra.mxu3 %v5313_v17 }
 0x1f9   : > { %v7893_v43 = vpop.f32.mrf.mxu0 }
 0x1fa   : > { %9781 = vst [vmem:[#allocation26_spill] sm:$0xff] %v7893_v43 }
 0x1fd   : > { %3206 = vmatmul.bf16.vlgmr.msrb.gmra.mxu2 %v7928_v50 }
 0x200   : > { %v3004_v27 = vpop.f32.mrf.mxu2 }
 0x201   : > { %v7949_v31 = vpop.f32.mrf.mxu0  ;;  %v3005_v14 = vadd.f32 %v3004_v27, %v7582_v37  ;;  %v6198_v37 = vld [vmem:[%s9710_s2 + $0x464] sm:$0xf]  ;;  %v5169_v27 = vor.u32 %v6166_v13, %v5166_v21  ;;  %v5278_v13 = vld [vmem:[%s9710_s2 + $0x450] sm:$0xf0] }
 0x202   : > { %9783 = vst [vmem:[#allocation28_spill] sm:$0xff] %v7949_v31  ;;  %v7952_v18 = vpop.f32.mrf.mxu1  ;;  %v5297_v36 = vor.u32 %v6198_v37, %v5294_v12  ;;  %v5281_v21 = vor.u32 %v6194_v34, %v5278_v13  ;;  %v6197_v37 = vld [vmem:[%s9710_s2 + $0x454] sm:$0xf0]  ;;  %v5262_v34 = vld [vmem:[%s9710_s2 + $0x430] sm:$0xf0] }
 0x203   : > { %v7969_v17 = vadd.f32 %v7733_v16, %v3005_v14  ;;  %v5301_v16 = vor.u32 %v6201_v45, %v5300_v29  ;;  %3318 = vmatpush.bf16.msra.mxu2 %v5169_v27  ;;  %v6162_v27 = vld [vmem:[%s9710_s2 + $0x344] sm:$0xf]  ;;  %v5285_v45 = vor.u32 %v6197_v37, %v5284_v46  ;;  %v4656_v13 = vld [vmem:[#allocation2 + $0x68] sm:$0xf] }
 0x204   : > { %3240 = vmatmul.bf16.gmra.mxu3 %v7049_v52  ;;  %3501 = vmatmul.bf16.gmra.mxu0 %v7049_v52  ;;  %v6039_v52 = vld [vmem:[#allocation2 + $0x88] sm:$0xf0] }
 0x205   : > { %3308 = vmatmul.bf16.gmra.mxu1 %v7426_v41  ;;  %3347 = vmatpush.bf16.msra.mxu3 %v5297_v36  ;;  %v5150_v36 = vld [vmem:[%s9710_s2 + $0x350] sm:$0xf0]  ;;  %v8021_v43 = vor.u32 %v6039_v52, %v4656_v13  ;;  %v5252_v52 = vld [vmem:[%s9710_s2 + $0x408] sm:$0xf] }
 0x206   : > { %3608 = vmatpush.bf16.msrb.mxu0 %v5301_v16  ;;  %v6190_v16 = vld [vmem:[%s9710_s2 + $0x424] sm:$0xf]  ;;  %v5153_v41 = vor.u32 %v6162_v27, %v5150_v36 }
 0x207   : > { %v7981_v14 = vpop.f32.mrf.mxu3  ;;  %v5265_v42 = vor.u32 %v6190_v16, %v5262_v34  ;;  %9785 = vst [vmem:[#allocation30_spill] sm:$0xff] %v8021_v43  ;;  %v6186_v36 = vld [vmem:[%s9710_s2 + $0x404] sm:$0xf]  ;;  %v5246_v16 = vld [vmem:[%s9710_s2 + $0x410] sm:$0xf0] }
 0x208   : > { %v3006_v31 = vpop.f32.mrf.mxu2  ;;  %3319 = vmatpush.bf16.msra.mxu2 %v5153_v41  ;;  %v6189_v41 = vld [vmem:[%s9710_s2 + $0x414] sm:$0xf0] }
 0x209   : > { %v3007_v12 = vadd.f32 %v3006_v31, %v7633_v38  ;;  %3348 = vmatpush.bf16.msra.mxu3 %v5281_v21  ;;  %v5268_v38 = vld [vmem:[%s9710_s2 + $0x428] sm:$0xf]  ;;  %v6193_v31 = vld [vmem:[%s9710_s2 + $0x434] sm:$0xf0]  ;;  %v8016_v46 = vpop.f32.mrf.mxu0  ;;  %v5253_v13 = vor.u32 %v6189_v41, %v5252_v52  ;;  %v6154_v52 = vld [vmem:[%s9710_s2 + $0x304] sm:$0xf] }
 0x20a   : > { %v7999_v29 = vpop.f32.mrf.mxu1  ;;  %9784 = vst [vmem:[#allocation29_spill] sm:$0xff] %v8016_v46  ;;  %3609 = vmatpush.bf16.msrb.mxu0 %v5285_v45  ;;  %v5269_v21 = vor.u32 %v6193_v31, %v5268_v38  ;;  %v5134_v38 = vld [vmem:[%s9710_s2 + $0x330] sm:$0xf0] }
 0x20b   : > { %v8019_v37 = vadd.f32 %v7772_v26, %v3007_v12  ;;  %v5249_v26 = vor.u32 %v6186_v36, %v5246_v16 }
 0x20d   : > { %3211 = vmatmul.bf16.gmra.mxu2 %v8021_v43  ;;  %3349 = vmatpush.bf16.msra.mxu3 %v5265_v42  ;;  %v6158_v42 = vld [vmem:[%s9710_s2 + $0x324] sm:$0xf] }
 0x20e   : > { %3610 = vmatpush.bf16.msrb.mxu0 %v5269_v21 }
 0x20f   : > { %v8023_v27 = vpop.f32.mrf.mxu3 }
 0x210   : > { %v3009_v12 = vpop.f32.mrf.mxu2 }
 0x211   : > { %v3010_v45 = vadd.f32 %v3009_v12, %v7682_v57  ;;  %3350 = vmatpush.bf16.msra.mxu3 %v5249_v26  ;;  %v5137_v57 = vor.u32 %v6158_v42, %v5134_v38  ;;  %v8053_v21 = vpop.f32.mrf.mxu0  ;;  %v6048_v12 = vld [vmem:[#allocation2 + $0xd0] sm:$0xf0] }
 0x212   : > { %v8039_v34 = vpop.f32.mrf.mxu1  ;;  %3611 = vmatpush.bf16.msrb.mxu0 %v5253_v13  ;;  %9786 = vst [vmem:[#allocation31_spill] sm:$0xff] %v8053_v21  ;;  %v4692_v13 = vld [vmem:[#allocation2 + $0xb0] sm:$0xf] }
 0x213   : > { %v8050_v31 = vadd.f32 %v7788_v59, %v3010_v45  ;;  %3320 = vmatpush.bf16.msra.mxu2 %v5137_v57  ;;  %v5118_v59 = vld [vmem:[%s9710_s2 + $0x310] sm:$0xf0]  ;;  %v8069_v38 = vor.u32 %v6048_v12, %v4692_v13  ;;  %v6057_v13 = vld [vmem:[#allocation2 + $0x118] sm:$0xf0] }
 0x214   : > { %3245 = vmatmul.bf16.gmra.mxu3 %v7175_v35  ;;  %3506 = vmatmul.bf16.gmra.mxu0 %v7175_v35  ;;  %v5121_v45 = vor.u32 %v6154_v52, %v5118_v59 }
 0x215   : > { %3409 = vmatmul.bf16.vlgmr.msra.gmra.mxu1 %v7062_v54 }
 0x217   : > { %v8055_v36 = vpop.f32.mrf.mxu3  ;;  %3321 = vmatpush.bf16.msra.mxu2 %v5121_v45 }
 0x218   : > { %v3011_v16 = vpop.f32.mrf.mxu2 }
 0x219   : > { %v3012_v26 = vadd.f32 %v3011_v16, %v7735_v10  ;;  %v8074_v54 = vpop.f32.mrf.mxu0  ;;  %v5742_v16 = vld [vmem:[%s9710_s2 + $0x7f0] sm:$0xf0] }
 0x21a   : > { %v8064_v41 = vpop.f32.mrf.mxu1  ;;  %9787 = vst [vmem:[#allocation32_spill] sm:$0xff] %v8074_v54  ;;  %v4728_v54 = vld [vmem:[#allocation2 + $0xf8] sm:$0xf] }
 0x21b   : > { %v8067_v42 = vadd.f32 %v7821_v56, %v3012_v26  ;;  %v6310_v56 = vld [vmem:[%s9710_s2 + $0x7e4] sm:$0xf] }
 0x21c   : > { %v5745_v52 = vor.u32 %v6310_v56, %v5742_v16  ;;  %v4964_v16 = vld [vmem:[%s9710_s2 + $0x1c8] sm:$0xf] }
 0x21d   : > { %3216 = vmatmul.bf16.gmra.mxu2 %v8069_v38 }
 0x21e   : > { %3430 = vmatpush.bf16.msrb.mxu2 %v5745_v52  ;;  %v6117_v52 = vld [vmem:[%s9710_s2 + $0x1d4] sm:$0xf0] }
 0x21f   : > { %v8071_v57 = vpop.f32.mrf.mxu3 }
 0x220   : > { %v3014_v35 = vpop.f32.mrf.mxu2 }
 0x221   : > { %v3015_v21 = vadd.f32 %v3014_v35, %v7790_v58  ;;  %v4980_v35 = vld [vmem:[%s9710_s2 + $0x1e8] sm:$0xf]  ;;  %v6121_v58 = vld [vmem:[%s9710_s2 + $0x1f4] sm:$0xf0] }
 0x222   : > { %v8077_v10 = vpop.f32.mrf.mxu1  ;;  %v4981_v59 = vor.u32 %v6121_v58, %v4980_v35  ;;  %v6306_v35 = vld [vmem:[%s9710_s2 + $0x7c4] sm:$0xf]  ;;  %v8114_v58 = vpop.f32.mrf.mxu0 }
 0x223   : > { %v8088_v12 = vadd.f32 %v7862_v2, %v3015_v21  ;;  %v6342_v2 = vld [vmem:[%s9710_s2 + $0x8e4] sm:$0xf]  ;;  %v5870_v21 = vld [vmem:[%s9710_s2 + $0x8f0] sm:$0xf0]  ;;  %9788 = vst [vmem:[#allocation33_spill] sm:$0xff] %v8114_v58 }
 0x224   : > { %3250 = vmatmul.bf16.gmra.mxu3 %v7301_v61  ;;  %3511 = vmatmul.bf16.gmra.mxu0 %v7301_v61  ;;  %v5873_v45 = vor.u32 %v6342_v2, %v5870_v21  ;;  %v4965_v21 = vor.u32 %v6117_v52, %v4964_v16  ;;  %v6113_v61 = vld [vmem:[%s9710_s2 + $0x1b4] sm:$0xf0]  ;;  %v6338_v52 = vld [vmem:[%s9710_s2 + $0x8c4] sm:$0xf] }
 0x225   : > { %3414 = vmatmul.bf16.gmra.mxu1 %v7190_v25  ;;  %v4948_v25 = vld [vmem:[%s9710_s2 + $0x1a8] sm:$0xf] }
 0x226   : > { %3517 = vmatpush.bf16.msrb.mxu1 %v4981_v59  ;;  %3459 = vmatpush.bf16.msrb.mxu3 %v5873_v45  ;;  %v5726_v45 = vld [vmem:[%s9710_s2 + $0x7d0] sm:$0xf0] }
 0x227   : > { %v8097_v26 = vpop.f32.mrf.mxu3  ;;  %v5729_v46 = vor.u32 %v6306_v35, %v5726_v45  ;;  %v5854_v35 = vld [vmem:[%s9710_s2 + $0x8d0] sm:$0xf0] }
 0x228   : > { %v3016_v56 = vpop.f32.mrf.mxu2  ;;  %v5857_v45 = vor.u32 %v6338_v52, %v5854_v35  ;;  %v4916_v35 = vld [vmem:[%s9710_s2 + $0x168] sm:$0xf] }
 0x229   : > { %v3017_v59 = vadd.f32 %v3016_v56, %v7819_v40  ;;  %v8131_v40 = vor.u32 %v6057_v13, %v4728_v54  ;;  %v4949_v56 = vor.u32 %v6113_v61, %v4948_v25  ;;  %3431 = vmatpush.bf16.msrb.mxu2 %v5729_v46  ;;  %v4932_v54 = vld [vmem:[%s9710_s2 + $0x188] sm:$0xf]  ;;  %v6109_v25 = vld [vmem:[%s9710_s2 + $0x194] sm:$0xf0] }
 0x22a   : > { %v8117_v2 = vpop.f32.mrf.mxu1  ;;  %3518 = vmatpush.bf16.msrb.mxu1 %v4965_v21  ;;  %3460 = vmatpush.bf16.msrb.mxu3 %v5857_v45  ;;  %v4933_v13 = vor.u32 %v6109_v25, %v4932_v54  ;;  %v5710_v21 = vld [vmem:[%s9710_s2 + $0x7b0] sm:$0xf0]  ;;  %v6105_v45 = vld [vmem:[%s9710_s2 + $0x174] sm:$0xf0] }
 0x22b   : > { %v8129_v58 = vadd.f32 %v7926_v28, %v3017_v59  ;;  %v6302_v59 = vld [vmem:[%s9710_s2 + $0x7a4] sm:$0xf]  ;;  %v4917_v54 = vor.u32 %v6105_v45, %v4916_v35  ;;  %v4900_v45 = vld [vmem:[%s9710_s2 + $0x148] sm:$0xf] }
 0x22d   : > { %3221 = vmatmul.bf16.gmra.mxu2 %v8131_v40 }
 0x22e   : > { %3519 = vmatpush.bf16.msrb.mxu1 %v4949_v56  ;;  %v8158_v56 = vpop.f32.mrf.mxu0 }
 0x22f   : > { %v8133_v16 = vpop.f32.mrf.mxu3  ;;  %9789 = vst [vmem:[#allocation34_spill] sm:$0xff] %v8158_v56 }
 0x230   : > { %v3019_v28 = vpop.f32.mrf.mxu2 }
 0x231   : > { %v3020_v61 = vadd.f32 %v3019_v28, %v7854_v51  ;;  %v5713_v51 = vor.u32 %v6302_v59, %v5710_v21  ;;  %v5876_v28 = vld [vmem:[%s9710_s2 + $0x8e8] sm:$0xf]  ;;  %v5838_v59 = vld [vmem:[%s9710_s2 + $0x8b0] sm:$0xf0] }
 0x232   : > { %v8149_v46 = vpop.f32.mrf.mxu1  ;;  %3520 = vmatpush.bf16.msrb.mxu1 %v4933_v13  ;;  %v6334_v13 = vld [vmem:[%s9710_s2 + $0x8a4] sm:$0xf] }
 0x233   : > { %v8162_v52 = vadd.f32 %v7981_v14, %v3020_v61  ;;  %v6345_v14 = vld [vmem:[%s9710_s2 + $0x8f4] sm:$0xf0]  ;;  %3432 = vmatpush.bf16.msrb.mxu2 %v5713_v51  ;;  %v5841_v21 = vor.u32 %v6334_v13, %v5838_v59  ;;  %v6298_v13 = vld [vmem:[%s9710_s2 + $0x784] sm:$0xf]  ;;  %v5694_v59 = vld [vmem:[%s9710_s2 + $0x790] sm:$0xf0] }
 0x234   : > { %3351 = vmatmul.bf16.vlgmr.msra.gmra.mxu3 %v7659_v7  ;;  %3612 = vmatmul.bf16.vlgmr.msrb.gmra.mxu0 %v7659_v7  ;;  %v5877_v61 = vor.u32 %v6345_v14, %v5876_v28  ;;  %v6101_v51 = vld [vmem:[%s9710_s2 + $0x154] sm:$0xf0]  ;;  %v5860_v28 = vld [vmem:[%s9710_s2 + $0x8c8] sm:$0xf]  ;;  %v5697_v7 = vor.u32 %v6298_v13, %v5694_v59 }
 0x235   : > { %3419 = vmatmul.bf16.gmra.mxu1 %v7752_v1  ;;  %3461 = vmatpush.bf16.msrb.mxu3 %v5841_v21 }
 0x236   : > { %3521 = vmatpush.bf16.msrb.mxu1 %v4917_v54  ;;  %3720 = vmatpush.bf16.msra.mxu0 %v5877_v61  ;;  %v4901_v54 = vor.u32 %v6101_v51, %v4900_v45  ;;  %v6341_v61 = vld [vmem:[%s9710_s2 + $0x8d4] sm:$0xf0]  ;;  %v5844_v45 = vld [vmem:[%s9710_s2 + $0x8a8] sm:$0xf]  ;;  %v8221_v13 = vpop.f32.mrf.mxu0 }
 0x237   : > { %v8177_v25 = vpop.f32.mrf.mxu3  ;;  %v5861_v21 = vor.u32 %v6341_v61, %v5860_v28  ;;  %v6337_v28 = vld [vmem:[%s9710_s2 + $0x8b4] sm:$0xf0]  ;;  %3433 = vmatpush.bf16.msrb.mxu2 %v5697_v7 }
 0x238   : > { %v3021_v35 = vpop.f32.mrf.mxu2  ;;  %v5845_v61 = vor.u32 %v6337_v28, %v5844_v45  ;;  %v5828_v45 = vld [vmem:[%s9710_s2 + $0x888] sm:$0xf] }
 0x239   : > { %v3022_v14 = vadd.f32 %v3021_v35, %v7895_v15  ;;  %v4884_v15 = vld [vmem:[%s9710_s2 + $0x128] sm:$0xf]  ;;  %v6097_v35 = vld [vmem:[%s9710_s2 + $0x134] sm:$0xf0] }
 0x23a   : > { %v8195_v1 = vpop.f32.mrf.mxu1  ;;  %3522 = vmatpush.bf16.msrb.mxu1 %v4901_v54  ;;  %v4885_v56 = vor.u32 %v6097_v35, %v4884_v15  ;;  %3721 = vmatpush.bf16.msra.mxu0 %v5861_v21  ;;  %v3063_v21 = vadd.f32 %v7760_v23, %v7969_v17  ;;  %v4868_v15 = vld [vmem:[%s9710_s2 + $0x108] sm:$0xf]  ;;  %v6093_v35 = vld [vmem:[%s9710_s2 + $0x114] sm:$0xf0] }
 0x23b   : > { %v8216_v51 = vadd.f32 %v8023_v27, %v3022_v14  ;;  %v6330_v27 = vld [vmem:[%s9710_s2 + $0x884] sm:$0xf]  ;;  %v5822_v14 = vld [vmem:[%s9710_s2 + $0x890] sm:$0xf0]  ;;  %v4869_v23 = vor.u32 %v6093_v35, %v4868_v15  ;;  %v6333_v17 = vld [vmem:[%s9710_s2 + $0x894] sm:$0xf0] }
 0x23c   : > { %v5825_v54 = vor.u32 %v6330_v27, %v5822_v14  ;;  %v5678_v14 = vld [vmem:[%s9710_s2 + $0x770] sm:$0xf0]  ;;  %v5812_v35 = vld [vmem:[%s9710_s2 + $0x868] sm:$0xf] }
 0x23d   : > { %3322 = vmatmul.bf16.vlgmr.msra.gmra.mxu2 %v7143_v0  ;;  %v5806_v15 = vld [vmem:[%s9710_s2 + $0x870] sm:$0xf0] }
 0x23e   : > { %3523 = vmatpush.bf16.msrb.mxu1 %v4885_v56  ;;  %3722 = vmatpush.bf16.msra.mxu0 %v5845_v61  ;;  %v5829_v56 = vor.u32 %v6333_v17, %v5828_v45  ;;  %v6294_v61 = vld [vmem:[%s9710_s2 + $0x764] sm:$0xf]  ;;  %v6329_v45 = vld [vmem:[%s9710_s2 + $0x874] sm:$0xf0] }
 0x23f   : > { %v8223_v59 = vpop.f32.mrf.mxu3  ;;  %3462 = vmatpush.bf16.msrb.mxu3 %v5825_v54  ;;  %v6326_v54 = vld [vmem:[%s9710_s2 + $0x864] sm:$0xf] }
 0x240   : > { %v3091_v7 = vpop.f32.mrf.mxu2  ;;  %v5809_v17 = vor.u32 %v6326_v54, %v5806_v15  ;;  %v6325_v15 = vld [vmem:[%s9710_s2 + $0x854] sm:$0xf0] }
 0x241   : > { %v3092_v28 = vadd.f32 %v3091_v7, %v3063_v21  ;;  %v5681_v7 = vor.u32 %v6294_v61, %v5678_v14  ;;  %v5790_v61 = vld [vmem:[%s9710_s2 + $0x850] sm:$0xf0] }
 0x242   : > { %v8243_v27 = vpop.f32.mrf.mxu1  ;;  %3524 = vmatpush.bf16.msrb.mxu1 %v4869_v23  ;;  %3723 = vmatpush.bf16.msra.mxu0 %v5829_v56  ;;  %v6322_v23 = vld [vmem:[%s9710_s2 + $0x844] sm:$0xf]  ;;  %v3065_v56 = vadd.f32 %v7781_v39, %v8019_v37  ;;  %v5662_v39 = vld [vmem:[%s9710_s2 + $0x750] sm:$0xf0] }
 0x243   : > { %v8260_v21 = vadd.f32 %v8055_v36, %v3092_v28  ;;  %v5813_v36 = vor.u32 %v6329_v45, %v5812_v35  ;;  %3434 = vmatpush.bf16.msrb.mxu2 %v5681_v7  ;;  %3463 = vmatpush.bf16.msrb.mxu3 %v5809_v17  ;;  %v5793_v14 = vor.u32 %v6322_v23, %v5790_v61  ;;  %v5796_v7 = vld [vmem:[%s9710_s2 + $0x848] sm:$0xf]  ;;  %v6290_v35 = vld [vmem:[%s9710_s2 + $0x744] sm:$0xf] }
 0x244   : > { %3356 = vmatmul.bf16.gmra.mxu3 %v7743_v11  ;;  %3617 = vmatmul.bf16.gmra.mxu0 %v7743_v11  ;;  %v8280_v11 = vpop.f32.mrf.mxu0  ;;  %v5797_v23 = vor.u32 %v6325_v15, %v5796_v7  ;;  %v6318_v37 = vld [vmem:[%s9710_s2 + $0x824] sm:$0xf]  ;;  %v5665_v61 = vor.u32 %v6290_v35, %v5662_v39  ;;  %v5758_v35 = vld [vmem:[%s9710_s2 + $0x810] sm:$0xf0]  ;;  %v5764_v39 = vld [vmem:[%s9710_s2 + $0x808] sm:$0xf] }
 0x245   : > { %3424 = vmatmul.bf16.gmra.mxu1 %v7792_v19  ;;  %9790 = vst [vmem:[#allocation35_spill] sm:$0xff] %v8280_v11 }
 0x246   : > { %3724 = vmatpush.bf16.msra.mxu0 %v5813_v36  ;;  %v5774_v36 = vld [vmem:[%s9710_s2 + $0x830] sm:$0xf0] }
 0x247   : > { %v8272_v28 = vpop.f32.mrf.mxu3  ;;  %3464 = vmatpush.bf16.msrb.mxu3 %v5793_v14  ;;  %v5777_v19 = vor.u32 %v6318_v37, %v5774_v36  ;;  %3435 = vmatpush.bf16.msrb.mxu2 %v5665_v61  ;;  %v6314_v14 = vld [vmem:[%s9710_s2 + $0x804] sm:$0xf]  ;;  %v6317_v37 = vld [vmem:[%s9710_s2 + $0x814] sm:$0xf0] }
 0x248   : > { %v3093_v54 = vpop.f32.mrf.mxu2 }
 0x249   : > { %v3094_v45 = vadd.f32 %v3093_v54, %v3065_v56  ;;  %v5780_v56 = vld [vmem:[%s9710_s2 + $0x828] sm:$0xf]  ;;  %v6321_v54 = vld [vmem:[%s9710_s2 + $0x834] sm:$0xf0] }
 0x24a   : > { %v8293_v17 = vpop.f32.mrf.mxu1  ;;  %3725 = vmatpush.bf16.msra.mxu0 %v5797_v23  ;;  %v5781_v15 = vor.u32 %v6321_v54, %v5780_v56 }
 0x24b   : > { %v8311_v7 = vadd.f32 %v8071_v57, %v3094_v45  ;;  %3465 = vmatpush.bf16.msrb.mxu3 %v5777_v19  ;;  %v3068_v57 = vadd.f32 %v7794_v22, %v8050_v31  ;;  %v5761_v45 = vor.u32 %v6314_v14, %v5758_v35  ;;  %v5765_v19 = vor.u32 %v6317_v37, %v5764_v39  ;;  %v6286_v22 = vld [vmem:[%s9710_s2 + $0x724] sm:$0xf]  ;;  %v5646_v31 = vld [vmem:[%s9710_s2 + $0x730] sm:$0xf0] }
 0x24c   : > { %v8330_v36 = vpop.f32.mrf.mxu0  ;;  %v3070_v35 = vadd.f32 %v7832_v24, %v8067_v42  ;;  %v3073_v42 = vadd.f32 %v7864_v4, %v8088_v12  ;;  %v5492_v12 = vld [vmem:[%s9710_s2 + $0x5e8] sm:$0xf] }
 0x24d   : > { %3327 = vmatmul.bf16.gmra.mxu2 %v7232_v32 }
 0x24e   : > { %3726 = vmatpush.bf16.msra.mxu0 %v5781_v15  ;;  %v5649_v15 = vor.u32 %v6286_v22, %v5646_v31 }
 0x24f   : > { %v8313_v11 = vpop.f32.mrf.mxu3  ;;  %3466 = vmatpush.bf16.msrb.mxu3 %v5761_v45 }
 0x250   : > { %v3096_v23 = vpop.f32.mrf.mxu2  ;;  %3436 = vmatpush.bf16.msrb.mxu2 %v5649_v15 }
 0x251   : > { %v3097_v61 = vadd.f32 %v3096_v23, %v3068_v57  ;;  %v6282_v23 = vld [vmem:[%s9710_s2 + $0x704] sm:$0xf] }
 0x252   : > { %v8332_v56 = vpop.f32.mrf.mxu1  ;;  %3727 = vmatpush.bf16.msra.mxu0 %v5765_v19 }
 0x253   : > { %v8343_v54 = vadd.f32 %v8097_v26, %v3097_v61  ;;  %v5630_v26 = vld [vmem:[%s9710_s2 + $0x710] sm:$0xf0] }
 0x254   : > { %3361 = vmatmul.bf16.gmra.mxu3 %v7783_v55  ;;  %3622 = vmatmul.bf16.gmra.mxu0 %v7783_v55  ;;  %v5633_v37 = vor.u32 %v6282_v23, %v5630_v26  ;;  %v8358_v61 = vpop.f32.mrf.mxu0  ;;  %v6249_v23 = vld [vmem:[%s9710_s2 + $0x5f4] sm:$0xf0] }
 0x255   : > { %3525 = vmatmul.bf16.vlgmr.msrb.gmra.mxu1 %v7343_v3  ;;  %v5493_v26 = vor.u32 %v6249_v23, %v5492_v12  ;;  %v5092_v12 = vld [vmem:[%s9710_s2 + $0x2c8] sm:$0xf] }
 0x256   : > { %3437 = vmatpush.bf16.msrb.mxu2 %v5633_v37 }
 0x257   : > { %v8346_v14 = vpop.f32.mrf.mxu3  ;;  %3633 = vmatpush.bf16.msra.mxu1 %v5493_v26 }
 0x258   : > { %v3098_v57 = vpop.f32.mrf.mxu2 }
 0x259   : > { %v3099_v45 = vadd.f32 %v3098_v57, %v3070_v35  ;;  %v5108_v35 = vld [vmem:[%s9710_s2 + $0x2e8] sm:$0xf] }
 0x25a   : > { %v8356_v39 = vpop.f32.mrf.mxu1 }
 0x25b   : > { %v8361_v19 = vadd.f32 %v8133_v16, %v3099_v45  ;;  %v6153_v16 = vld [vmem:[%s9710_s2 + $0x2f4] sm:$0xf0] }
 0x25c   : > { %v5109_v4 = vor.u32 %v6153_v16, %v5108_v35  ;;  %v8388_v45 = vpop.f32.mrf.mxu0  ;;  %v5476_v16 = vld [vmem:[%s9710_s2 + $0x5c8] sm:$0xf] }
 0x25d   : > { %3332 = vmatmul.bf16.gmra.mxu2 %v7347_v44 }
 0x25e   : > { %3546 = vmatpush.bf16.msra.mxu2 %v5109_v4  ;;  %v6245_v4 = vld [vmem:[%s9710_s2 + $0x5d4] sm:$0xf0] }
 0x25f   : > { %v8363_v24 = vpop.f32.mrf.mxu3 }
 0x260   : > { %v3101_v22 = vpop.f32.mrf.mxu2 }
 0x261   : > { %v3102_v31 = vadd.f32 %v3101_v22, %v3073_v42  ;;  %v6185_v42 = vld [vmem:[%s9710_s2 + $0x3f4] sm:$0xf0]  ;;  %v3075_v22 = vadd.f32 %v7906_v9, %v8129_v58  ;;  %v5460_v58 = vld [vmem:[%s9710_s2 + $0x5a8] sm:$0xf] }
 0x262   : > { %v8368_v15 = vpop.f32.mrf.mxu1  ;;  %v6149_v9 = vld [vmem:[%s9710_s2 + $0x2d4] sm:$0xf0] }
 0x263   : > { %v8379_v57 = vadd.f32 %v8177_v25, %v3102_v31  ;;  %v5236_v25 = vld [vmem:[%s9710_s2 + $0x3e8] sm:$0xf] }
 0x264   : > { %3366 = vmatmul.bf16.gmra.mxu3 %v7843_v53  ;;  %3627 = vmatmul.bf16.gmra.mxu0 %v7843_v53  ;;  %v5237_v31 = vor.u32 %v6185_v42, %v5236_v25  ;;  %v6241_v25 = vld [vmem:[%s9710_s2 + $0x5b4] sm:$0xf0]  ;;  %v5093_v42 = vor.u32 %v6149_v9, %v5092_v12 }
 0x265   : > { %3530 = vmatmul.bf16.gmra.mxu1 %v7434_v63  ;;  %v5477_v63 = vor.u32 %v6245_v4, %v5476_v16  ;;  %v6181_v16 = vld [vmem:[%s9710_s2 + $0x3d4] sm:$0xf0]  ;;  %v8432_v4 = vpop.f32.mrf.mxu0 }
 0x266   : > { %3575 = vmatpush.bf16.msra.mxu3 %v5237_v31  ;;  %3547 = vmatpush.bf16.msra.mxu2 %v5093_v42  ;;  %v6237_v9 = vld [vmem:[%s9710_s2 + $0x594] sm:$0xf0] }
 0x267   : > { %v8390_v37 = vpop.f32.mrf.mxu3  ;;  %3634 = vmatpush.bf16.msra.mxu1 %v5477_v63 }
 0x268   : > { %v3103_v35 = vpop.f32.mrf.mxu2 }
 0x269   : > { %v3104_v23 = vadd.f32 %v3103_v35, %v3075_v22  ;;  %v5461_v22 = vor.u32 %v6241_v25, %v5460_v58  ;;  %v5220_v35 = vld [vmem:[%s9710_s2 + $0x3c8] sm:$0xf] }
 0x26a   : > { %v8409_v26 = vpop.f32.mrf.mxu1  ;;  %v5221_v63 = vor.u32 %v6181_v16, %v5220_v35  ;;  %v5428_v16 = vld [vmem:[%s9710_s2 + $0x568] sm:$0xf] }
 0x26b   : > { %v8421_v53 = vadd.f32 %v8223_v59, %v3104_v23  ;;  %v3078_v59 = vadd.f32 %v7952_v18, %v8162_v52  ;;  %3635 = vmatpush.bf16.msra.mxu1 %v5461_v22  ;;  %v5444_v23 = vld [vmem:[%s9710_s2 + $0x588] sm:$0xf]  ;;  %v6145_v52 = vld [vmem:[%s9710_s2 + $0x2b4] sm:$0xf0] }
 0x26c   : > { %3576 = vmatpush.bf16.msra.mxu3 %v5221_v63  ;;  %v5445_v42 = vor.u32 %v6237_v9, %v5444_v23  ;;  %v5076_v18 = vld [vmem:[%s9710_s2 + $0x2a8] sm:$0xf]  ;;  %v6183_v63 = vld [vmem:[%s9710_s2 + $0x3ec] sm:$0xf] }
 0x26d   : > { %3337 = vmatmul.bf16.gmra.mxu2 %v7443_v20  ;;  %v5077_v35 = vor.u32 %v6145_v52, %v5076_v18  ;;  %v3080_v18 = vadd.f32 %v7999_v29, %v8216_v51 }
 0x26f   : > { %v8423_v31 = vpop.f32.mrf.mxu3  ;;  %3636 = vmatpush.bf16.msra.mxu1 %v5445_v42  ;;  %3548 = vmatpush.bf16.msra.mxu2 %v5077_v35  ;;  %v6177_v42 = vld [vmem:[%s9710_s2 + $0x3b4] sm:$0xf0]  ;;  %v5412_v35 = vld [vmem:[%s9710_s2 + $0x548] sm:$0xf] }
 0x270   : > { %v3106_v12 = vpop.f32.mrf.mxu2 }
 0x271   : > { %v3107_v58 = vadd.f32 %v3106_v12, %v3078_v59  ;;  %v6233_v59 = vld [vmem:[%s9710_s2 + $0x574] sm:$0xf0] }
 0x272   : > { %v8442_v25 = vpop.f32.mrf.mxu1  ;;  %v5429_v12 = vor.u32 %v6233_v59, %v5428_v16  ;;  %v6229_v59 = vld [vmem:[%s9710_s2 + $0x554] sm:$0xf0] }
 0x273   : > { %v8453_v22 = vadd.f32 %v8272_v28, %v3107_v58  ;;  %v5238_v28 = vld [vmem:[%s9710_s2 + $0x3f8] sm:$0xf0]  ;;  %v5204_v58 = vld [vmem:[%s9710_s2 + $0x3a8] sm:$0xf]  ;;  %v5413_v51 = vor.u32 %v6229_v59, %v5412_v35  ;;  %v3150_v59 = vadd.f32 %v7725_v48, %v8260_v21  ;;  %v6173_v48 = vld [vmem:[%s9710_s2 + $0x394] sm:$0xf0] }
 0x274   : > { %3467 = vmatmul.bf16.vlgmr.msrb.gmra.mxu3 %v7928_v50  ;;  %3728 = vmatmul.bf16.vlgmr.msra.gmra.mxu0 %v7928_v50  ;;  %v5241_v9 = vor.u32 %v6183_v63, %v5238_v28  ;;  %v5205_v52 = vor.u32 %v6177_v42, %v5204_v58  ;;  %v6179_v63 = vld [vmem:[%s9710_s2 + $0x3cc] sm:$0xf]  ;;  %v8487_v28 = vpop.f32.mrf.mxu0  ;;  %v6141_v58 = vld [vmem:[%s9710_s2 + $0x294] sm:$0xf0] }
 0x275   : > { %3535 = vmatmul.bf16.gmra.mxu1 %v7501_v33 }
 0x276   : > { %3637 = vmatpush.bf16.msra.mxu1 %v5429_v12  ;;  %3836 = vmatpush.bf16.msrb.mxu0 %v5241_v9  ;;  %v5222_v12 = vld [vmem:[%s9710_s2 + $0x3d8] sm:$0xf0]  ;;  %v5060_v9 = vld [vmem:[%s9710_s2 + $0x288] sm:$0xf] }
 0x277   : > { %v8468_v23 = vpop.f32.mrf.mxu3  ;;  %3577 = vmatpush.bf16.msra.mxu3 %v5205_v52  ;;  %v5225_v42 = vor.u32 %v6179_v63, %v5222_v12  ;;  %v5061_v50 = vor.u32 %v6141_v58, %v5060_v9  ;;  %v6225_v52 = vld [vmem:[%s9710_s2 + $0x534] sm:$0xf0]  ;;  %v5206_v12 = vld [vmem:[%s9710_s2 + $0x3b8] sm:$0xf0] }
 0x278   : > { %v3108_v16 = vpop.f32.mrf.mxu2 }
 0x279   : > { %v3109_v33 = vadd.f32 %v3108_v16, %v3080_v18  ;;  %v5396_v18 = vld [vmem:[%s9710_s2 + $0x528] sm:$0xf]  ;;  %v6175_v16 = vld [vmem:[%s9710_s2 + $0x3ac] sm:$0xf]  ;;  %3549 = vmatpush.bf16.msra.mxu2 %v5061_v50 }
 0x27a   : > { %v8489_v29 = vpop.f32.mrf.mxu1  ;;  %3638 = vmatpush.bf16.msra.mxu1 %v5413_v51  ;;  %v5397_v63 = vor.u32 %v6225_v52, %v5396_v18  ;;  %3837 = vmatpush.bf16.msrb.mxu0 %v5225_v42  ;;  %v5209_v9 = vor.u32 %v6175_v16, %v5206_v12  ;;  %v5380_v50 = vld [vmem:[%s9710_s2 + $0x508] sm:$0xf]  ;;  %v6221_v42 = vld [vmem:[%s9710_s2 + $0x514] sm:$0xf0]  ;;  %v6171_v18 = vld [vmem:[%s9710_s2 + $0x38c] sm:$0xf] }
 0x27b   : > { %v8510_v35 = vadd.f32 %v8313_v11, %v3109_v33  ;;  %v5188_v33 = vld [vmem:[%s9710_s2 + $0x388] sm:$0xf]  ;;  %v3179_v11 = vadd.f32 %v8039_v34, %v3150_v59  ;;  %v5381_v34 = vor.u32 %v6221_v42, %v5380_v50  ;;  %v5190_v59 = vld [vmem:[%s9710_s2 + $0x398] sm:$0xf0]  ;;  %v6167_v50 = vld [vmem:[%s9710_s2 + $0x36c] sm:$0xf] }
 0x27c   : > { %v5189_v21 = vor.u32 %v6173_v48, %v5188_v33  ;;  %v5044_v12 = vld [vmem:[%s9710_s2 + $0x268] sm:$0xf]  ;;  %v8551_v48 = vpop.f32.mrf.mxu0 }
 0x27d   : > { %3438 = vmatmul.bf16.vlgmr.msrb.gmra.mxu2 %v7509_v5  ;;  %v5172_v33 = vld [vmem:[%s9710_s2 + $0x368] sm:$0xf] }
 0x27e   : > { %3639 = vmatpush.bf16.msra.mxu1 %v5397_v63  ;;  %3838 = vmatpush.bf16.msrb.mxu0 %v5209_v9  ;;  %v5193_v63 = vor.u32 %v6171_v18, %v5190_v59  ;;  %v6137_v9 = vld [vmem:[%s9710_s2 + $0x274] sm:$0xf0]  ;;  %v5174_v18 = vld [vmem:[%s9710_s2 + $0x378] sm:$0xf0] }
 0x27f   : > { %v8517_v58 = vpop.f32.mrf.mxu3  ;;  %3578 = vmatpush.bf16.msra.mxu3 %v5189_v21  ;;  %v5045_v21 = vor.u32 %v6137_v9, %v5044_v12 }
 0x280   : > { %v3207_v51 = vpop.f32.mrf.mxu2 }
 0x281   : > { %v3208_v52 = vadd.f32 %v3207_v51, %v3179_v11  ;;  %v3152_v11 = vadd.f32 %v7763_v6, %v8311_v7  ;;  %v6169_v51 = vld [vmem:[%s9710_s2 + $0x374] sm:$0xf0]  ;;  %3550 = vmatpush.bf16.msra.mxu2 %v5045_v21  ;;  %v5177_v6 = vor.u32 %v6167_v50, %v5174_v18  ;;  %v8570_v7 = vadd.f32 %v8346_v14, %v8379_v57  ;;  %v6163_v21 = vld [vmem:[%s9710_s2 + $0x34c] sm:$0xf]  ;;  %v5158_v14 = vld [vmem:[%s9710_s2 + $0x358] sm:$0xf0] }
 0x282   : > { %v8536_v16 = vpop.f32.mrf.mxu1  ;;  %3640 = vmatpush.bf16.msra.mxu1 %v5381_v34  ;;  %3839 = vmatpush.bf16.msrb.mxu0 %v5193_v63  ;;  %v5173_v42 = vor.u32 %v6169_v51, %v5172_v33  ;;  %v5156_v34 = vld [vmem:[%s9710_s2 + $0x348] sm:$0xf]  ;;  %v6165_v63 = vld [vmem:[%s9710_s2 + $0x354] sm:$0xf0] }
 0x283   : > { %v3181_v12 = vadd.f32 %v8064_v41, %v3152_v11  ;;  %v5157_v9 = vor.u32 %v6165_v63, %v5156_v34  ;;  %v5028_v57 = vld [vmem:[%s9710_s2 + $0x248] sm:$0xf]  ;;  %v6133_v41 = vld [vmem:[%s9710_s2 + $0x254] sm:$0xf0]  ;;  %v6159_v63 = vld [vmem:[%s9710_s2 + $0x32c] sm:$0xf] }
 0x284   : > { %3472 = vmatmul.bf16.gmra.mxu3 %v8021_v43  ;;  %3733 = vmatmul.bf16.gmra.mxu0 %v8021_v43  ;;  %v5140_v11 = vld [vmem:[%s9710_s2 + $0x328] sm:$0xf]  ;;  %v6161_v18 = vld [vmem:[%s9710_s2 + $0x334] sm:$0xf0]  ;;  %v8607_v43 = vpop.f32.mrf.mxu0 }
 0x285   : > { %3540 = vmatmul.bf16.gmra.mxu1 %v7534_v60  ;;  %3579 = vmatpush.bf16.msra.mxu3 %v5173_v42  ;;  %v5161_v42 = vor.u32 %v6163_v21, %v5158_v14  ;;  %v5141_v34 = vor.u32 %v6161_v18, %v5140_v11  ;;  %v3155_v14 = vadd.f32 %v7785_v30, %v8343_v54  ;;  %v6157_v30 = vld [vmem:[%s9710_s2 + $0x314] sm:$0xf0]  ;;  %v6155_v11 = vld [vmem:[%s9710_s2 + $0x30c] sm:$0xf] }
 0x286   : > { %3840 = vmatpush.bf16.msrb.mxu0 %v5177_v6  ;;  %v5029_v6 = vor.u32 %v6133_v41, %v5028_v57  ;;  %v3162_v41 = vadd.f32 %v8363_v24, %v8421_v53  ;;  %v5126_v53 = vld [vmem:[%s9710_s2 + $0x318] sm:$0xf0] }
 0x287   : > { %v8566_v59 = vpop.f32.mrf.mxu3  ;;  %v3184_v54 = vadd.f32 %v8077_v10, %v3155_v14  ;;  %v5012_v10 = vld [vmem:[%s9710_s2 + $0x228] sm:$0xf] }
 0x288   : > { %v3209_v33 = vpop.f32.mrf.mxu2  ;;  %3551 = vmatpush.bf16.msra.mxu2 %v5029_v6  ;;  %v5129_v6 = vor.u32 %v6155_v11, %v5126_v53  ;;  %v3189_v11 = vadd.f32 %v8149_v46, %v8570_v7  ;;  %v6281_v46 = vld [vmem:[%s9710_s2 + $0x6f4] sm:$0xf0] }
 0x289   : > { %v3210_v51 = vadd.f32 %v3209_v33, %v3181_v12  ;;  %3580 = vmatpush.bf16.msra.mxu3 %v5157_v9  ;;  %v5142_v12 = vld [vmem:[%s9710_s2 + $0x338] sm:$0xf0]  ;;  %v4010_v33 = vmax.f32 %v3208_v52, 0.0  ;;  %v5124_v52 = vld [vmem:[%s9710_s2 + $0x308] sm:$0xf] }
 0x28a   : > { %v8588_v50 = vpop.f32.mrf.mxu1  ;;  %3841 = vmatpush.bf16.msrb.mxu0 %v5161_v42  ;;  %v5145_v60 = vor.u32 %v6159_v63, %v5142_v12  ;;  %v3157_v63 = vadd.f32 %v7817_v62, %v8361_v19  ;;  %v4996_v62 = vld [vmem:[%s9710_s2 + $0x208] sm:$0xf]  ;;  %v6125_v19 = vld [vmem:[%s9710_s2 + $0x214] sm:$0xf0] }
 0x28b   : > { %v4014_v21 = vmax.f32 %v3210_v51, 0.0  ;;  %v5125_v51 = vor.u32 %v6157_v30, %v5124_v52 }
 0x28c   : > { %v8650_v14 = vpop.f32.mrf.mxu0 }
 0x28d   : > { %v8611_v57 = vpack.c.bf16 %v4014_v21, %v4010_v33  ;;  %3443 = vmatmul.bf16.gmra.mxu2 %v7537_v8  ;;  %3581 = vmatpush.bf16.msra.mxu3 %v5141_v34  ;;  %v3266_v34 = vadd.f32 %v7852_v49, %v8468_v23  ;;  %v3165_v21 = vadd.f32 %v8390_v37, %v8453_v22  ;;  %v9792_v22 = vld [vmem:[#allocation26_spill] sm:$0xff] }
 0x28e   : > { %3842 = vmatpush.bf16.msrb.mxu0 %v5145_v60  ;;  %v6129_v60 = vld [vmem:[%s9710_s2 + $0x234] sm:$0xf0]  ;;  %v3186_v49 = vadd.f32 %v8117_v2, %v3157_v63  ;;  %v4997_v37 = vor.u32 %v6125_v19, %v4996_v62  ;;  %v3268_v2 = vadd.f32 %v9792_v22, %v8517_v58  ;;  %v4854_v63 = vld [vmem:[%s9710_s2 + $0xf8] sm:$0xf0] }
 0x28f   : > { %v8609_v9 = vpop.f32.mrf.mxu3  ;;  %9791 = vst [vmem:[#allocation36_spill] sm:$0xff] %v8611_v57  ;;  %v5013_v12 = vor.u32 %v6129_v60, %v5012_v10  ;;  %v8654_v23 = vadd.f32 %v8332_v56, %v3266_v34  ;;  %v6087_v34 = vld [vmem:[%s9710_s2 + $0xec] sm:$0xf]  ;;  %v6313_v62 = vld [vmem:[%s9710_s2 + $0x7f4] sm:$0xf0] }
 0x290   : > { %v3212_v42 = vpop.f32.mrf.mxu2  ;;  %v8678_v53 = vadd.f32 %v8356_v39, %v3268_v2  ;;  %v9794_v39 = vld [vmem:[#allocation28_spill] sm:$0xff]  ;;  %v5700_v57 = vld [vmem:[%s9710_s2 + $0x788] sm:$0xf] }
 0x291   : > { %v8629_v24 = vadd.f32 %v3212_v42, %v3184_v54  ;;  %3582 = vmatpush.bf16.msra.mxu3 %v5125_v51  ;;  %3552 = vmatpush.bf16.msra.mxu2 %v5013_v12  ;;  %v9793_v51 = vld [vmem:[#allocation18_spill] sm:$0xff]  ;;  %v8673_v42 = vadd.f32 %v8423_v31, %v8510_v35  ;;  %v5620_v31 = vld [vmem:[%s9710_s2 + $0x6e8] sm:$0xf]  ;;  %v3271_v35 = vadd.f32 %v9794_v39, %v8566_v59  ;;  %v6079_v39 = vld [vmem:[%s9710_s2 + $0xac] sm:$0xf] }
 0x292   : > { %v8631_v18 = vpop.f32.mrf.mxu1  ;;  %3843 = vmatpush.bf16.msrb.mxu0 %v5129_v6  ;;  %v5621_v7 = vor.u32 %v6281_v46, %v5620_v31  ;;  %v9795_v12 = vld [vmem:[#allocation15_spill] sm:$0xff] }
 0x293   : > { %v5748_v59 = vld [vmem:[%s9710_s2 + $0x7e8] sm:$0xf]  ;;  %v8713_v22 = vadd.f32 %v8368_v15, %v3271_v35  ;;  %v4822_v35 = vld [vmem:[%s9710_s2 + $0xb8] sm:$0xf0] }
 0x294   : > { %3477 = vmatmul.bf16.gmra.mxu3 %v8069_v38  ;;  %3738 = vmatmul.bf16.gmra.mxu0 %v8069_v38  ;;  %v8680_v10 = vpop.f32.mrf.mxu0  ;;  %v5749_v19 = vor.u32 %v6313_v62, %v5748_v59  ;;  %v5604_v31 = vld [vmem:[%s9710_s2 + $0x6c8] sm:$0xf]  ;;  %v4825_v59 = vor.u32 %v6079_v39, %v4822_v35 }
 0x295   : > { %3641 = vmatmul.bf16.vlgmr.msra.gmra.mxu1 %v7496_v47  ;;  %3553 = vmatpush.bf16.msra.mxu2 %v4997_v37  ;;  %v3191_v37 = vadd.f32 %v8195_v1, %v3162_v41  ;;  %v6277_v41 = vld [vmem:[%s9710_s2 + $0x6d4] sm:$0xf0] }
 0x296   : > { %3691 = vmatpush.bf16.msrb.mxu3 %v5749_v19  ;;  %v9798_v19 = vld [vmem:[#allocation21_spill] sm:$0xff] }
 0x297   : > { %v8646_v33 = vpop.f32.mrf.mxu3 }
 0x298   : > { %v3214_v52 = vpop.f32.mrf.mxu2 }
 0x299   : > { %v8662_v30 = vadd.f32 %v3214_v52, %v3186_v49  ;;  %v4857_v49 = vor.u32 %v6087_v34, %v4854_v63  ;;  %3662 = vmatpush.bf16.msrb.mxu2 %v5621_v7  ;;  %v5605_v7 = vor.u32 %v6277_v41, %v5604_v31  ;;  %v9797_v63 = vld [vmem:[#allocation29_spill] sm:$0xff] }
 0x29a   : > { %v8664_v54 = vpop.f32.mrf.mxu1  ;;  %v4806_v41 = vld [vmem:[%s9710_s2 + $0x98] sm:$0xf0] }
 0x29b   : > { %3749 = vmatpush.bf16.msrb.mxu1 %v4857_v49  ;;  %v3273_v49 = vadd.f32 %v9797_v63, %v8609_v9 }
 0x29c   : > { %v8737_v34 = vpop.f32.mrf.mxu0 }
 0x29d   : > { %3448 = vmatmul.bf16.gmra.mxu2 %v9793_v51  ;;  %9796 = vst [vmem:[#allocation26_spill] sm:$0xff] %v8737_v34  ;;  %v8752_v9 = vadd.f32 %v8409_v26, %v3273_v49  ;;  %v6273_v26 = vld [vmem:[%s9710_s2 + $0x6b4] sm:$0xf0] }
 0x29e   : > { %3663 = vmatpush.bf16.msrb.mxu2 %v5605_v7  ;;  %v9823_v34 = vld [vmem:[#allocation9_spill] sm:$0xff] }
 0x29f   : > { %v8668_v56 = vpop.f32.mrf.mxu3 }
 0x2a0   : > { %v3217_v6 = vpop.f32.mrf.mxu2 }
 0x2a1   : > { %v8682_v60 = vadd.f32 %v3217_v6, %v3189_v11  ;;  %v6083_v11 = vld [vmem:[%s9710_s2 + $0xcc] sm:$0xf]  ;;  %v4838_v6 = vld [vmem:[%s9710_s2 + $0xd8] sm:$0xf0] }
 0x2a2   : > { %v8684_v58 = vpop.f32.mrf.mxu1  ;;  %v4841_v15 = vor.u32 %v6083_v11, %v4838_v6  ;;  %v3194_v6 = vadd.f32 %v8243_v27, %v3165_v21  ;;  %v5588_v27 = vld [vmem:[%s9710_s2 + $0x6a8] sm:$0xf] }
 0x2a3   : > { %v9799_v21 = vld [vmem:[#allocation31_spill] sm:$0xff]  ;;  %v5589_v49 = vor.u32 %v6273_v26, %v5588_v27  ;;  %v3196_v26 = vadd.f32 %v8293_v17, %v8673_v42 }
 0x2a4   : > { %3482 = vmatmul.bf16.gmra.mxu3 %v8131_v40  ;;  %3743 = vmatmul.bf16.gmra.mxu0 %v8131_v40  ;;  %v3276_v63 = vadd.f32 %v9799_v21, %v8646_v33  ;;  %v8787_v33 = vpop.f32.mrf.mxu0 }
 0x2a5   : > { %3646 = vmatmul.bf16.gmra.mxu1 %v9795_v12  ;;  %3664 = vmatpush.bf16.msrb.mxu2 %v5589_v49  ;;  %v6067_v49 = vld [vmem:[%s9710_s2 + $0x4c] sm:$0xf] }
 0x2a6   : > { %3750 = vmatpush.bf16.msrb.mxu1 %v4841_v15  ;;  %v6075_v15 = vld [vmem:[%s9710_s2 + $0x8c] sm:$0xf]  ;;  %v8798_v21 = vadd.f32 %v8442_v25, %v3276_v63  ;;  %v5734_v63 = vld [vmem:[%s9710_s2 + $0x7d8] sm:$0xf0] }
 0x2a7   : > { %v8703_v52 = vpop.f32.mrf.mxu3  ;;  %v4809_v7 = vor.u32 %v6075_v15, %v4806_v41  ;;  %v5716_v41 = vld [vmem:[%s9710_s2 + $0x7a8] sm:$0xf] }
 0x2a8   : > { %v3219_v2 = vpop.f32.mrf.mxu2 }
 0x2a9   : > { %v8724_v46 = vadd.f32 %v3219_v2, %v3191_v37  ;;  %v5732_v37 = vld [vmem:[%s9710_s2 + $0x7c8] sm:$0xf]  ;;  %v6309_v2 = vld [vmem:[%s9710_s2 + $0x7d4] sm:$0xf0] }
 0x2aa   : > { %v8726_v1 = vpop.f32.mrf.mxu1  ;;  %v5733_v11 = vor.u32 %v6309_v2, %v5732_v37  ;;  %3751 = vmatpush.bf16.msrb.mxu1 %v4825_v59  ;;  %v6071_v59 = vld [vmem:[%s9710_s2 + $0x6c] sm:$0xf]  ;;  %v4790_v37 = vld [vmem:[%s9710_s2 + $0x78] sm:$0xf0] }
 0x2ab   : > { %v9800_v2 = vld [vmem:[#allocation17_spill] sm:$0xff] }
 0x2ac   : > { %3692 = vmatpush.bf16.msrb.mxu3 %v5733_v11  ;;  %v4793_v11 = vor.u32 %v6071_v59, %v4790_v37  ;;  %v4774_v37 = vld [vmem:[%s9710_s2 + $0x58] sm:$0xf0] }
 0x2ad   : > { %3453 = vmatmul.bf16.gmra.mxu2 %v9798_v19  ;;  %v4777_v25 = vor.u32 %v6067_v49, %v4774_v37 }
 0x2ae   : > { %3752 = vmatpush.bf16.msrb.mxu1 %v4809_v7  ;;  %v6305_v7 = vld [vmem:[%s9710_s2 + $0x7b4] sm:$0xf0] }
 0x2af   : > { %v8741_v62 = vpop.f32.mrf.mxu3  ;;  %v5717_v27 = vor.u32 %v6305_v7, %v5716_v41  ;;  %v6063_v7 = vld [vmem:[%s9710_s2 + $0x2c] sm:$0xf] }
 0x2b0   : > { %v3222_v31 = vpop.f32.mrf.mxu2 }
 0x2b1   : > { %v8760_v39 = vadd.f32 %v3222_v31, %v3194_v6  ;;  %v6311_v6 = vld [vmem:[%s9710_s2 + $0x7ec] sm:$0xf]  ;;  %3693 = vmatpush.bf16.msrb.mxu3 %v5717_v27  ;;  %v4758_v27 = vld [vmem:[%s9710_s2 + $0x38] sm:$0xf0] }
 0x2b2   : > { %v8762_v35 = vpop.f32.mrf.mxu1  ;;  %3753 = vmatpush.bf16.msrb.mxu1 %v4793_v11  ;;  %v5572_v11 = vld [vmem:[%s9710_s2 + $0x688] sm:$0xf]  ;;  %v4761_v37 = vor.u32 %v6063_v7, %v4758_v27  ;;  %v4018_v27 = vmax.f32 %v8629_v24, 0.0 }
 0x2b4   : > { %3583 = vmatmul.bf16.vlgmr.msra.gmra.mxu3 %v7143_v0  ;;  %3844 = vmatmul.bf16.vlgmr.msrb.gmra.mxu0 %v7143_v0  ;;  %v5750_v0 = vld [vmem:[%s9710_s2 + $0x7f8] sm:$0xf0] }
 0x2b5   : > { %3651 = vmatmul.bf16.gmra.mxu1 %v9800_v2  ;;  %v5753_v15 = vor.u32 %v6311_v6, %v5750_v0  ;;  %v6307_v6 = vld [vmem:[%s9710_s2 + $0x7cc] sm:$0xf]  ;;  %v6269_v0 = vld [vmem:[%s9710_s2 + $0x694] sm:$0xf0] }
 0x2b6   : > { %v5573_v41 = vor.u32 %v6269_v0, %v5572_v11  ;;  %3754 = vmatpush.bf16.msrb.mxu1 %v4777_v25  ;;  %v9802_v0 = vld [vmem:[#allocation4_spill] sm:$0xff]  ;;  %v4022_v25 = vmax.f32 %v8662_v30, 0.0  ;;  %v4742_v30 = vld [vmem:[%s9710_s2 + $0x18] sm:$0xf0]  ;;  %v6295_v2 = vld [vmem:[%s9710_s2 + $0x76c] sm:$0xf] }
 0x2b7   : > { %v3352_v31 = vpop.f32.mrf.mxu3  ;;  %3952 = vmatpush.bf16.msra.mxu0 %v5753_v15  ;;  %v5737_v15 = vor.u32 %v6307_v6, %v5734_v63  ;;  %v5718_v6 = vld [vmem:[%s9710_s2 + $0x7b8] sm:$0xf0] }
 0x2b8   : > { %v3224_v59 = vpop.f32.mrf.mxu2  ;;  %3665 = vmatpush.bf16.msrb.mxu2 %v5573_v41 }
 0x2b9   : > { %v8809_v17 = vadd.f32 %v3224_v59, %v3196_v26  ;;  %v6303_v26 = vld [vmem:[%s9710_s2 + $0x7ac] sm:$0xf]  ;;  %v9801_v59 = vld [vmem:[#allocation32_spill] sm:$0xff] }
 0x2ba   : > { %v8811_v42 = vpop.f32.mrf.mxu1  ;;  %v3278_v49 = vadd.f32 %v9801_v59, %v8668_v56  ;;  %v5721_v63 = vor.u32 %v6303_v26, %v5718_v6  ;;  %v6301_v56 = vld [vmem:[%s9710_s2 + $0x794] sm:$0xf0]  ;;  %3755 = vmatpush.bf16.msrb.mxu1 %v4761_v37  ;;  %v6059_v59 = vld [vmem:[%s9710_s2 + $0xc] sm:$0xf] }
 0x2bb   : > { %3953 = vmatpush.bf16.msra.mxu0 %v5737_v15  ;;  %v5701_v7 = vor.u32 %v6301_v56, %v5700_v57  ;;  %v8847_v15 = vpop.f32.mrf.mxu0  ;;  %v6299_v57 = vld [vmem:[%s9710_s2 + $0x78c] sm:$0xf]  ;;  %v6265_v56 = vld [vmem:[%s9710_s2 + $0x674] sm:$0xf0] }
 0x2bc   : > { %9803 = vst [vmem:[#allocation18_spill] sm:$0xff] %v8847_v15  ;;  %v8850_v41 = vadd.f32 %v8489_v29, %v3278_v49  ;;  %v4745_v29 = vor.u32 %v6059_v59, %v4742_v30  ;;  %v5702_v49 = vld [vmem:[%s9710_s2 + $0x798] sm:$0xf0] }
 0x2bd   : > { %3554 = vmatmul.bf16.vlgmr.msra.gmra.mxu2 %v9802_v0  ;;  %3694 = vmatpush.bf16.msrb.mxu3 %v5701_v7  ;;  %v5705_v6 = vor.u32 %v6299_v57, %v5702_v49  ;;  %v8877_v7 = vpack.c.bf16 %v4022_v25, %v4018_v27  ;;  %v6297_v49 = vld [vmem:[%s9710_s2 + $0x774] sm:$0xf0]  ;;  %v5686_v25 = vld [vmem:[%s9710_s2 + $0x778] sm:$0xf0]  ;;  %v9806_v27 = vld [vmem:[#allocation20_spill] sm:$0xff] }
 0x2be   : > { %3756 = vmatpush.bf16.msrb.mxu1 %v4745_v29  ;;  %v6293_v29 = vld [vmem:[%s9710_s2 + $0x754] sm:$0xf0] }
 0x2bf   : > { %v8836_v11 = vpop.f32.mrf.mxu3  ;;  %3954 = vmatpush.bf16.msra.mxu0 %v5721_v63  ;;  %v5556_v63 = vld [vmem:[%s9710_s2 + $0x668] sm:$0xf]  ;;  %9804 = vst [vmem:[#allocation28_spill] sm:$0xff] %v8877_v7 }
 0x2c0   : > { %v3323_v26 = vpop.f32.mrf.mxu2  ;;  %v5557_v57 = vor.u32 %v6265_v56, %v5556_v63 }
 0x2c1   : > { %v3324_v24 = vadd.f32 %v3323_v26, %v8654_v23  ;;  %v5684_v23 = vld [vmem:[%s9710_s2 + $0x768] sm:$0xf]  ;;  %v9805_v26 = vld [vmem:[#allocation33_spill] sm:$0xff] }
 0x2c2   : > { %v8862_v37 = vpop.f32.mrf.mxu1  ;;  %v3281_v59 = vadd.f32 %v9805_v26, %v8703_v52  ;;  %v5689_v52 = vor.u32 %v6295_v2, %v5686_v25  ;;  %3666 = vmatpush.bf16.msrb.mxu2 %v5557_v57  ;;  %v6291_v2 = vld [vmem:[%s9710_s2 + $0x74c] sm:$0xf]  ;;  %v6261_v25 = vld [vmem:[%s9710_s2 + $0x654] sm:$0xf0] }
 0x2c3   : > { %v8882_v30 = vadd.f32 %v3352_v31, %v3324_v24  ;;  %3955 = vmatpush.bf16.msra.mxu0 %v5705_v6  ;;  %v5668_v24 = vld [vmem:[%s9710_s2 + $0x748] sm:$0xf]  ;;  %v5670_v6 = vld [vmem:[%s9710_s2 + $0x758] sm:$0xf0]  ;;  %v8912_v57 = vpop.f32.mrf.mxu0 }
 0x2c4   : > { %3588 = vmatmul.bf16.gmra.mxu3 %v7232_v32  ;;  %3849 = vmatmul.bf16.gmra.mxu0 %v7232_v32  ;;  %v5685_v32 = vor.u32 %v6297_v49, %v5684_v23  ;;  %v5669_v63 = vor.u32 %v6293_v29, %v5668_v24  ;;  %v8901_v56 = vadd.f32 %v8536_v16, %v3281_v59  ;;  %v5540_v23 = vld [vmem:[%s9710_s2 + $0x648] sm:$0xf] }
 0x2c5   : > { %3656 = vmatmul.bf16.gmra.mxu1 %v9806_v27  ;;  %v5673_v59 = vor.u32 %v6291_v2, %v5670_v6  ;;  %v5541_v24 = vor.u32 %v6261_v25, %v5540_v23  ;;  %v9807_v2 = vld [vmem:[#allocation34_spill] sm:$0xff]  ;;  %v9808_v23 = vld [vmem:[#allocation7_spill] sm:$0xff] }
 0x2c6   : > { %3695 = vmatpush.bf16.msrb.mxu3 %v5685_v32  ;;  %v5652_v32 = vld [vmem:[%s9710_s2 + $0x728] sm:$0xf]  ;;  %v3283_v6 = vadd.f32 %v9807_v2, %v8741_v62 }
 0x2c7   : > { %v3357_v31 = vpop.f32.mrf.mxu3  ;;  %3956 = vmatpush.bf16.msra.mxu0 %v5689_v52  ;;  %v6289_v52 = vld [vmem:[%s9710_s2 + $0x734] sm:$0xf0]  ;;  %3667 = vmatpush.bf16.msrb.mxu2 %v5541_v24  ;;  %v5636_v25 = vld [vmem:[%s9710_s2 + $0x708] sm:$0xf]  ;;  %v6283_v24 = vld [vmem:[%s9710_s2 + $0x70c] sm:$0xf] }
 0x2c8   : > { %v3325_v26 = vpop.f32.mrf.mxu2  ;;  %v5653_v29 = vor.u32 %v6289_v52, %v5652_v32  ;;  %v6285_v32 = vld [vmem:[%s9710_s2 + $0x714] sm:$0xf0]  ;;  %v4030_v52 = vmax.f32 %v8724_v46, 0.0 }
 0x2c9   : > { %v3326_v49 = vadd.f32 %v3325_v26, %v8678_v53  ;;  %v6287_v53 = vld [vmem:[%s9710_s2 + $0x72c] sm:$0xf]  ;;  %v5654_v26 = vld [vmem:[%s9710_s2 + $0x738] sm:$0xf0]  ;;  %v5637_v62 = vor.u32 %v6285_v32, %v5636_v25 }
 0x2ca   : > { %v8915_v16 = vpop.f32.mrf.mxu1  ;;  %3696 = vmatpush.bf16.msrb.mxu3 %v5669_v63  ;;  %v5657_v27 = vor.u32 %v6287_v53, %v5654_v26  ;;  %v5638_v53 = vld [vmem:[%s9710_s2 + $0x718] sm:$0xf0]  ;;  %v9811_v25 = vld [vmem:[#allocation3_spill] sm:$0xff] }
 0x2cb   : > { %v8935_v7 = vadd.f32 %v8836_v11, %v3326_v49  ;;  %3957 = vmatpush.bf16.msra.mxu0 %v5673_v59  ;;  %v8946_v11 = vadd.f32 %v8588_v50, %v3283_v6  ;;  %v4026_v49 = vmax.f32 %v8682_v60, 0.0  ;;  %v5524_v50 = vld [vmem:[%s9710_s2 + $0x628] sm:$0xf]  ;;  %v6257_v60 = vld [vmem:[%s9710_s2 + $0x634] sm:$0xf0]  ;;  %v8967_v2 = vpop.f32.mrf.mxu0 }
 0x2cc   : > { %9810 = vst [vmem:[#allocation21_spill] sm:$0xff] %v8967_v2  ;;  %v5525_v6 = vor.u32 %v6257_v60, %v5524_v50  ;;  %v4038_v50 = vmax.f32 %v8809_v17, 0.0  ;;  %v4034_v60 = vmax.f32 %v8760_v39, 0.0 }
 0x2cd   : > { %3559 = vmatmul.bf16.gmra.mxu2 %v9808_v23 }
 0x2ce   : > { %3697 = vmatpush.bf16.msrb.mxu3 %v5653_v29  ;;  %v5641_v29 = vor.u32 %v6283_v24, %v5638_v53  ;;  %3668 = vmatpush.bf16.msrb.mxu2 %v5525_v6  ;;  %v5508_v24 = vld [vmem:[%s9710_s2 + $0x608] sm:$0xf] }
 0x2cf   : > { %v3359_v63 = vpop.f32.mrf.mxu3  ;;  %3958 = vmatpush.bf16.msra.mxu0 %v5657_v27  ;;  %v8965_v27 = vpack.c.bf16 %v4030_v52, %v4026_v49  ;;  %v6253_v52 = vld [vmem:[%s9710_s2 + $0x614] sm:$0xf0] }
 0x2d0   : > { %v3328_v59 = vpop.f32.mrf.mxu2 }
 0x2d1   : > { %v3329_v26 = vadd.f32 %v3328_v59, %v8713_v22  ;;  %9809 = vst [vmem:[#allocation29_spill] sm:$0xff] %v8965_v27 }
 0x2d2   : > { %v8956_v46 = vpop.f32.mrf.mxu1  ;;  %3698 = vmatpush.bf16.msrb.mxu3 %v5637_v62  ;;  %v5509_v62 = vor.u32 %v6253_v52, %v5508_v24  ;;  %v5366_v24 = vld [vmem:[%s9710_s2 + $0x4f8] sm:$0xf0] }
 0x2d3   : > { %v8970_v22 = vadd.f32 %v3357_v31, %v3329_v26  ;;  %3959 = vmatpush.bf16.msra.mxu0 %v5641_v29  ;;  %v8984_v53 = vpop.f32.mrf.mxu0  ;;  %v9812_v29 = vld [vmem:[#allocation10_spill] sm:$0xff]  ;;  %v9814_v52 = vld [vmem:[#allocation5_spill] sm:$0xff] }
 0x2d4   : > { %3593 = vmatmul.bf16.gmra.mxu3 %v7347_v44  ;;  %3854 = vmatmul.bf16.gmra.mxu0 %v7347_v44 }
 0x2d5   : > { %3757 = vmatmul.bf16.vlgmr.msrb.gmra.mxu1 %v9811_v25  ;;  %3669 = vmatpush.bf16.msrb.mxu2 %v5509_v62 }
 0x2d7   : > { %v3362_v32 = vpop.f32.mrf.mxu3 }
 0x2d8   : > { %v3330_v59 = vpop.f32.mrf.mxu2 }
 0x2d9   : > { %v3331_v44 = vadd.f32 %v3330_v59, %v8752_v9  ;;  %v6119_v9 = vld [vmem:[%s9710_s2 + $0x1ec] sm:$0xf]  ;;  %v8999_v59 = vpack.c.bf16 %v4038_v50, %v4034_v60 }
 0x2da   : > { %v8980_v31 = vpop.f32.mrf.mxu1 }
 0x2db   : > { %v8982_v49 = vadd.f32 %v3359_v63, %v3331_v44  ;;  %v4982_v63 = vld [vmem:[%s9710_s2 + $0x1f8] sm:$0xf0]  ;;  %9813 = vst [vmem:[#allocation31_spill] sm:$0xff] %v8999_v59  ;;  %v9017_v60 = vpop.f32.mrf.mxu0 }
 0x2dc   : > { %v4985_v17 = vor.u32 %v6119_v9, %v4982_v63  ;;  %v5350_v9 = vld [vmem:[%s9710_s2 + $0x4d8] sm:$0xf0]  ;;  %v6115_v63 = vld [vmem:[%s9710_s2 + $0x1cc] sm:$0xf] }
 0x2dd   : > { %3564 = vmatmul.bf16.gmra.mxu2 %v9812_v29  ;;  %v5094_v59 = vld [vmem:[%s9710_s2 + $0x2d8] sm:$0xf0] }
 0x2de   : > { %3778 = vmatpush.bf16.msra.mxu2 %v4985_v17 }
 0x2df   : > { %v3364_v26 = vpop.f32.mrf.mxu3 }
 0x2e0   : > { %v3333_v6 = vpop.f32.mrf.mxu2 }
 0x2e1   : > { %v3334_v25 = vadd.f32 %v3333_v6, %v8798_v21  ;;  %v6215_v21 = vld [vmem:[%s9710_s2 + $0x4ec] sm:$0xf] }
 0x2e2   : > { %v8990_v27 = vpop.f32.mrf.mxu1  ;;  %v5369_v44 = vor.u32 %v6215_v21, %v5366_v24 }
 0x2e3   : > { %v9002_v39 = vadd.f32 %v3362_v32, %v3334_v25  ;;  %v5110_v32 = vld [vmem:[%s9710_s2 + $0x2f8] sm:$0xf0]  ;;  %v6211_v25 = vld [vmem:[%s9710_s2 + $0x4cc] sm:$0xf] }
 0x2e4   : > { %3598 = vmatmul.bf16.gmra.mxu3 %v7443_v20  ;;  %3859 = vmatmul.bf16.gmra.mxu0 %v7443_v20  ;;  %v6151_v20 = vld [vmem:[%s9710_s2 + $0x2ec] sm:$0xf]  ;;  %v5353_v24 = vor.u32 %v6211_v25, %v5350_v9  ;;  %v9816_v25 = vld [vmem:[#allocation12_spill] sm:$0xff] }
 0x2e5   : > { %3762 = vmatmul.bf16.gmra.mxu1 %v9814_v52  ;;  %v5113_v50 = vor.u32 %v6151_v20, %v5110_v32  ;;  %v4966_v52 = vld [vmem:[%s9710_s2 + $0x1d8] sm:$0xf0]  ;;  %v6147_v9 = vld [vmem:[%s9710_s2 + $0x2cc] sm:$0xf] }
 0x2e6   : > { %3865 = vmatpush.bf16.msra.mxu1 %v5369_v44  ;;  %v6207_v44 = vld [vmem:[%s9710_s2 + $0x4ac] sm:$0xf]  ;;  %v5334_v20 = vld [vmem:[%s9710_s2 + $0x4b8] sm:$0xf0]  ;;  %v4969_v32 = vor.u32 %v6115_v63, %v4966_v52  ;;  %v5097_v2 = vor.u32 %v6147_v9, %v5094_v59 }
 0x2e7   : > { %v3367_v62 = vpop.f32.mrf.mxu3  ;;  %3807 = vmatpush.bf16.msra.mxu3 %v5113_v50  ;;  %v5318_v63 = vld [vmem:[%s9710_s2 + $0x498] sm:$0xf0] }
 0x2e8   : > { %v3335_v6 = vpop.f32.mrf.mxu2  ;;  %3779 = vmatpush.bf16.msra.mxu2 %v4969_v32  ;;  %v4950_v59 = vld [vmem:[%s9710_s2 + $0x1b8] sm:$0xf0] }
 0x2e9   : > { %v3336_v17 = vadd.f32 %v3335_v6, %v8850_v41  ;;  %v5337_v41 = vor.u32 %v6207_v44, %v5334_v20 }
 0x2ea   : > { %v9029_v21 = vpop.f32.mrf.mxu1  ;;  %3866 = vmatpush.bf16.msra.mxu1 %v5353_v24 }
 0x2eb   : > { %9815 = vst [vmem:[#allocation32_spill] sm:$0xff] %v9029_v21  ;;  %v9040_v50 = vadd.f32 %v3364_v26, %v3336_v17  ;;  %3808 = vmatpush.bf16.msra.mxu3 %v5097_v2  ;;  %v6203_v26 = vld [vmem:[%s9710_s2 + $0x48c] sm:$0xf]  ;;  %v9055_v17 = vpop.f32.mrf.mxu0 }
 0x2ec   : > { %v5321_v44 = vor.u32 %v6203_v26, %v5318_v63  ;;  %v6111_v2 = vld [vmem:[%s9710_s2 + $0x1ac] sm:$0xf] }
 0x2ed   : > { %3569 = vmatmul.bf16.gmra.mxu2 %v9816_v25  ;;  %v4953_v32 = vor.u32 %v6111_v2, %v4950_v59  ;;  %v5286_v2 = vld [vmem:[%s9710_s2 + $0x458] sm:$0xf0]  ;;  %v6107_v59 = vld [vmem:[%s9710_s2 + $0x18c] sm:$0xf] }
 0x2ee   : > { %3867 = vmatpush.bf16.msra.mxu1 %v5337_v41  ;;  %v9817_v41 = vld [vmem:[#allocation8_spill] sm:$0xff] }
 0x2ef   : > { %v3369_v6 = vpop.f32.mrf.mxu3  ;;  %3780 = vmatpush.bf16.msra.mxu2 %v4953_v32 }
 0x2f0   : > { %v3338_v15 = vpop.f32.mrf.mxu2 }
 0x2f1   : > { %v3339_v24 = vadd.f32 %v3338_v15, %v8901_v56  ;;  %v6199_v15 = vld [vmem:[%s9710_s2 + $0x46c] sm:$0xf]  ;;  %v5302_v56 = vld [vmem:[%s9710_s2 + $0x478] sm:$0xf0] }
 0x2f2   : > { %v9058_v52 = vpop.f32.mrf.mxu1  ;;  %3868 = vmatpush.bf16.msra.mxu1 %v5321_v44  ;;  %v5305_v9 = vor.u32 %v6199_v15, %v5302_v56  ;;  %v6195_v44 = vld [vmem:[%s9710_s2 + $0x44c] sm:$0xf] }
 0x2f3   : > { %v9068_v20 = vadd.f32 %v3367_v62, %v3339_v24  ;;  %v5078_v62 = vld [vmem:[%s9710_s2 + $0x2b8] sm:$0xf0]  ;;  %v5289_v56 = vor.u32 %v6195_v44, %v5286_v2  ;;  %v9820_v2 = vld [vmem:[#allocation6_spill] sm:$0xff] }
 0x2f4   : > { %3699 = vmatmul.bf16.vlgmr.msrb.gmra.mxu3 %v7509_v5  ;;  %3960 = vmatmul.bf16.vlgmr.msra.gmra.mxu0 %v7509_v5  ;;  %v6143_v5 = vld [vmem:[%s9710_s2 + $0x2ac] sm:$0xf] }
 0x2f5   : > { %3767 = vmatmul.bf16.gmra.mxu1 %v9817_v41  ;;  %v5081_v63 = vor.u32 %v6143_v5, %v5078_v62  ;;  %v4934_v41 = vld [vmem:[%s9710_s2 + $0x198] sm:$0xf0] }
 0x2f6   : > { %3869 = vmatpush.bf16.msra.mxu1 %v5305_v9  ;;  %v6191_v9 = vld [vmem:[%s9710_s2 + $0x42c] sm:$0xf]  ;;  %v5270_v5 = vld [vmem:[%s9710_s2 + $0x438] sm:$0xf0]  ;;  %v4937_v62 = vor.u32 %v6107_v59, %v4934_v41 }
 0x2f7   : > { %v3468_v26 = vpop.f32.mrf.mxu3  ;;  %3809 = vmatpush.bf16.msra.mxu3 %v5081_v63  ;;  %v9104_v63 = vpop.f32.mrf.mxu0  ;;  %v5062_v59 = vld [vmem:[%s9710_s2 + $0x298] sm:$0xf0] }
 0x2f8   : > { %v3340_v24 = vpop.f32.mrf.mxu2  ;;  %9819 = vst [vmem:[#allocation33_spill] sm:$0xff] %v9104_v63  ;;  %3781 = vmatpush.bf16.msra.mxu2 %v4937_v62  ;;  %v6135_v62 = vld [vmem:[%s9710_s2 + $0x26c] sm:$0xf] }
 0x2f9   : > { %v3341_v32 = vadd.f32 %v3340_v24, %v8946_v11  ;;  %v3382_v11 = vadd.f32 %v8221_v13, %v8882_v30  ;;  %v5273_v24 = vor.u32 %v6191_v9, %v5270_v5  ;;  %v6187_v13 = vld [vmem:[%s9710_s2 + $0x40c] sm:$0xf]  ;;  %v5254_v30 = vld [vmem:[%s9710_s2 + $0x418] sm:$0xf0] }
 0x2fa   : > { %v9093_v15 = vpop.f32.mrf.mxu1  ;;  %3870 = vmatpush.bf16.msra.mxu1 %v5289_v56  ;;  %v5257_v5 = vor.u32 %v6187_v13, %v5254_v30 }
 0x2fb   : > { %9818 = vst [vmem:[#allocation4_spill] sm:$0xff] %v9093_v15  ;;  %v9106_v12 = vadd.f32 %v3369_v6, %v3341_v32  ;;  %v6139_v15 = vld [vmem:[%s9710_s2 + $0x28c] sm:$0xf]  ;;  %v3411_v6 = vadd.f32 %v8631_v18, %v3382_v11 }
 0x2fc   : > { %v5065_v41 = vor.u32 %v6139_v15, %v5062_v59  ;;  %v6103_v18 = vld [vmem:[%s9710_s2 + $0x16c] sm:$0xf]  ;;  %v4918_v15 = vld [vmem:[%s9710_s2 + $0x178] sm:$0xf0] }
 0x2fd   : > { %3670 = vmatmul.bf16.vlgmr.msrb.gmra.mxu2 %v9820_v2 }
 0x2fe   : > { %3871 = vmatpush.bf16.msra.mxu1 %v5273_v24  ;;  %3810 = vmatpush.bf16.msra.mxu3 %v5065_v41  ;;  %v9821_v24 = vld [vmem:[#allocation35_spill] sm:$0xff]  ;;  %v4921_v41 = vor.u32 %v6103_v18, %v4918_v15  ;;  %v4902_v15 = vld [vmem:[%s9710_s2 + $0x158] sm:$0xf0] }
 0x2ff   : > { %v3470_v44 = vpop.f32.mrf.mxu3  ;;  %v3384_v59 = vadd.f32 %v9821_v24, %v8935_v7  ;;  %v9143_v30 = vpop.f32.mrf.mxu0  ;;  %v5030_v7 = vld [vmem:[%s9710_s2 + $0x258] sm:$0xf0]  ;;  %v6099_v18 = vld [vmem:[%s9710_s2 + $0x14c] sm:$0xf] }
 0x300   : > { %v3439_v32 = vpop.f32.mrf.mxu2  ;;  %3782 = vmatpush.bf16.msra.mxu2 %v4921_v41 }
 0x301   : > { %v3440_v56 = vadd.f32 %v3439_v32, %v3411_v6  ;;  %v5046_v6 = vld [vmem:[%s9710_s2 + $0x278] sm:$0xf0]  ;;  %v9822_v32 = vld [vmem:[#allocation11_spill] sm:$0xff] }
 0x302   : > { %v9124_v9 = vpop.f32.mrf.mxu1  ;;  %3872 = vmatpush.bf16.msra.mxu1 %v5257_v5  ;;  %v5049_v13 = vor.u32 %v6135_v62, %v5046_v6  ;;  %v6127_v62 = vld [vmem:[%s9710_s2 + $0x22c] sm:$0xf]  ;;  %v4905_v6 = vor.u32 %v6099_v18, %v4902_v15 }
 0x303   : > { %v3469_v11 = vadd.f32 %v3468_v26, %v3440_v56  ;;  %v3413_v56 = vadd.f32 %v8664_v54, %v3384_v59  ;;  %v5014_v54 = vld [vmem:[%s9710_s2 + $0x238] sm:$0xf0] }
 0x304   : > { %3704 = vmatmul.bf16.gmra.mxu3 %v7537_v8  ;;  %3965 = vmatmul.bf16.gmra.mxu0 %v7537_v8  ;;  %v6131_v8 = vld [vmem:[%s9710_s2 + $0x24c] sm:$0xf]  ;;  %v5017_v59 = vor.u32 %v6127_v62, %v5014_v54 }
 0x305   : > { %3772 = vmatmul.bf16.gmra.mxu1 %v9822_v32  ;;  %3811 = vmatpush.bf16.msra.mxu3 %v5049_v13  ;;  %v5033_v26 = vor.u32 %v6131_v8, %v5030_v7  ;;  %v3387_v13 = vadd.f32 %v8330_v36, %v8970_v22  ;;  %v4011_v8 = vmax.f32 %v3469_v11, 0.0  ;;  %v6095_v62 = vld [vmem:[%s9710_s2 + $0x12c] sm:$0xf] }
 0x306   : > { %3783 = vmatpush.bf16.msra.mxu2 %v4905_v6  ;;  %v9824_v54 = vld [vmem:[#allocation19_spill] sm:$0xff] }
 0x307   : > { %v3473_v63 = vpop.f32.mrf.mxu3  ;;  %v3416_v36 = vadd.f32 %v8684_v58, %v3387_v13  ;;  %v3389_v58 = vadd.f32 %v8358_v61, %v8982_v49 }
 0x308   : > { %v3441_v5 = vpop.f32.mrf.mxu2 }
 0x309   : > { %v3442_v24 = vadd.f32 %v3441_v5, %v3413_v56  ;;  %3812 = vmatpush.bf16.msra.mxu3 %v5033_v26  ;;  %v6123_v56 = vld [vmem:[%s9710_s2 + $0x20c] sm:$0xf]  ;;  %v4998_v5 = vld [vmem:[%s9710_s2 + $0x218] sm:$0xf0]  ;;  %v9175_v26 = vpop.f32.mrf.mxu0 }
 0x30a   : > { %v9161_v41 = vpop.f32.mrf.mxu1  ;;  %v5001_v22 = vor.u32 %v6123_v56, %v4998_v5 }
 0x30b   : > { %v3471_v32 = vadd.f32 %v3470_v44, %v3442_v24  ;;  %v4886_v24 = vld [vmem:[%s9710_s2 + $0x138] sm:$0xf0] }
 0x30c   : > { %v4889_v6 = vor.u32 %v6095_v62, %v4886_v24 }
 0x30d   : > { %v4015_v21 = vmax.f32 %v3471_v32, 0.0  ;;  %3675 = vmatmul.bf16.gmra.mxu2 %v9823_v34  ;;  %3813 = vmatpush.bf16.msra.mxu3 %v5017_v59  ;;  %v3418_v32 = vadd.f32 %v8726_v1, %v3389_v58  ;;  %v3392_v1 = vadd.f32 %v8388_v45, %v9002_v39  ;;  %v5494_v45 = vld [vmem:[%s9710_s2 + $0x5f8] sm:$0xf0]  ;;  %v6343_v39 = vld [vmem:[%s9710_s2 + $0x8ec] sm:$0xf] }
 0x30e   : > { %3784 = vmatpush.bf16.msra.mxu2 %v4889_v6  ;;  %v3394_v6 = vadd.f32 %v8432_v4, %v9040_v50 }
 0x30f   : > { %v3475_v7 = vpop.f32.mrf.mxu3  ;;  %v9177_v44 = vpack.c.bf16 %v4015_v21, %v4011_v8  ;;  %v6091_v8 = vld [vmem:[%s9710_s2 + $0x10c] sm:$0xf] }
 0x310   : > { %v3444_v11 = vpop.f32.mrf.mxu2  ;;  %v3423_v50 = vadd.f32 %v8811_v42, %v3394_v6  ;;  %v5478_v42 = vld [vmem:[%s9710_s2 + $0x5d8] sm:$0xf0] }
 0x311   : > { %v3445_v18 = vadd.f32 %v3444_v11, %v3416_v36  ;;  %3814 = vmatpush.bf16.msra.mxu3 %v5001_v22  ;;  %v9825_v22 = vld [vmem:[#allocation23_spill] sm:$0xff]  ;;  %v3421_v11 = vadd.f32 %v8762_v35, %v3392_v1  ;;  %v5862_v1 = vld [vmem:[%s9710_s2 + $0x8d8] sm:$0xf0] }
 0x312   : > { %v9180_v15 = vpop.f32.mrf.mxu1 }
 0x313   : > { %v9190_v21 = vadd.f32 %v3473_v63, %v3445_v18  ;;  %v9202_v63 = vpop.f32.mrf.mxu0 }
 0x314   : > { %3709 = vmatmul.bf16.gmra.mxu3 %v9793_v51  ;;  %3970 = vmatmul.bf16.gmra.mxu0 %v9793_v51  ;;  %v4870_v51 = vld [vmem:[%s9710_s2 + $0x118] sm:$0xf0] }
 0x315   : > { %3873 = vmatmul.bf16.vlgmr.msra.gmra.mxu1 %v9824_v54  ;;  %v4873_v56 = vor.u32 %v6091_v8, %v4870_v51 }
 0x317   : > { %v3478_v59 = vpop.f32.mrf.mxu3  ;;  %3785 = vmatpush.bf16.msra.mxu2 %v4873_v56  ;;  %v6339_v56 = vld [vmem:[%s9710_s2 + $0x8cc] sm:$0xf] }
 0x318   : > { %v3446_v13 = vpop.f32.mrf.mxu2 }
 0x319   : > { %v3447_v61 = vadd.f32 %v3446_v13, %v3418_v32  ;;  %v5878_v32 = vld [vmem:[%s9710_s2 + $0x8f8] sm:$0xf0]  ;;  %v9826_v13 = vld [vmem:[#allocation22_spill] sm:$0xff] }
 0x31a   : > { %v9204_v49 = vpop.f32.mrf.mxu1  ;;  %v5881_v8 = vor.u32 %v6343_v39, %v5878_v32  ;;  %v5846_v39 = vld [vmem:[%s9710_s2 + $0x8b8] sm:$0xf0]  ;;  %v3397_v32 = vadd.f32 %v8487_v28, %v9068_v20  ;;  %v6331_v28 = vld [vmem:[%s9710_s2 + $0x88c] sm:$0xf] }
 0x31b   : > { %v9206_v5 = vadd.f32 %v3475_v7, %v3447_v61  ;;  %v6247_v7 = vld [vmem:[%s9710_s2 + $0x5ec] sm:$0xf]  ;;  %v9224_v58 = vpop.f32.mrf.mxu0  ;;  %v5830_v20 = vld [vmem:[%s9710_s2 + $0x898] sm:$0xf0] }
 0x31c   : > { %v5497_v54 = vor.u32 %v6247_v7, %v5494_v45  ;;  %v6279_v61 = vld [vmem:[%s9710_s2 + $0x6ec] sm:$0xf]  ;;  %3981 = vmatpush.bf16.msrb.mxu1 %v5881_v8  ;;  %v5865_v7 = vor.u32 %v6339_v56, %v5862_v1 }
 0x31d   : > { %3680 = vmatmul.bf16.gmra.mxu2 %v9825_v22  ;;  %v6335_v45 = vld [vmem:[%s9710_s2 + $0x8ac] sm:$0xf] }
 0x31e   : > { %3894 = vmatpush.bf16.msrb.mxu2 %v5497_v54 }
 0x31f   : > { %v3480_v36 = vpop.f32.mrf.mxu3 }
 0x320   : > { %v3449_v18 = vpop.f32.mrf.mxu2  ;;  %3982 = vmatpush.bf16.msrb.mxu1 %v5865_v7  ;;  %v6327_v7 = vld [vmem:[%s9710_s2 + $0x86c] sm:$0xf] }
 0x321   : > { %v3450_v62 = vadd.f32 %v3449_v18, %v3421_v11  ;;  %v6243_v11 = vld [vmem:[%s9710_s2 + $0x5cc] sm:$0xf] }
 0x322   : > { %v9212_v24 = vpop.f32.mrf.mxu1  ;;  %v5481_v6 = vor.u32 %v6243_v11, %v5478_v42  ;;  %v5833_v11 = vor.u32 %v6331_v28, %v5830_v20  ;;  %v6319_v28 = vld [vmem:[%s9710_s2 + $0x82c] sm:$0xf]  ;;  %v5782_v20 = vld [vmem:[%s9710_s2 + $0x838] sm:$0xf0] }
 0x323   : > { %v9227_v35 = vadd.f32 %v3478_v59, %v3450_v62 }
 0x324   : > { %3714 = vmatmul.bf16.gmra.mxu3 %v9798_v19  ;;  %3975 = vmatmul.bf16.gmra.mxu0 %v9798_v19  ;;  %v5622_v19 = vld [vmem:[%s9710_s2 + $0x6f8] sm:$0xf0] }
 0x325   : > { %3878 = vmatmul.bf16.gmra.mxu1 %v9826_v13  ;;  %v5625_v4 = vor.u32 %v6279_v61, %v5622_v19  ;;  %v5849_v13 = vor.u32 %v6335_v45, %v5846_v39  ;;  %3895 = vmatpush.bf16.msrb.mxu2 %v5481_v6  ;;  %v9827_v61 = vld [vmem:[#allocation24_spill] sm:$0xff]  ;;  %v6275_v19 = vld [vmem:[%s9710_s2 + $0x6cc] sm:$0xf]  ;;  %v3399_v45 = vadd.f32 %v8551_v48, %v9106_v12 }
 0x327   : > { %v3483_v51 = vpop.f32.mrf.mxu3  ;;  %3923 = vmatpush.bf16.msrb.mxu3 %v5625_v4  ;;  %v5606_v4 = vld [vmem:[%s9710_s2 + $0x6d8] sm:$0xf0]  ;;  %3983 = vmatpush.bf16.msrb.mxu1 %v5849_v13  ;;  %v6271_v13 = vld [vmem:[%s9710_s2 + $0x6ac] sm:$0xf]  ;;  %v3428_v12 = vadd.f32 %v8915_v16, %v3399_v45 }
 0x328   : > { %v3451_v59 = vpop.f32.mrf.mxu2  ;;  %v5446_v16 = vld [vmem:[%s9710_s2 + $0x598] sm:$0xf0]  ;;  %v6267_v45 = vld [vmem:[%s9710_s2 + $0x68c] sm:$0xf] }
 0x329   : > { %v3452_v18 = vadd.f32 %v3451_v59, %v3423_v50  ;;  %v5609_v50 = vor.u32 %v6275_v19, %v5606_v4  ;;  %v5798_v4 = vld [vmem:[%s9710_s2 + $0x858] sm:$0xf0] }
 0x32a   : > { %v9251_v62 = vpop.f32.mrf.mxu1 }
 0x32b   : > { %v9262_v54 = vadd.f32 %v3480_v36, %v3452_v18  ;;  %v3426_v36 = vadd.f32 %v8862_v37, %v3397_v32  ;;  %3924 = vmatpush.bf16.msrb.mxu3 %v5609_v50  ;;  %v6239_v37 = vld [vmem:[%s9710_s2 + $0x5ac] sm:$0xf]  ;;  %v5462_v18 = vld [vmem:[%s9710_s2 + $0x5b8] sm:$0xf0]  ;;  %3984 = vmatpush.bf16.msrb.mxu1 %v5833_v11 }
 0x32c   : > { %v5465_v39 = vor.u32 %v6239_v37, %v5462_v18  ;;  %v6235_v50 = vld [vmem:[%s9710_s2 + $0x58c] sm:$0xf]  ;;  %v5785_v18 = vor.u32 %v6319_v28, %v5782_v20  ;;  %v5542_v28 = vld [vmem:[%s9710_s2 + $0x658] sm:$0xf0] }
 0x32d   : > { %3685 = vmatmul.bf16.gmra.mxu2 %v9827_v61  ;;  %v5449_v11 = vor.u32 %v6235_v50, %v5446_v16  ;;  %v9828_v50 = vld [vmem:[#allocation25_spill] sm:$0xff] }
 0x32e   : > { %3896 = vmatpush.bf16.msrb.mxu2 %v5465_v39  ;;  %v5574_v39 = vld [vmem:[%s9710_s2 + $0x698] sm:$0xf0] }
 0x32f   : > { %v3485_v8 = vpop.f32.mrf.mxu3 }
 0x330   : > { %v3454_v59 = vpop.f32.mrf.mxu2 }
 0x331   : > { %v3455_v56 = vadd.f32 %v3454_v59, %v3426_v36 }
 0x332   : > { %v9280_v1 = vpop.f32.mrf.mxu1  ;;  %3897 = vmatpush.bf16.msrb.mxu2 %v5449_v11 }
 0x333   : > { %v9292_v42 = vadd.f32 %v3483_v51, %v3455_v56  ;;  %v5590_v51 = vld [vmem:[%s9710_s2 + $0x6b8] sm:$0xf0] }
 0x334   : > { %3815 = vmatmul.bf16.vlgmr.msra.gmra.mxu3 %v9802_v0  ;;  %v5814_v0 = vld [vmem:[%s9710_s2 + $0x878] sm:$0xf0]  ;;  %v5593_v48 = vor.u32 %v6271_v13, %v5590_v51 }
 0x335   : > { %3883 = vmatmul.bf16.gmra.mxu1 %v7783_v55  ;;  %v5817_v6 = vor.u32 %v6327_v7, %v5814_v0  ;;  %v6323_v55 = vld [vmem:[%s9710_s2 + $0x84c] sm:$0xf]  ;;  %v5577_v0 = vor.u32 %v6267_v45, %v5574_v39  ;;  %v5766_v51 = vld [vmem:[%s9710_s2 + $0x818] sm:$0xf0] }
 0x336   : > { %3925 = vmatpush.bf16.msrb.mxu3 %v5593_v48  ;;  %v5801_v59 = vor.u32 %v6323_v55, %v5798_v4  ;;  %v4019_v48 = vmax.f32 %v9190_v21, 0.0  ;;  %v5414_v45 = vld [vmem:[%s9710_s2 + $0x558] sm:$0xf0]  ;;  %v6255_v39 = vld [vmem:[%s9710_s2 + $0x62c] sm:$0xf] }
 0x337   : > { %v3584_v32 = vpop.f32.mrf.mxu3  ;;  %3985 = vmatpush.bf16.msrb.mxu1 %v5817_v6  ;;  %v4023_v6 = vmax.f32 %v9206_v5, 0.0  ;;  %v6263_v5 = vld [vmem:[%s9710_s2 + $0x66c] sm:$0xf] }
 0x338   : > { %v3456_v19 = vpop.f32.mrf.mxu2 }
 0x339   : > { %v3457_v36 = vadd.f32 %v3456_v19, %v3428_v12 }
 0x33a   : > { %v9325_v56 = vpop.f32.mrf.mxu1  ;;  %3926 = vmatpush.bf16.msrb.mxu3 %v5577_v0 }
 0x33b   : > { %v9327_v37 = vadd.f32 %v3485_v8, %v3457_v36  ;;  %3986 = vmatpush.bf16.msrb.mxu1 %v5801_v59  ;;  %v3527_v8 = vadd.f32 %v8956_v46, %v8607_v43  ;;  %v6231_v43 = vld [vmem:[%s9710_s2 + $0x56c] sm:$0xf]  ;;  %v5430_v46 = vld [vmem:[%s9710_s2 + $0x578] sm:$0xf0]  ;;  %v9366_v59 = vpack.c.bf16 %v4023_v6, %v4019_v48 }
 0x33c   : > { %v5433_v21 = vor.u32 %v6231_v43, %v5430_v46  ;;  %v5510_v48 = vld [vmem:[%s9710_s2 + $0x618] sm:$0xf0]  ;;  %v4031_v46 = vmax.f32 %v9262_v54, 0.0 }
 0x33d   : > { %3786 = vmatmul.bf16.vlgmr.msra.gmra.mxu2 %v7343_v3  ;;  %v6315_v3 = vld [vmem:[%s9710_s2 + $0x80c] sm:$0xf] }
 0x33e   : > { %v5769_v19 = vor.u32 %v6315_v3, %v5766_v51  ;;  %3898 = vmatpush.bf16.msrb.mxu2 %v5433_v21  ;;  %v9829_v3 = vld [vmem:[#allocation13_spill] sm:$0xff]  ;;  %v6251_v51 = vld [vmem:[%s9710_s2 + $0x60c] sm:$0xf] }
 0x33f   : > { %v9329_v7 = vpop.f32.mrf.mxu3  ;;  %3987 = vmatpush.bf16.msrb.mxu1 %v5785_v18  ;;  %v6227_v18 = vld [vmem:[%s9710_s2 + $0x54c] sm:$0xf]  ;;  %v5513_v43 = vor.u32 %v6251_v51, %v5510_v48  ;;  %v4039_v48 = vmax.f32 %v9327_v37, 0.0 }
 0x340   : > { %v3555_v13 = vpop.f32.mrf.mxu2  ;;  %v5417_v0 = vor.u32 %v6227_v18, %v5414_v45  ;;  %v6369_v18 = vld [vmem:[%s9711_s3 + $0xb8] sm:$0xff] }
 0x341   : > { %v3556_v12 = vadd.f32 %v3555_v13, %v3527_v8  ;;  %v5526_v8 = vld [vmem:[%s9710_s2 + $0x638] sm:$0xf0]  ;;  %4372 = vmatpush.bf16.msrb.mxu0 %v6369_v18 }
 0x342   : > { %v9363_v4 = vpop.f32.mrf.mxu1  ;;  %v5529_v6 = vor.u32 %v6255_v39, %v5526_v8  ;;  %3899 = vmatpush.bf16.msrb.mxu2 %v5417_v0  ;;  %v5382_v45 = vld [vmem:[%s9710_s2 + $0x518] sm:$0xf0]  ;;  %v9831_v8 = vld [vmem:[#allocation14_spill] sm:$0xff] }
 0x343   : > { %v9358_v55 = vadd.f32 %v3584_v32, %v3556_v12  ;;  %3988 = vmatpush.bf16.msrb.mxu1 %v5769_v19  ;;  %v6259_v32 = vld [vmem:[%s9710_s2 + $0x64c] sm:$0xf]  ;;  %v3532_v19 = vadd.f32 %v8990_v27, %v8680_v10 }
 0x344   : > { %3820 = vmatmul.bf16.gmra.mxu3 %v9808_v23  ;;  %v5558_v23 = vld [vmem:[%s9710_s2 + $0x678] sm:$0xf0]  ;;  %v5545_v20 = vor.u32 %v6259_v32, %v5542_v28  ;;  %v9830_v27 = vld [vmem:[#allocation27_spill] sm:$0xff] }
 0x345   : > { %3888 = vmatmul.bf16.gmra.mxu1 %v9828_v50  ;;  %v5561_v36 = vor.u32 %v6263_v5, %v5558_v23  ;;  %v4027_v23 = vmax.f32 %v9227_v35, 0.0  ;;  %v6223_v50 = vld [vmem:[%s9710_s2 + $0x52c] sm:$0xf]  ;;  %v9413_v35 = vpop.f32.mrf.mxu0  ;;  %v3614_v37 = vadd.f32 %v8984_v53, %v9358_v55  ;;  %v9833_v53 = vld [vmem:[#allocation16_spill] sm:$0xff] }
 0x347   : > { %v3589_v16 = vpop.f32.mrf.mxu3  ;;  %3927 = vmatpush.bf16.msrb.mxu3 %v5561_v36  ;;  %v5398_v36 = vld [vmem:[%s9710_s2 + $0x538] sm:$0xf0]  ;;  %v9411_v54 = vpack.c.bf16 %v4031_v46, %v4027_v23  ;;  %v4035_v46 = vmax.f32 %v9292_v42, 0.0  ;;  %v3643_v42 = vadd.f32 %v9180_v15, %v3614_v37  ;;  %v3542_v15 = vadd.f32 %v9124_v9, %v8912_v57 }
 0x348   : > { %v9374_v11 = vpop.f32.mrf.mxu2  ;;  %v5401_v10 = vor.u32 %v6223_v50, %v5398_v36  ;;  %v9832_v50 = vld [vmem:[#allocation30_spill] sm:$0xff] }
 0x34a   : > { %v9397_v12 = vpop.f32.mrf.mxu1  ;;  %3900 = vmatpush.bf16.msrb.mxu2 %v5401_v10  ;;  %v6365_v10 = vld [vmem:[%s9711_s3 + $0x98] sm:$0xff] }
 0x34b   : > { %3928 = vmatpush.bf16.msrb.mxu3 %v5545_v20 }
 0x34d   : > { %3791 = vmatmul.bf16.gmra.mxu2 %v9829_v3  ;;  %v3537_v3 = vadd.f32 %v9058_v52, %v8787_v33  ;;  %v9436_v51 = vpop.f32.mrf.mxu0  ;;  %v9447_v33 = vpack.c.bf16 %v4039_v48, %v4035_v46 }
 0x34f   : > { %v9388_v13 = vpop.f32.mrf.mxu3  ;;  %3929 = vmatpush.bf16.msrb.mxu3 %v5529_v6  ;;  %v6368_v6 = vld [vmem:[%s9711_s3 + $0xb0] sm:$0xff] }
 0x350   : > { %v3560_v5 = vpop.f32.mrf.mxu2  ;;  %4373 = vmatpush.bf16.msrb.mxu0 %v6368_v6  ;;  %v6363_v6 = vld [vmem:[%s9711_s3 + $0x88] sm:$0xff] }
 0x351   : > { %v3561_v21 = vadd.f32 %v3560_v5, %v3532_v19 }
 0x352   : > { %v9417_v20 = vpop.f32.mrf.mxu1 }
 0x353   : > { %v3590_v32 = vadd.f32 %v3589_v16, %v3561_v21  ;;  %3930 = vmatpush.bf16.msrb.mxu3 %v5513_v43  ;;  %v6219_v16 = vld [vmem:[%s9710_s2 + $0x50c] sm:$0xf] }
 0x354   : > { %3825 = vmatmul.bf16.gmra.mxu3 %v9812_v29  ;;  %v5385_v39 = vor.u32 %v6219_v16, %v5382_v45  ;;  %v6367_v21 = vld [vmem:[%s9711_s3 + $0xa8] sm:$0xff]  ;;  %v6364_v45 = vld [vmem:[%s9711_s3 + $0x90] sm:$0xff] }
 0x355   : > { %3989 = vmatmul.bf16.vlgmr.msrb.gmra.mxu1 %v9830_v27  ;;  %4374 = vmatpush.bf16.msrb.mxu0 %v6367_v21  ;;  %v9460_v27 = vpop.f32.mrf.mxu0  ;;  %v6358_v21 = vld [vmem:[%s9711_s3 + $0x60] sm:$0xff] }
 0x356   : > { %3901 = vmatpush.bf16.msrb.mxu2 %v5385_v39  ;;  %v6361_v39 = vld [vmem:[%s9711_s3 + $0x78] sm:$0xff] }
 0x357   : > { %v3594_v28 = vpop.f32.mrf.mxu3  ;;  %4343 = vmatpush.bf16.msra.mxu3 %v6361_v39  ;;  %v6351_v39 = vld [vmem:[%s9711_s3 + $0x28] sm:$0xff] }
 0x358   : > { %v9415_v29 = vpop.f32.mrf.mxu2 }
 0x35a   : > { %v9441_v5 = vpop.f32.mrf.mxu1 }
 0x35d   : > { %3796 = vmatmul.bf16.gmra.mxu2 %v9831_v8  ;;  %v9481_v57 = vpop.f32.mrf.mxu0 }
 0x35f   : > { %v9428_v0 = vpop.f32.mrf.mxu3 }
 0x360   : > { %v3565_v19 = vpop.f32.mrf.mxu2 }
 0x361   : > { %v3566_v43 = vadd.f32 %v3565_v19, %v3537_v3  ;;  %v3619_v3 = vadd.f32 %v9055_v17, %v3590_v32  ;;  %v6362_v19 = vld [vmem:[%s9711_s3 + $0x80] sm:$0xff]  ;;  %v6359_v17 = vld [vmem:[%s9711_s3 + $0x68] sm:$0xff] }
 0x363   : > { %v3595_v23 = vadd.f32 %v3594_v28, %v3566_v43  ;;  %v9462_v28 = vpop.f32.mrf.mxu1  ;;  %v3648_v48 = vadd.f32 %v9212_v24, %v3619_v3  ;;  %v6360_v43 = vld [vmem:[%s9711_s3 + $0x70] sm:$0xff] }
 0x364   : > { %3830 = vmatmul.bf16.gmra.mxu3 %v9816_v25  ;;  %v6366_v25 = vld [vmem:[%s9711_s3 + $0xa0] sm:$0xff] }
 0x365   : > { %3994 = vmatmul.bf16.gmra.mxu1 %v9832_v50  ;;  %4375 = vmatpush.bf16.msrb.mxu0 %v6366_v25  ;;  %v9506_v50 = vpop.f32.mrf.mxu0 }
 0x366   : > { %4344 = vmatpush.bf16.msra.mxu3 %v6360_v43 }
 0x367   : > { %v3599_v52 = vpop.f32.mrf.mxu3 }
 0x368   : > { %v9455_v36 = vpop.f32.mrf.mxu2 }
 0x369   : > { %4376 = vmatpush.bf16.msrb.mxu0 %v6365_v10  ;;  %v3624_v10 = vadd.f32 %v9143_v30, %v3595_v23 }
 0x36a   : > { %4345 = vmatpush.bf16.msra.mxu3 %v6359_v17  ;;  %v6354_v17 = vld [vmem:[%s9711_s3 + $0x40] sm:$0xff] }
 0x36d   : > { %3801 = vmatmul.bf16.gmra.mxu2 %v9833_v53  ;;  %4377 = vmatpush.bf16.msrb.mxu0 %v6364_v45  ;;  %v9835_v45 = vld [vmem:[#allocation32_spill] sm:$0xff] }
 0x36e   : > { %4346 = vmatpush.bf16.msra.mxu3 %v6358_v21 }
 0x36f   : > { %v9464_v18 = vpop.f32.mrf.mxu3 }
 0x370   : > { %v3570_v55 = vpop.f32.mrf.mxu2 }
 0x371   : > { %v3571_v16 = vadd.f32 %v3570_v55, %v3542_v15  ;;  %4378 = vmatpush.bf16.msrb.mxu0 %v6363_v6  ;;  %v9523_v15 = vadd.f32 %v9280_v1, %v3624_v10  ;;  %v6356_v55 = vld [vmem:[%s9711_s3 + $0x50] sm:$0xff] }
 0x373   : > { %v9476_v8 = vadd.f32 %v3599_v52, %v3571_v16  ;;  %v9834_v16 = vld [vmem:[#allocation26_spill] sm:$0xff] }
 0x374   : > { %3931 = vmatmul.bf16.vlgmr.msrb.gmra.mxu3 %v9820_v2  ;;  %v9485_v2 = vpop.f32.mrf.mxu1  ;;  %v3534_v30 = vadd.f32 %v9835_v45, %v9834_v16 }
 0x375   : > { %3999 = vmatmul.bf16.gmra.mxu1 %v8069_v38  ;;  %v3529_v38 = vadd.f32 %v8980_v31, %v8650_v14  ;;  %4379 = vmatpush.bf16.msrb.mxu0 %v6362_v19  ;;  %v3629_v10 = vadd.f32 %v9202_v63, %v9476_v8  ;;  %v6347_v63 = vld [vmem:[%s9711_s3 + $0x8] sm:$0xff] }
 0x376   : > { %v3563_v6 = vadd.f32 %v9415_v29, %v3534_v30 }
 0x377   : > { %v3700_v9 = vpop.f32.mrf.mxu3  ;;  %v3558_v24 = vadd.f32 %v9374_v11, %v3529_v38  ;;  %v6357_v11 = vld [vmem:[%s9711_s3 + $0x58] sm:$0xff]  ;;  %v9836_v38 = vld [vmem:[#allocation15_spill] sm:$0xff] }
 0x378   : > { %v9494_v46 = vpop.f32.mrf.mxu2  ;;  %4347 = vmatpush.bf16.msra.mxu3 %v6357_v11  ;;  %v3592_v29 = vadd.f32 %v9388_v13, %v3563_v6  ;;  %v6346_v6 = vld [vmem:[%s9711_s3] sm:$0xff] }
 0x379   : > { %v3587_v14 = vadd.f32 %v9329_v7, %v3558_v24  ;;  %v6350_v24 = vld [vmem:[%s9711_s3 + $0x20] sm:$0xff] }
 0x37b   : > { %v3616_v25 = vadd.f32 %v9017_v60, %v3587_v14 }
 0x37c   : > { %v9509_v31 = vpop.f32.mrf.mxu1  ;;  %4348 = vmatpush.bf16.msra.mxu3 %v6356_v55  ;;  %v6348_v55 = vld [vmem:[%s9711_s3 + $0x10] sm:$0xff] }
 0x37d   : > { %3902 = vmatmul.bf16.vlgmr.msrb.gmra.mxu2 %v7496_v47  ;;  %v6353_v47 = vld [vmem:[%s9711_s3 + $0x38] sm:$0xff] }
 0x37e   : > { %4314 = vmatpush.bf16.msra.mxu2 %v6353_v47  ;;  %v9837_v47 = vld [vmem:[#allocation33_spill] sm:$0xff] }
 0x37f   : > { %v3702_v32 = vpop.f32.mrf.mxu3 }
 0x380   : > { %v3671_v52 = vpop.f32.mrf.mxu2 }
 0x381   : > { %v3672_v37 = vadd.f32 %v3671_v52, %v3643_v42  ;;  %v9528_v42 = vpop.f32.mrf.mxu0  ;;  %v6349_v52 = vld [vmem:[%s9711_s3 + $0x18] sm:$0xff] }
 0x383   : > { %v3701_v53 = vadd.f32 %v3700_v9, %v3672_v37  ;;  %v3621_v37 = vadd.f32 %v9837_v47, %v3592_v29  ;;  %v9842_v47 = vld [vmem:[#allocation20_spill] sm:$0xff] }
 0x384   : > { %3936 = vmatmul.bf16.gmra.mxu3 %v9823_v34  ;;  %v3645_v34 = vadd.f32 %v9204_v49, %v3616_v25  ;;  %v6355_v49 = vld [vmem:[%s9711_s3 + $0x48] sm:$0xff]  ;;  %v9538_v1 = vpop.f32.mrf.mxu1 }
 0x385   : > { %4004 = vmatmul.bf16.gmra.mxu1 %v8131_v40  ;;  %v6352_v40 = vld [vmem:[%s9711_s3 + $0x30] sm:$0xff]  ;;  %v3730_v9 = vadd.f32 %v9413_v35, %v3701_v53  ;;  %4349 = vmatpush.bf16.msra.mxu3 %v6355_v49  ;;  %v9840_v49 = vld [vmem:[#allocation17_spill] sm:$0xff] }
 0x386   : > { %4315 = vmatpush.bf16.msra.mxu2 %v6352_v40  ;;  %v9839_v40 = vld [vmem:[#allocation4_spill] sm:$0xff] }
 0x387   : > { %v3705_v7 = vpop.f32.mrf.mxu3  ;;  %v4012_v21 = vmax.f32 %v3730_v9, 0.0 }
 0x388   : > { %v3673_v60 = vpop.f32.mrf.mxu2 }
 0x389   : > { %v3674_v23 = vadd.f32 %v3673_v60, %v3645_v34  ;;  %4350 = vmatpush.bf16.msra.mxu3 %v6354_v17  ;;  %v3650_v34 = vadd.f32 %v9251_v62, %v3621_v37  ;;  %v9838_v60 = vld [vmem:[#allocation18_spill] sm:$0xff] }
 0x38a   : > { %4316 = vmatpush.bf16.msra.mxu2 %v6351_v39  ;;  %v3539_v16 = vadd.f32 %v9839_v40, %v9838_v60 }
 0x38b   : > { %v3703_v3 = vadd.f32 %v3702_v32, %v3674_v23 }
 0x38c   : > { %v9561_v25 = vpop.f32.mrf.mxu1  ;;  %v3568_v8 = vadd.f32 %v9455_v36, %v3539_v16 }
 0x38d   : > { %v3732_v43 = vadd.f32 %v9436_v51, %v3703_v3  ;;  %3907 = vmatmul.bf16.gmra.mxu2 %v9836_v38  ;;  %v9554_v51 = vpop.f32.mrf.mxu0 }
 0x38e   : > { %4317 = vmatpush.bf16.msra.mxu2 %v6350_v24  ;;  %v3597_v9 = vadd.f32 %v9428_v0, %v3568_v8  ;;  %v9843_v8 = vld [vmem:[#allocation36_spill] sm:$0xff] }
 0x38f   : > { %v3707_v19 = vpop.f32.mrf.mxu3  ;;  %v4016_v35 = vmax.f32 %v3732_v43, 0.0 }
 0x390   : > { %v3676_v32 = vpop.f32.mrf.mxu2 }
 0x391   : > { %v4044_v14 = vpack.c.bf16 %v4016_v35, %v4012_v21  ;;  %v3677_v11 = vadd.f32 %v3676_v32, %v3648_v48  ;;  %v9841_v35 = vld [vmem:[#allocation21_spill] sm:$0xff] }
 0x392   : > { %4318 = vmatpush.bf16.msra.mxu2 %v6349_v52  ;;  %v3544_v32 = vadd.f32 %v9161_v41, %v9841_v35 }
 0x393   : > { %4380 = vmatmul.bf16.vlgmr.msrb.gmra.mxu0 %v4044_v14  ;;  %v3706_v53 = vadd.f32 %v3705_v7, %v3677_v11 }
 0x394   : > { %3941 = vmatmul.bf16.gmra.mxu3 %v9825_v22  ;;  %v3658_v22 = vadd.f32 %v9363_v4, %v3629_v10  ;;  %v9579_v39 = vpop.f32.mrf.mxu1 }
 0x395   : > { %v3735_v62 = vadd.f32 %v9460_v27, %v3706_v53  ;;  %v3746_v4 = vpop.f32.mrf.mxu0 }
 0x396   : > { %4319 = vmatpush.bf16.msra.mxu2 %v6348_v55 }
 0x397   : > { %v3710_v13 = vpop.f32.mrf.mxu3  ;;  %v4020_v3 = vmax.f32 %v3735_v62, 0.0 }
 0x398   : > { %v3678_v48 = vpop.f32.mrf.mxu2 }
 0x399   : > { %v3679_v45 = vadd.f32 %v3678_v48, %v3650_v34 }
 0x39a   : > { %4320 = vmatpush.bf16.msra.mxu2 %v6347_v63 }
 0x39b   : > { %v3708_v7 = vadd.f32 %v3707_v19, %v3679_v45  ;;  %v3626_v19 = vadd.f32 %v9175_v26, %v3597_v9  ;;  %v6375_v9 = vld [vmem:[%s9711_s3 + $0xe8] sm:$0xff] }
 0x39c   : > { %v9591_v21 = vpop.f32.mrf.mxu1 }
 0x39d   : > { %v3737_v23 = vadd.f32 %v9481_v57, %v3708_v7  ;;  %3912 = vmatmul.bf16.gmra.mxu2 %v9840_v49  ;;  %v9588_v17 = vpop.f32.mrf.mxu0  ;;  %v3655_v29 = vadd.f32 %v9325_v56, %v3626_v19 }
 0x39e   : > { %4321 = vmatpush.bf16.msra.mxu2 %v6346_v6 }
 0x39f   : > { %v3712_v30 = vpop.f32.mrf.mxu3  ;;  %v4024_v36 = vmax.f32 %v3737_v23, 0.0 }
 0x3a0   : > { %v3681_v43 = vpop.f32.mrf.mxu2 }
 0x3a1   : > { %v4048_v27 = vpack.c.bf16 %v4024_v36, %v4020_v3  ;;  %v3682_v57 = vadd.f32 %v3681_v43, %v9523_v15  ;;  %v6374_v43 = vld [vmem:[%s9711_s3 + $0xe0] sm:$0xff] }
 0x3a3   : > { %4385 = vmatmul.bf16.gmra.mxu0 %v4048_v27  ;;  %v3711_v24 = vadd.f32 %v3710_v13, %v3682_v57 }
 0x3a4   : > { %3946 = vmatmul.bf16.gmra.mxu3 %v9827_v61  ;;  %v3573_v61 = vadd.f32 %v9494_v46, %v3544_v32  ;;  %v9602_v41 = vpop.f32.mrf.mxu1 }
 0x3a5   : > { %v3740_v15 = vadd.f32 %v9506_v50, %v3711_v24  ;;  %v9600_v10 = vpop.f32.mrf.mxu0 }
 0x3a6   : > { %v3602_v37 = vadd.f32 %v9464_v18, %v3573_v61 }
 0x3a7   : > { %v3715_v38 = vpop.f32.mrf.mxu3  ;;  %v4028_v56 = vmax.f32 %v3740_v15, 0.0  ;;  %v9845_v15 = vld [vmem:[#allocation29_spill] sm:$0xff] }
 0x3a8   : > { %v3683_v0 = vpop.f32.mrf.mxu2  ;;  %v3631_v50 = vadd.f32 %v9224_v58, %v3602_v37 }
 0x3a9   : > { %v3684_v14 = vadd.f32 %v3683_v0, %v3655_v29  ;;  %v6373_v0 = vld [vmem:[%s9711_s3 + $0xd8] sm:$0xff] }
 0x3aa   : > { %v3660_v48 = vadd.f32 %v9397_v12, %v3631_v50 }
 0x3ab   : > { %v3713_v52 = vadd.f32 %v3712_v30, %v3684_v14 }
 0x3ad   : > { %v3742_v26 = vadd.f32 %v9528_v42, %v3713_v52  ;;  %3917 = vmatmul.bf16.gmra.mxu2 %v9842_v47  ;;  %v6377_v42 = vld [vmem:[%s9711_s3 + $0xf8] sm:$0xff]  ;;  %v9610_v16 = vpop.f32.mrf.mxu0 }
 0x3ae   : > { %4401 = vmatpush.bf16.msra.mxu1 %v6377_v42 }
 0x3af   : > { %v3717_v11 = vpop.f32.mrf.mxu3  ;;  %v4032_v13 = vmax.f32 %v3742_v26, 0.0 }
 0x3b0   : > { %v3686_v53 = vpop.f32.mrf.mxu2 }
 0x3b1   : > { %v4052_v34 = vpack.c.bf16 %v4032_v13, %v4028_v56  ;;  %v3687_v46 = vadd.f32 %v3686_v53, %v3658_v22  ;;  %v9613_v22 = vpop.f32.mrf.mxu1 }
 0x3b3   : > { %4390 = vmatmul.bf16.gmra.mxu0 %v4052_v34  ;;  %v3716_v18 = vadd.f32 %v3715_v38, %v3687_v46  ;;  %v6371_v34 = vld [vmem:[%s9711_s3 + $0xc8] sm:$0xff] }
 0x3b4   : > { %4351 = vmatmul.bf16.vlgmr.msra.gmra.mxu3 %v9177_v44 }
 0x3b5   : > { %v3745_v45 = vadd.f32 %v9554_v51, %v3716_v18  ;;  %v6376_v51 = vld [vmem:[%s9711_s3 + $0xf0] sm:$0xff]  ;;  %v9623_v6 = vpop.f32.mrf.mxu0 }
 0x3b6   : > { %4402 = vmatpush.bf16.msra.mxu1 %v6376_v51 }
 0x3b7   : > { %v3816_v55 = vpop.f32.mrf.mxu3  ;;  %v4036_v62 = vmax.f32 %v3745_v45, 0.0 }
 0x3b8   : > { %v3688_v60 = vpop.f32.mrf.mxu2 }
 0x3b9   : > { %v3689_v40 = vadd.f32 %v3688_v60, %v3660_v48  ;;  %v9628_v3 = vpop.f32.mrf.mxu1 }
 0x3ba   : > { %4403 = vmatpush.bf16.msra.mxu1 %v6375_v9 }
 0x3bb   : > { %v3718_v44 = vadd.f32 %v3717_v11, %v3689_v40 }
 0x3bd   : > { %v3747_v58 = vadd.f32 %v3746_v4, %v3718_v44  ;;  %4322 = vmatmul.bf16.vlgmr.msra.gmra.mxu2 %v9843_v8  ;;  %v3855_v27 = vpop.f32.mrf.mxu0 }
 0x3be   : > { %4404 = vmatpush.bf16.msra.mxu1 %v6374_v43 }
 0x3bf   : > { %v9615_v63 = vpop.f32.mrf.mxu3  ;;  %v4040_v7 = vmax.f32 %v3747_v58, 0.0 }
 0x3c0   : > { %v3787_v30 = vpop.f32.mrf.mxu2 }
 0x3c1   : > { %v3788_v12 = vadd.f32 %v3787_v30, %v9417_v20  ;;  %v4056_v23 = vpack.c.bf16 %v4040_v7, %v4036_v62  ;;  %v3884_v57 = vpop.f32.mrf.mxu1 }
 0x3c2   : > { %4405 = vmatpush.bf16.msra.mxu1 %v6373_v0 }
 0x3c3   : > { %v3817_v49 = vadd.f32 %v3816_v55, %v3788_v12  ;;  %4395 = vmatmul.bf16.gmra.mxu0 %v4056_v23 }
 0x3c4   : > { %4356 = vmatmul.bf16.gmra.mxu3 %v9366_v59  ;;  %v9844_v59 = vld [vmem:[#allocation28_spill] sm:$0xff] }
 0x3c5   : > { %v9641_v35 = vpop.f32.mrf.mxu0  ;;  %v3846_v56 = vadd.f32 %v9588_v17, %v3817_v49 }
 0x3c7   : > { %v3821_v4 = vpop.f32.mrf.mxu3  ;;  %v3875_v13 = vadd.f32 %v9591_v21, %v3846_v56  ;;  %v6370_v21 = vld [vmem:[%s9711_s3 + $0xc0] sm:$0xff] }
 0x3c8   : > { %v3789_v20 = vpop.f32.mrf.mxu2 }
 0x3c9   : > { %v9643_v14 = vpop.f32.mrf.mxu1  ;;  %v3790_v58 = vadd.f32 %v3789_v20, %v9441_v5 }
 0x3cd   : > { %4327 = vmatmul.bf16.gmra.mxu2 %v9844_v59  ;;  %v3860_v11 = vpop.f32.mrf.mxu0 }
 0x3cf   : > { %v9630_v36 = vpop.f32.mrf.mxu3 }
 0x3d0   : > { %v3792_v19 = vpop.f32.mrf.mxu2 }
 0x3d1   : > { %v3793_v38 = vadd.f32 %v3792_v19, %v9462_v28  ;;  %v3889_v47 = vpop.f32.mrf.mxu1 }
 0x3d3   : > { %v3822_v24 = vadd.f32 %v3821_v4, %v3793_v38 }
 0x3d4   : > { %4361 = vmatmul.bf16.gmra.mxu3 %v9411_v54  ;;  %v6372_v54 = vld [vmem:[%s9711_s3 + $0xd0] sm:$0xff] }
 0x3d5   : > { %4406 = vmatpush.bf16.msra.mxu1 %v6372_v54  ;;  %v9658_v46 = vpop.f32.mrf.mxu0  ;;  %v3851_v48 = vadd.f32 %v9610_v16, %v3822_v24 }
 0x3d7   : > { %v3826_v29 = vpop.f32.mrf.mxu3  ;;  %v3880_v40 = vadd.f32 %v9613_v22, %v3851_v48 }
 0x3d8   : > { %v3794_v32 = vpop.f32.mrf.mxu2 }
 0x3d9   : > { %4407 = vmatpush.bf16.msra.mxu1 %v6371_v34  ;;  %v3795_v5 = vadd.f32 %v3794_v32, %v9485_v2 }
 0x3dd   : > { %4332 = vmatmul.bf16.gmra.mxu2 %v9845_v15  ;;  %4408 = vmatpush.bf16.msra.mxu1 %v6370_v21  ;;  %v3961_v60 = vpop.f32.mrf.mxu0 }
 0x3df   : > { %v9645_v61 = vpop.f32.mrf.mxu3 }
 0x3e0   : > { %v3797_v28 = vpop.f32.mrf.mxu2 }
 0x3e1   : > { %v3798_v52 = vadd.f32 %v3797_v28, %v9509_v31  ;;  %v9846_v31 = vld [vmem:[#allocation31_spill] sm:$0xff] }
 0x3e3   : > { %v3827_v26 = vadd.f32 %v3826_v29, %v3798_v52  ;;  %v3824_v29 = vadd.f32 %v9630_v36, %v3795_v5 }
 0x3e4   : > { %4366 = vmatmul.bf16.gmra.mxu3 %v9447_v33  ;;  %v9663_v33 = vpop.f32.mrf.mxu1 }
 0x3e5   : > { %v3963_v62 = vpop.f32.mrf.mxu0  ;;  %v3856_v49 = vadd.f32 %v3855_v27, %v3827_v26  ;;  %v3853_v28 = vadd.f32 %v9623_v6, %v3824_v29 }
 0x3e7   : > { %v3831_v37 = vpop.f32.mrf.mxu3  ;;  %v3885_v4 = vadd.f32 %v3884_v57, %v3856_v49  ;;  %v3882_v32 = vadd.f32 %v9628_v3, %v3853_v28 }
 0x3e8   : > { %v3799_v53 = vpop.f32.mrf.mxu2 }
 0x3ec   : > { %v3990_v45 = vpop.f32.mrf.mxu1 }
 0x3ed   : > { %4337 = vmatmul.bf16.gmra.mxu2 %v9846_v31  ;;  %v3966_v19 = vpop.f32.mrf.mxu0  ;;  %v3800_v31 = vadd.f32 %v3799_v53, %v9538_v1 }
 0x3ef   : > { %v9660_v50 = vpop.f32.mrf.mxu3  ;;  %v3829_v6 = vadd.f32 %v9645_v61, %v3800_v31 }
 0x3f0   : > { %v3802_v55 = vpop.f32.mrf.mxu2 }
 0x3f1   : > { %v3803_v42 = vadd.f32 %v3802_v55, %v9561_v25  ;;  %v3819_v25 = vadd.f32 %v9615_v63, %v3790_v58 }
 0x3f3   : > { %v3832_v17 = vadd.f32 %v3831_v37, %v3803_v42  ;;  %v3848_v23 = vadd.f32 %v9600_v10, %v3819_v25 }
 0x3f4   : > { %v3992_v12 = vpop.f32.mrf.mxu1 }
 0x3f5   : > { %v3877_v16 = vadd.f32 %v9602_v41, %v3848_v23  ;;  %v3968_v52 = vpop.f32.mrf.mxu0  ;;  %v3861_v37 = vadd.f32 %v3860_v11, %v3832_v17 }
 0x3f7   : > { %v3932_v18 = vpop.f32.mrf.mxu3  ;;  %v3890_v56 = vadd.f32 %v3889_v47, %v3861_v37  ;;  %v3858_v47 = vadd.f32 %v9641_v35, %v3829_v6 }
 0x3f8   : > { %v9671_v44 = vpop.f32.mrf.mxu2 }
 0x3f9   : > { %v3887_v1 = vadd.f32 %v9643_v14, %v3858_v47  ;;  %v3805_v61 = vadd.f32 %v9671_v44, %v9579_v39 }
 0x3fc   : > { %v3995_v63 = vpop.f32.mrf.mxu1 }
 0x3fd   : > { %v3971_v48 = vpop.f32.mrf.mxu0 }
 0x3ff   : > { %v3934_v8 = vpop.f32.mrf.mxu3 }
 0x400   : > { %v3903_v7 = vpop.f32.mrf.mxu2 }
 0x401   : > { %v3904_v30 = vadd.f32 %v3903_v7, %v3875_v13 }
 0x403   : > { %v3933_v51 = vadd.f32 %v3932_v18, %v3904_v30 }
 0x404   : > { %v3997_v2 = vpop.f32.mrf.mxu1 }
 0x405   : > { %v3962_v59 = vadd.f32 %v3961_v60, %v3933_v51  ;;  %v3973_v53 = vpop.f32.mrf.mxu0 }
 0x407   : > { %v3937_v22 = vpop.f32.mrf.mxu3  ;;  %v3991_v38 = vadd.f32 %v3990_v45, %v3962_v59 }
 0x408   : > { %v3905_v9 = vpop.f32.mrf.mxu2 }
 0x409   : > { %v3906_v43 = vadd.f32 %v3905_v9, %v3877_v16  ;;  %v4013_v15 = vmax.f32 %v3991_v38, 0.0  ;;  %v3834_v16 = vadd.f32 %v9660_v50, %v3805_v61 }
 0x40b   : > { %v3935_v20 = vadd.f32 %v3934_v8, %v3906_v43  ;;  %v3863_v5 = vadd.f32 %v9658_v46, %v3834_v16 }
 0x40d   : > { %v3964_v24 = vadd.f32 %v3963_v62, %v3935_v20  ;;  %v3976_v14 = vpop.f32.mrf.mxu0  ;;  %v3892_v39 = vadd.f32 %v9663_v33, %v3863_v5 }
 0x40f   : > { %v3993_v0 = vadd.f32 %v3992_v12, %v3964_v24  ;;  %v3939_v41 = vpop.f32.mrf.mxu3 }
 0x410   : > { %v3908_v10 = vpop.f32.mrf.mxu2 }
 0x411   : > { %v4017_v27 = vmax.f32 %v3993_v0, 0.0  ;;  %v3909_v54 = vadd.f32 %v3908_v10, %v3880_v40  ;;  %v4000_v40 = vpop.f32.mrf.mxu1 }
 0x413   : > { %v4045_v57 = vpack.c.bf16 %v4017_v27, %v4013_v15  ;;  %v3938_v26 = vadd.f32 %v3937_v22, %v3909_v54 }
 0x415   : > { %4409 = vmatmul.bf16.vlgmr.msra.gmra.mxu1 %v4045_v57  ;;  %v3967_v34 = vadd.f32 %v3966_v19, %v3938_v26  ;;  %v3978_v0 = vpop.f32.mrf.mxu0 }
 0x417   : > { %v3942_v42 = vpop.f32.mrf.mxu3  ;;  %v3996_v18 = vadd.f32 %v3995_v63, %v3967_v34 }
 0x418   : > { %v3910_v13 = vpop.f32.mrf.mxu2 }
 0x419   : > { %v3911_v36 = vadd.f32 %v3910_v13, %v3882_v32  ;;  %v4021_v17 = vmax.f32 %v3996_v18, 0.0  ;;  %v4002_v12 = vpop.f32.mrf.mxu1 }
 0x41b   : > { %v3940_v55 = vadd.f32 %v3939_v41, %v3911_v36 }
 0x41d   : > { %v3969_v21 = vadd.f32 %v3968_v52, %v3940_v55  ;;  %v4381_v26 = vpop.f32.mrf.mxu0 }
 0x41f   : > { %v3998_v60 = vadd.f32 %v3997_v2, %v3969_v21  ;;  %v3944_v25 = vpop.f32.mrf.mxu3 }
 0x420   : > { %v3913_v45 = vpop.f32.mrf.mxu2 }
 0x421   : > { %v3914_v11 = vadd.f32 %v3913_v45, %v3885_v4  ;;  %v4025_v58 = vmax.f32 %v3998_v60, 0.0  ;;  %v4005_v20 = vpop.f32.mrf.mxu1 }
 0x423   : > { %v4049_v3 = vpack.c.bf16 %v4025_v58, %v4021_v17  ;;  %v3943_v8 = vadd.f32 %v3942_v42, %v3914_v11 }
 0x425   : > { %4414 = vmatmul.bf16.gmra.mxu1 %v4049_v3  ;;  %v3972_v7 = vadd.f32 %v3971_v48, %v3943_v8  ;;  %v4383_v2 = vpop.f32.mrf.mxu0 }
 0x427   : > { %v4001_v49 = vadd.f32 %v4000_v40, %v3972_v7  ;;  %v3947_v35 = vpop.f32.mrf.mxu3 }
 0x428   : > { %v3915_v62 = vpop.f32.mrf.mxu2 }
 0x429   : > { %v3916_v30 = vadd.f32 %v3915_v62, %v3887_v1  ;;  %v4029_v59 = vmax.f32 %v4001_v49, 0.0  ;;  %v4007_v27 = vpop.f32.mrf.mxu1 }
 0x42b   : > { %v3945_v23 = vadd.f32 %v3944_v25, %v3916_v30 }
 0x42d   : > { %v3974_v51 = vadd.f32 %v3973_v53, %v3945_v23  ;;  %v4386_v42 = vpop.f32.mrf.mxu0 }
 0x42f   : > { %v4003_v4 = vadd.f32 %v4002_v12, %v3974_v51  ;;  %v3949_v29 = vpop.f32.mrf.mxu3 }
 0x430   : > { %v3918_v22 = vpop.f32.mrf.mxu2 }
 0x431   : > { %v3919_v9 = vadd.f32 %v3918_v22, %v3890_v56  ;;  %v4033_v43 = vmax.f32 %v4003_v4, 0.0 }
 0x433   : > { %v4053_v19 = vpack.c.bf16 %v4033_v43, %v4029_v59  ;;  %v3948_v63 = vadd.f32 %v3947_v35, %v3919_v9 }
 0x435   : > { %4419 = vmatmul.bf16.gmra.mxu1 %v4053_v19  ;;  %v3977_v38 = vadd.f32 %v3976_v14, %v3948_v63  ;;  %v4388_v45 = vpop.f32.mrf.mxu0 }
 0x437   : > { %v4006_v15 = vadd.f32 %v4005_v20, %v3977_v38  ;;  %v4352_v52 = vpop.f32.mrf.mxu3 }
 0x438   : > { %v3920_v44 = vpop.f32.mrf.mxu2 }
 0x439   : > { %v3921_v24 = vadd.f32 %v3920_v44, %v3892_v39  ;;  %v4037_v41 = vmax.f32 %v4006_v15, 0.0 }
 0x43b   : > { %v3950_v50 = vadd.f32 %v3949_v29, %v3921_v24 }
 0x43d   : > { %v3979_v10 = vadd.f32 %v3978_v0, %v3950_v50  ;;  %v4391_v1 = vpop.f32.mrf.mxu0 }
 0x43f   : > { %v4008_v54 = vadd.f32 %v4007_v27, %v3979_v10  ;;  %v4354_v33 = vpop.f32.mrf.mxu3 }
 0x440   : > { %v4323_v46 = vpop.f32.mrf.mxu2 }
 0x441   : > { %v4041_v57 = vmax.f32 %v4008_v54, 0.0  ;;  %v4353_v32 = vadd.f32 %v4352_v52, %v4323_v46 }
 0x443   : > { %v4057_v28 = vpack.c.bf16 %v4041_v57, %v4037_v41  ;;  %v4382_v13 = vadd.f32 %v4381_v26, %v4353_v32 }
 0x445   : > { %4424 = vmatmul.bf16.gmra.mxu1 %v4057_v28  ;;  %v4393_v49 = vpop.f32.mrf.mxu0 }
 0x447   : > { %v4357_v34 = vpop.f32.mrf.mxu3 }
 0x448   : > { %v4325_v37 = vpop.f32.mrf.mxu2 }
 0x449   : > { %v4355_v55 = vadd.f32 %v4354_v33, %v4325_v37 }
 0x44b   : > { %v4384_v21 = vadd.f32 %v4383_v2, %v4355_v55 }
 0x44d   : > { %v4396_v14 = vpop.f32.mrf.mxu0 }
 0x44f   : > { %v4359_v60 = vpop.f32.mrf.mxu3 }
 0x450   : > { %v4328_v56 = vpop.f32.mrf.mxu2 }
 0x451   : > { %v4358_v40 = vadd.f32 %v4357_v34, %v4328_v56 }
 0x453   : > { %v4387_v11 = vadd.f32 %v4386_v42, %v4358_v40 }
 0x455   : > { %v4398_v38 = vpop.f32.mrf.mxu0 }
 0x457   : > { %v4362_v8 = vpop.f32.mrf.mxu3 }
 0x458   : > { %v4330_v18 = vpop.f32.mrf.mxu2 }
 0x459   : > { %v4360_v47 = vadd.f32 %v4359_v60, %v4330_v18 }
 0x45b   : > { %v4389_v25 = vadd.f32 %v4388_v45, %v4360_v47 }
 0x45f   : > { %v4364_v12 = vpop.f32.mrf.mxu3 }
 0x460   : > { %v4333_v3 = vpop.f32.mrf.mxu2 }
 0x461   : > { %v4363_v7 = vadd.f32 %v4362_v8, %v4333_v3 }
 0x463   : > { %v4392_v61 = vadd.f32 %v4391_v1, %v4363_v7 }
 0x467   : > { %v4367_v22 = vpop.f32.mrf.mxu3 }
 0x468   : > { %v4335_v30 = vpop.f32.mrf.mxu2 }
 0x469   : > { %v4365_v16 = vadd.f32 %v4364_v12, %v4335_v30 }
 0x46b   : > { %v4394_v35 = vadd.f32 %v4393_v49, %v4365_v16 }
 0x46f   : > { %v4369_v39 = vpop.f32.mrf.mxu3 }
 0x470   : > { %v4338_v4 = vpop.f32.mrf.mxu2 }
 0x471   : > { %v4368_v43 = vadd.f32 %v4367_v22, %v4338_v4 }
 0x473   : > { %v4397_v19 = vadd.f32 %v4396_v14, %v4368_v43 }
 0x478   : > { %v4340_v5 = vpop.f32.mrf.mxu2 }
 0x479   : > { %v4370_v44 = vadd.f32 %v4369_v39, %v4340_v5 }
 0x47b   : > { %v4399_v24 = vadd.f32 %v4398_v38, %v4370_v44 }
 0x492   : > { %v4410_v36 = vpop.f32.mrf.mxu1 }
 0x493   : > { %v4411_v31 = vadd.f32 %v4410_v36, %v4382_v13 }
 0x495   : > { %4430 = vst [vmem:[%s9695_s7] sm:$0xff] %v4411_v31 }
 0x49a   : > { %v4412_v48 = vpop.f32.mrf.mxu1 }
 0x49b   : > { %v4413_v6 = vadd.f32 %v4412_v48, %v4384_v21 }
 0x49d   : > { %4431 = vst [vmem:[%s9695_s7 + $0x8] sm:$0xff] %v4413_v6 }
 0x4a2   : > { %v4415_v17 = vpop.f32.mrf.mxu1 }
 0x4a3   : > { %v4416_v58 = vadd.f32 %v4415_v17, %v4387_v11 }
 0x4a5   : > { %4432 = vst [vmem:[%s9695_s7 + $0x10] sm:$0xff] %v4416_v58 }
 0x4aa   : > { %v4417_v53 = vpop.f32.mrf.mxu1 }
 0x4ab   : > { %v4418_v62 = vadd.f32 %v4417_v53, %v4389_v25 }
 0x4ad   : > { %4433 = vst [vmem:[%s9695_s7 + $0x18] sm:$0xff] %v4418_v62 }
 0x4b2   : > { %v4420_v23 = vpop.f32.mrf.mxu1 }
 0x4b3   : > { %v4421_v51 = vadd.f32 %v4420_v23, %v4392_v61 }
 0x4b5   : > { %4434 = vst [vmem:[%s9695_s7 + $0x20] sm:$0xff] %v4421_v51 }
 0x4ba   : > { %v4422_v9 = vpop.f32.mrf.mxu1 }
 0x4bb   : > { %v4423_v59 = vadd.f32 %v4422_v9, %v4394_v35 }
 0x4bd   : > { %4435 = vst [vmem:[%s9695_s7 + $0x28] sm:$0xff] %v4423_v59 }
 0x4c2   : > { %v4425_v20 = vpop.f32.mrf.mxu1 }
 0x4c3   : > { %v4426_v63 = vadd.f32 %v4425_v20, %v4397_v19 }
 0x4c5   : > { %4436 = vst [vmem:[%s9695_s7 + $0x30] sm:$0xff] %v4426_v63 }
 0x4ca   : > { %v4427_v29 = vpop.f32.mrf.mxu1 }
 0x4cb   : > { %v4428_v50 = vadd.f32 %v4427_v29, %v4399_v24 }
 0x4cd   : > { %4437 = vst [vmem:[%s9695_s7 + $0x38] sm:$0xff] %v4428_v50 }
 0x4ce PF: > { %s16_s18 = sadd.s32 1, %s6409_s18  }
 0x4cf   : > { %p13_p4 = scmp.ge.s32.totalorder %s16_s18, 4  }
 0x4d1   :  { %15 = sbr.rel (!%p13_p4) target bundleno = 1 (0x1), region = 89 }

</bundles_post_ra>
